<compile_context>
chip_gen: v6e
topology: v6e:2x2x1
jax: 0.10.0
libtpu: 0.0.40
codegen_flags: <defaults>
</compile_context>

<pallas_src>
import functools

import jax
import jax.numpy as jnp
import numpy as np
from jax import lax
from jax.experimental import pallas as pl
from jax.experimental.pallas import tpu as pltpu


def _round_up(n, m):
    return ((n + m - 1) // m) * m


# ---------------------------------------------------------------------------
# Pallas kernel: 2-layer LSTM recurrence + MLP head for one batch tile.
# ---------------------------------------------------------------------------
def pinball_lstm_kernel(
    x_ref,      # (T, Bt, F)   time-major input tile
    wih0_ref,   # (F, P)       layer-0 input weights, packed gates [i|f|g|o]
    whh0_ref,   # (P, P)       layer-0 recurrent weights (rows >= H are zero)
    b0_ref,     # (1, P)       layer-0 bias (b_ih + b_hh), f32
    wih1_ref,   # (P, P)       layer-1 input weights
    whh1_ref,   # (P, P)       layer-1 recurrent weights
    b1_ref,     # (1, P)       layer-1 bias, f32
    gamma_ref,  # (1, P)       LayerNorm weight (zero padded), f32
    beta_ref,   # (1, P)       LayerNorm bias, f32
    w1_ref,     # (P, H2P)     head linear-1 weight
    bb1_ref,    # (1, H2P)     head linear-1 bias, f32
    w2_ref,     # (H2P, QP)    head linear-2 weight
    bb2_ref,    # (1, QP)      head linear-2 bias, f32
    out_ref,    # (Bt, QP)     f32
    xproj_ref,  # (T, Bt, P)   VMEM scratch: hoisted layer-0 input projection
    *,
    H,          # true hidden size (4*H <= P)
    unroll,     # time-loop unroll factor
):
    T, Bt, F = x_ref.shape
    P = whh0_ref.shape[0]
    f32 = jnp.float32
    cdt = whh0_ref.dtype                      # MXU operand dtype (f32 or bf16)

    # ---- hoisted layer-0 input projection: one matmul, off the serial path ---
    x2d = x_ref[...].reshape(T * Bt, F).astype(cdt)
    xproj = jnp.dot(x2d, wih0_ref[...], preferred_element_type=f32) + b0_ref[...]
    xproj_ref[...] = xproj.reshape(T, Bt, P).astype(xproj_ref.dtype)

    whh0 = whh0_ref[...]
    wih1 = wih1_ref[...]
    whh1 = whh1_ref[...]
    b1 = jnp.broadcast_to(b1_ref[...], (Bt, P))          # hoisted broadcast

    lane = lax.broadcasted_iota(jnp.int32, (Bt, P), 1)
    state_mask = (lane < H).astype(f32)                  # valid h/c lanes
    g_slot = jnp.logical_and(lane >= 2 * H, lane < 3 * H)  # tanh-gate lanes

    # pltpu.roll lane-rotation direction probe (one-time, hoisted out of the
    # loop): we need shifted[l] == act[l + k]; depending on the rotate
    # convention that is roll(act, k) or roll(act, P - k).  Probing an iota
    # makes the f/o extraction below correct either way, for the cost of two
    # whole-vreg selects per step.
    lane_f = lane.astype(f32)
    probe = pltpu.roll(lane_f, H, axis=1)
    rolls_down = probe == ((lane + H) % P).astype(f32)   # roll(x,s)[l]==x[l+s]?

    def lstm_update(gates, c):
        # One sigmoid + one tanh over the whole packed-gate vector (EUP);
        # XLU rolls re-align f/g/o with the state lanes [0, H).
        act = jnp.where(g_slot, jnp.tanh(gates), jax.nn.sigmoid(gates))
        r1 = pltpu.roll(act, H, axis=1)
        r3 = pltpu.roll(act, 3 * H, axis=1)
        f_a = jnp.where(rolls_down, r1, r3)              # lanes[0:H]=sigmoid(f)
        o_a = jnp.where(rolls_down, r3, r1)              # lanes[0:H]=sigmoid(o)
        g_a = pltpu.roll(act, 2 * H, axis=1)             # lanes[0:H]=tanh(g)
        c_new = (f_a * c + act * g_a) * state_mask       # pad lanes forced to 0
        h_new = o_a * jnp.tanh(c_new)                    # pads stay 0 (tanh 0)
        return h_new, c_new

    def step(t, carry):
        g0, h0, c0, h1, c1 = carry
        # layer-0 nonlinearity for step t
        h0, c0 = lstm_update(g0, c0)
        # Issue layer-0's recurrent matmul for step t+1 now: it depends only
        # on h0(t), so it can overlap layer-1's EUP/VPU chain below.
        t_next = jnp.minimum(t + 1, T - 1)
        g0_next = xproj_ref[t_next].astype(f32) + jnp.dot(
            h0.astype(cdt), whh0, preferred_element_type=f32)
        # layer 1 for step t: two K=P matmuls, no per-step concatenate.
        g1 = (jnp.dot(h0.astype(cdt), wih1, preferred_element_type=f32)
              + jnp.dot(h1.astype(cdt), whh1, preferred_element_type=f32) + b1)
        h1, c1 = lstm_update(g1, c1)
        return g0_next, h0, c0, h1, c1

    zeros = jnp.zeros((Bt, P), f32)
    g0_init = xproj_ref[0].astype(f32)      # h0 starts at 0 -> no recurrent term
    carry = (g0_init, zeros, zeros, zeros, zeros)
    _, _, _, h1_last, _ = lax.fori_loop(0, T, step, carry, unroll=unroll)

    # ---- head: masked LayerNorm (pad lanes are exactly zero) + 2-layer MLP ---
    inv_h = jnp.float32(1.0 / H)
    mean = jnp.sum(h1_last, axis=-1, keepdims=True) * inv_h
    centered = (h1_last - mean) * state_mask
    var = jnp.sum(centered * centered, axis=-1, keepdims=True) * inv_h
    h_norm = centered * lax.rsqrt(var + 1e-5) * gamma_ref[...] + beta_ref[...]

    y1 = jnp.dot(h_norm.astype(cdt), w1_ref[...],
                 preferred_element_type=f32) + bb1_ref[...]
    y1 = jnp.maximum(y1, 0.0)
    out = jnp.dot(y1.astype(cdt), w2_ref[...],
                  preferred_element_type=f32) + bb2_ref[...]
    out_ref[...] = out.astype(out_ref.dtype)


# ---------------------------------------------------------------------------
# Wrapper: batch-gridded pallas_call with lane-dense padded layouts.
# ---------------------------------------------------------------------------
def _vmem_limit_bytes():
    """Scoped-VMEM limit derived from the chip generation (v7x: 64 MiB/TC)."""
    try:
        cap = int(pltpu.get_tpu_info().vmem_capacity_bytes)
    except Exception:
        cap = 64 * 1024 * 1024
    cap = max(cap, 32 * 1024 * 1024)
    return int(min(cap // 2, 96 * 1024 * 1024))


@functools.partial(jax.jit, static_argnames=("n_q", "hidden", "batch_tile"))
def pinball_lstm_forward(x, packed_params, n_q, hidden, batch_tile=128):
    B, T, F = x.shape
    H = hidden
    P = packed_params[1].shape[0]          # padded state/gate lane width (128)
    QP = packed_params[-1].shape[1]        # padded quantile width
    cdt = packed_params[1].dtype           # MXU operand dtype

    # Batch tile: multiple of 8.  If the batch is big enough, split it into at
    # least two grid steps so v7x's second TensorCore gets work (the batch
    # axis is "parallel"); on v5e/v6e (1 TC) a single-step grid stays as-is.
    b8 = _round_up(B, 8)
    bt = _round_up(min(batch_tile, b8), 8)
    if b8 // bt < 2 and b8 >= 16:
        bt = _round_up(pl.cdiv(b8, 2), 8)
    B_pad = _round_up(B, bt)
    grid = (B_pad // bt,)
    # Fully unroll the time loop only while the recurrent carries fit the
    # register file; larger batch tiles use partial unroll to avoid spills.
    unroll = True if bt <= 32 else 2

    # (B, T, F) -> (T, B_pad, F): per-step access is a leading-dim index.
    x_t = jnp.transpose(x, (1, 0, 2))
    if B_pad != B:
        x_t = jnp.pad(x_t, ((0, 0), (0, B_pad - B), (0, 0)))

    def resident(p):   # weights stay VMEM-resident across grid steps
        return pl.BlockSpec(p.shape, lambda b, nd=p.ndim: (0,) * nd)

    in_specs = [pl.BlockSpec((T, bt, F), lambda b: (0, b, 0))]
    in_specs += [resident(p) for p in packed_params]

    out = pl.pallas_call(
        functools.partial(pinball_lstm_kernel, H=H, unroll=unroll),
        out_shape=jax.ShapeDtypeStruct((B_pad, QP), jnp.float32),
        grid=grid,
        in_specs=in_specs,
        out_specs=pl.BlockSpec((bt, QP), lambda b: (b, 0)),
        scratch_shapes=[pltpu.VMEM((T, bt, P), cdt)],
        compiler_params=pltpu.CompilerParams(
            dimension_semantics=("parallel",),
            vmem_limit_bytes=_vmem_limit_bytes(),
        ),
    )(x_t, *packed_params)

    return out[:B, :n_q]


# ---------------------------------------------------------------------------
# PyTorch-layout parameter construction (deterministic uniform init).
# ---------------------------------------------------------------------------
def make_raw_params(key, n_feat, hidden, n_q):
    H = hidden
    k = 1.0 / np.sqrt(H)
    keys = jax.random.split(key, 12)

    def u(kk, shape, bound):
        return jax.random.uniform(kk, shape, jnp.float32, -bound, bound)

    return dict(
        w_ih0=u(keys[0], (4 * H, n_feat), k),
        w_hh0=u(keys[1], (4 * H, H), k),
        b_ih0=u(keys[2], (4 * H,), k),
        b_hh0=u(keys[3], (4 * H,), k),
        w_ih1=u(keys[4], (4 * H, H), k),
        w_hh1=u(keys[5], (4 * H, H), k),
        b_ih1=u(keys[6], (4 * H,), k),
        b_hh1=u(keys[7], (4 * H,), k),
        ln_w=jnp.ones((H,), jnp.float32),
        ln_b=jnp.zeros((H,), jnp.float32),
        fc1_w=u(keys[8], (H // 2, H), 1.0 / np.sqrt(H)),
        fc1_b=u(keys[9], (H // 2,), 1.0 / np.sqrt(H)),
        fc2_w=u(keys[10], (n_q, H // 2), 1.0 / np.sqrt(H // 2)),
        fc2_b=u(keys[11], (n_q,), 1.0 / np.sqrt(H // 2)),
    )


# ---------------------------------------------------------------------------
# Pack PyTorch-layout params into the packed-gate, lane-padded kernel layout.
# ---------------------------------------------------------------------------
def pack_params(raw, hidden, n_q, compute_dtype=jnp.float32):
    H = hidden
    if 4 * H > 128:
        # TODO(synk): fall back to one-gate-per-128-lane-slot layout for H > 32.
        raise NotImplementedError("packed-gate layout requires 4 * hidden <= 128")
    P = 128
    H2 = H // 2
    H2P = _round_up(max(H2, 1), 128)
    QP = _round_up(n_q, 128)
    f32 = jnp.float32

    def pack_cols(w_t):    # (in, 4H) -> (in, P); gates [i|f|g|o] contiguous
        return jnp.zeros((w_t.shape[0], P), f32).at[:, :4 * H].set(w_t)

    def pad_rows(w, rows):  # zero-pad the contraction dimension
        return jnp.zeros((rows, w.shape[1]), f32).at[:w.shape[0], :].set(w)

    wih0 = pack_cols(raw["w_ih0"].T)                          # (F, P)
    whh0 = pad_rows(pack_cols(raw["w_hh0"].T), P)             # (P, P)
    b0 = pack_cols((raw["b_ih0"] + raw["b_hh0"]).reshape(1, 4 * H))
    wih1 = pad_rows(pack_cols(raw["w_ih1"].T), P)             # (P, P)
    whh1 = pad_rows(pack_cols(raw["w_hh1"].T), P)             # (P, P)
    b1 = pack_cols((raw["b_ih1"] + raw["b_hh1"]).reshape(1, 4 * H))

    gamma = jnp.zeros((1, P), f32).at[0, :H].set(raw["ln_w"])
    beta = jnp.zeros((1, P), f32).at[0, :H].set(raw["ln_b"])

    w1 = jnp.zeros((P, H2P), f32).at[:H, :H2].set(raw["fc1_w"].T)
    bb1 = jnp.zeros((1, H2P), f32).at[0, :H2].set(raw["fc1_b"])
    w2 = jnp.zeros((H2P, QP), f32).at[:H2, :n_q].set(raw["fc2_w"].T)
    bb2 = jnp.zeros((1, QP), f32).at[0, :n_q].set(raw["fc2_b"])

    cdt = compute_dtype
    return (wih0.astype(cdt), whh0.astype(cdt), b0,
            wih1.astype(cdt), whh1.astype(cdt), b1,
            gamma, beta,
            w1.astype(cdt), bb1, w2.astype(cdt), bb2)


# ---------------------------------------------------------------------------
# Pure-JAX reference (PyTorch eval semantics) for a correctness check.
# ---------------------------------------------------------------------------
def reference_forward(x, raw, hidden, n_q):
    H = hidden
    B, T, F = x.shape

    def cell(inp, h, c, wih, whh, b):
        g = inp @ wih.T + h @ whh.T + b
        i = jax.nn.sigmoid(g[:, :H])
        f = jax.nn.sigmoid(g[:, H:2 * H])
        gg = jnp.tanh(g[:, 2 * H:3 * H])
        o = jax.nn.sigmoid(g[:, 3 * H:])
        c = f * c + i * gg
        return o * jnp.tanh(c), c

    b0 = raw["b_ih0"] + raw["b_hh0"]
    b1 = raw["b_ih1"] + raw["b_hh1"]
    h0 = c0 = h1 = c1 = jnp.zeros((B, H), jnp.float32)
    for t in range(T):
        h0, c0 = cell(x[:, t, :], h0, c0, raw["w_ih0"], raw["w_hh0"], b0)
        h1, c1 = cell(h0, h1, c1, raw["w_ih1"], raw["w_hh1"], b1)

    mean = h1.mean(-1, keepdims=True)
    var = ((h1 - mean) ** 2).mean(-1, keepdims=True)
    hn = (h1 - mean) / jnp.sqrt(var + 1e-5) * raw["ln_w"] + raw["ln_b"]
    y1 = jnp.maximum(hn @ raw["fc1_w"].T + raw["fc1_b"], 0.0)
    return y1 @ raw["fc2_w"].T + raw["fc2_b"]


if __name__ == "__main__":
    B, T, n_feat, hidden, n_q = 4, 8, 8, 32, 3

    key = jax.random.PRNGKey(0)
    kx, kp = jax.random.split(key)
    x = jax.random.normal(kx, (B, T, n_feat), jnp.float32)

    raw = make_raw_params(kp, n_feat, hidden, n_q)
    ref = reference_forward(x, raw, hidden, n_q)

    # f32 MXU-operand path: strict parity with the PyTorch-style reference.
    packed_f32 = pack_params(raw, hidden, n_q, compute_dtype=jnp.float32)
    out = jax.block_until_ready(
        pinball_lstm_forward(x, packed_f32, n_q=n_q, hidden=hidden))
    np.testing.assert_allclose(np.asarray(out), np.asarray(ref),
                               rtol=1e-5, atol=1e-5)

    # bf16 MXU-operand path (f32 accumulation): loose sanity check only, since
    # bf16 rounding over the recurrence + LayerNorm exceeds 1e-5 parity.
    packed_bf16 = pack_params(raw, hidden, n_q, compute_dtype=jnp.bfloat16)
    out_bf = jax.block_until_ready(
        pinball_lstm_forward(x, packed_bf16, n_q=n_q, hidden=hidden))
    assert np.all(np.isfinite(np.asarray(out_bf)))
    np.testing.assert_allclose(np.asarray(out_bf), np.asarray(ref),
                               rtol=0.25, atol=0.25)

    print("KERNEL_OK")
</pallas_src>

<mosaic_0001>
module attributes {stable_mosaic.version = 11 : i64} {
  func.func @pinball_lstm_kernel(%arg0: i32, %arg1: memref<8x8x8xf32, #tpu.memory_space<vmem>>, %arg2: memref<8x128xf32, #tpu.memory_space<vmem>>, %arg3: memref<128x128xf32, #tpu.memory_space<vmem>>, %arg4: memref<1x128xf32, #tpu.memory_space<vmem>>, %arg5: memref<128x128xf32, #tpu.memory_space<vmem>>, %arg6: memref<128x128xf32, #tpu.memory_space<vmem>>, %arg7: memref<1x128xf32, #tpu.memory_space<vmem>>, %arg8: memref<1x128xf32, #tpu.memory_space<vmem>>, %arg9: memref<1x128xf32, #tpu.memory_space<vmem>>, %arg10: memref<128x128xf32, #tpu.memory_space<vmem>>, %arg11: memref<1x128xf32, #tpu.memory_space<vmem>>, %arg12: memref<128x128xf32, #tpu.memory_space<vmem>>, %arg13: memref<1x128xf32, #tpu.memory_space<vmem>>, %arg14: memref<8x128xf32, #tpu.memory_space<vmem>>, %arg15: memref<8x8x128xf32, #tpu.memory_space<vmem>>) attributes {dimension_semantics = [#tpu.dimension_semantics<parallel>], iteration_bounds = array<i64: 1>, scalar_prefetch = 0 : i64, scratch_operands = 1 : i64, tpu.core_type = #tpu.core_type<tc>, window_params = [{transform_indices = @transform_0, window_bounds = array<i64: 8, 8, 8>}, {pipeline_mode = #tpu.pipeline_mode<synchronous>, transform_indices = @transform_1, window_bounds = array<i64: 8, 128>}, {pipeline_mode = #tpu.pipeline_mode<synchronous>, transform_indices = @transform_2, window_bounds = array<i64: 128, 128>}, {pipeline_mode = #tpu.pipeline_mode<synchronous>, transform_indices = @transform_3, window_bounds = array<i64: 1, 128>}, {pipeline_mode = #tpu.pipeline_mode<synchronous>, transform_indices = @transform_4, window_bounds = array<i64: 128, 128>}, {pipeline_mode = #tpu.pipeline_mode<synchronous>, transform_indices = @transform_5, window_bounds = array<i64: 128, 128>}, {pipeline_mode = #tpu.pipeline_mode<synchronous>, transform_indices = @transform_6, window_bounds = array<i64: 1, 128>}, {pipeline_mode = #tpu.pipeline_mode<synchronous>, transform_indices = @transform_7, window_bounds = array<i64: 1, 128>}, {pipeline_mode = #tpu.pipeline_mode<synchronous>, transform_indices = @transform_8, window_bounds = array<i64: 1, 128>}, {pipeline_mode = #tpu.pipeline_mode<synchronous>, transform_indices = @transform_9, window_bounds = array<i64: 128, 128>}, {pipeline_mode = #tpu.pipeline_mode<synchronous>, transform_indices = @transform_10, window_bounds = array<i64: 1, 128>}, {pipeline_mode = #tpu.pipeline_mode<synchronous>, transform_indices = @transform_11, window_bounds = array<i64: 128, 128>}, {pipeline_mode = #tpu.pipeline_mode<synchronous>, transform_indices = @transform_12, window_bounds = array<i64: 1, 128>}, {transform_indices = @transform_13, window_bounds = array<i64: 8, 128>}]} {
    %c0 = arith.constant 0 : index
    %c0_0 = arith.constant 0 : index
    %c0_1 = arith.constant 0 : index
    %0 = vector.load %arg1[%c0, %c0_0, %c0_1] : memref<8x8x8xf32, #tpu.memory_space<vmem>>, vector<8x8x8xf32>
    %1 = vector.shape_cast %0 : vector<8x8x8xf32> to vector<64x8xf32>
    %c0_2 = arith.constant 0 : index
    %c0_3 = arith.constant 0 : index
    %2 = vector.load %arg2[%c0_2, %c0_3] : memref<8x128xf32, #tpu.memory_space<vmem>>, vector<8x128xf32>
    %cst = arith.constant dense<0.000000e+00> : vector<64x128xf32>
    %3 = tpu.matmul %1, %2, %cst {dimension_numbers = #tpu.dot_dimension_numbers<[1], [0], [0], [1], [0, 0, 1, 1], [], []>} : vector<64x8xf32>, vector<8x128xf32>, vector<64x128xf32> -> vector<64x128xf32>
    %c0_4 = arith.constant 0 : index
    %c0_5 = arith.constant 0 : index
    %4 = vector.load %arg4[%c0_4, %c0_5] : memref<1x128xf32, #tpu.memory_space<vmem>>, vector<1x128xf32>
    %5 = vector.broadcast %4 : vector<1x128xf32> to vector<64x128xf32>
    %6 = arith.addf %3, %5 : vector<64x128xf32>
    %7 = vector.shape_cast %6 : vector<64x128xf32> to vector<8x8x128xf32>
    %c0_6 = arith.constant 0 : index
    %c0_7 = arith.constant 0 : index
    %c0_8 = arith.constant 0 : index
    %8 = vector.load %arg15[%c0_6, %c0_7, %c0_8] : memref<8x8x128xf32, #tpu.memory_space<vmem>>, vector<8x8x128xf32>
    tpu.vector_store %arg15[%c0_6, %c0_7, %c0_8], %7 {strides = array<i32>} : memref<8x8x128xf32, #tpu.memory_space<vmem>>, vector<8x8x128xf32>,
    %c0_9 = arith.constant 0 : index
    %c0_10 = arith.constant 0 : index
    %9 = vector.load %arg3[%c0_9, %c0_10] : memref<128x128xf32, #tpu.memory_space<vmem>>, vector<128x128xf32>
    %c0_11 = arith.constant 0 : index
    %c0_12 = arith.constant 0 : index
    %10 = vector.load %arg5[%c0_11, %c0_12] : memref<128x128xf32, #tpu.memory_space<vmem>>, vector<128x128xf32>
    %c0_13 = arith.constant 0 : index
    %c0_14 = arith.constant 0 : index
    %11 = vector.load %arg6[%c0_13, %c0_14] : memref<128x128xf32, #tpu.memory_space<vmem>>, vector<128x128xf32>
    %c0_15 = arith.constant 0 : index
    %c0_16 = arith.constant 0 : index
    %12 = vector.load %arg7[%c0_15, %c0_16] : memref<1x128xf32, #tpu.memory_space<vmem>>, vector<1x128xf32>
    %13 = vector.shape_cast %12 : vector<1x128xf32> to vector<1x128xf32>
    %14 = vector.broadcast %13 : vector<1x128xf32> to vector<8x128xf32>
    %15 = tpu.iota {dimensions = array<i32: 1>} : vector<8x128xi32>
    %c32_i32 = arith.constant 32 : i32
    %16 = vector.broadcast %c32_i32 : i32 to vector<8x128xi32>
    %17 = arith.cmpi slt, %15, %16 : vector<8x128xi32>
    %18 = arith.extui %17 : vector<8x128xi1> to vector<8x128xi32>
    %19 = arith.sitofp %18 : vector<8x128xi32> to vector<8x128xf32>
    %c64_i32 = arith.constant 64 : i32
    %20 = vector.broadcast %c64_i32 : i32 to vector<8x128xi32>
    %21 = arith.cmpi sge, %15, %20 : vector<8x128xi32>
    %c96_i32 = arith.constant 96 : i32
    %22 = vector.broadcast %c96_i32 : i32 to vector<8x128xi32>
    %23 = arith.cmpi slt, %15, %22 : vector<8x128xi32>
    %24 = arith.andi %21, %23 : vector<8x128xi1>
    %25 = arith.sitofp %15 : vector<8x128xi32> to vector<8x128xf32>
    %c32_i32_17 = arith.constant 32 : i32
    %26 = tpu.dynamic_rotate %25 by %c32_i32_17 dim 1 : vector<8x128xf32>, i32 -> vector<8x128xf32>
    %c32_i32_18 = arith.constant 32 : i32
    %27 = vector.broadcast %c32_i32_18 : i32 to vector<8x128xi32>
    %28 = arith.addi %15, %27 : vector<8x128xi32>
    %c128_i32 = arith.constant 128 : i32
    %c0_i32 = arith.constant 0 : i32
    %29 = arith.cmpi eq, %c128_i32, %c0_i32 : i32
    %c1_i32 = arith.constant 1 : i32
    %30 = arith.select %29, %c1_i32, %c128_i32 : i32
    %31 = vector.broadcast %30 : i32 to vector<8x128xi32>
    %32 = arith.remsi %28, %31 : vector<8x128xi32>
    %c0_i32_19 = arith.constant 0 : i32
    %33 = vector.broadcast %c0_i32_19 : i32 to vector<8x128xi32>
    %34 = arith.cmpi ne, %32, %33 : vector<8x128xi32>
    %c0_i32_20 = arith.constant 0 : i32
    %35 = vector.broadcast %c0_i32_20 : i32 to vector<8x128xi32>
    %36 = arith.cmpi slt, %32, %35 : vector<8x128xi32>
    %c0_i32_21 = arith.constant 0 : i32
    %37 = arith.cmpi slt, %30, %c0_i32_21 : i32
    %38 = vector.broadcast %37 : i1 to vector<8x128xi1>
    %39 = vector.broadcast %38 : vector<8x128xi1> to vector<8x128xi1>
    %40 = arith.xori %36, %39 : vector<8x128xi1>
    %41 = arith.andi %40, %34 : vector<8x128xi1>
    %42 = vector.broadcast %30 : i32 to vector<8x128xi32>
    %43 = arith.addi %32, %42 : vector<8x128xi32>
    %44 = arith.select %41, %43, %32 : vector<8x128xi1>, vector<8x128xi32>
    %45 = arith.sitofp %44 : vector<8x128xi32> to vector<8x128xf32>
    %46 = arith.cmpf oeq, %26, %45 : vector<8x128xf32>
    %cst_22 = arith.constant 0.000000e+00 : f32
    %47 = vector.broadcast %cst_22 : f32 to vector<8x128xf32>
    %c0_23 = arith.constant 0 : index
    %c0_24 = arith.constant 0 : index
    %c0_25 = arith.constant 0 : index
    %48 = vector.load %arg15[%c0_23, %c0_24, %c0_25] : memref<8x8x128xf32, #tpu.memory_space<vmem>>, vector<1x8x128xf32>
    %49 = vector.shape_cast %48 : vector<1x8x128xf32> to vector<8x128xf32>
    %c0_i32_26 = arith.constant 0 : i32
    %50 = math.tanh %49 : vector<8x128xf32>
    %51 = arith.negf %49 : vector<8x128xf32>
    %52 = math.exp %51 : vector<8x128xf32>
    %cst_27 = arith.constant 1.000000e+00 : f32
    %53 = vector.broadcast %cst_27 : f32 to vector<8x128xf32>
    %54 = arith.addf %53, %52 : vector<8x128xf32>
    %55 = arith.divf %53, %54 : vector<8x128xf32>
    %56 = arith.select %24, %50, %55 : vector<8x128xi1>, vector<8x128xf32>
    %c32_i32_28 = arith.constant 32 : i32
    %57 = tpu.dynamic_rotate %56 by %c32_i32_28 dim 1 : vector<8x128xf32>, i32 -> vector<8x128xf32>
    %c96_i32_29 = arith.constant 96 : i32
    %58 = tpu.dynamic_rotate %56 by %c96_i32_29 dim 1 : vector<8x128xf32>, i32 -> vector<8x128xf32>
    %59 = arith.select %46, %57, %58 : vector<8x128xi1>, vector<8x128xf32>
    %60 = arith.select %46, %58, %57 : vector<8x128xi1>, vector<8x128xf32>
    %c64_i32_30 = arith.constant 64 : i32
    %61 = tpu.dynamic_rotate %56 by %c64_i32_30 dim 1 : vector<8x128xf32>, i32 -> vector<8x128xf32>
    %62 = arith.mulf %59, %47 : vector<8x128xf32>
    %63 = arith.mulf %56, %61 : vector<8x128xf32>
    %64 = arith.addf %62, %63 : vector<8x128xf32>
    %65 = arith.mulf %64, %19 : vector<8x128xf32>
    %66 = math.tanh %65 : vector<8x128xf32>
    %67 = arith.mulf %60, %66 : vector<8x128xf32>
    %c1_i32_31 = arith.constant 1 : i32
    %68 = arith.addi %c0_i32_26, %c1_i32_31 : i32
    %c7_i32 = arith.constant 7 : i32
    %69 = arith.minsi %68, %c7_i32 : i32
    %70 = arith.index_cast %69 : i32 to index
    %c0_32 = arith.constant 0 : index
    %c0_33 = arith.constant 0 : index
    %71 = vector.load %arg15[%70, %c0_32, %c0_33] : memref<8x8x128xf32, #tpu.memory_space<vmem>>, vector<1x8x128xf32>
    %72 = vector.shape_cast %71 : vector<1x8x128xf32> to vector<8x128xf32>
    %cst_34 = arith.constant dense<0.000000e+00> : vector<8x128xf32>
    %73 = tpu.matmul %67, %9, %cst_34 {dimension_numbers = #tpu.dot_dimension_numbers<[1], [0], [0], [1], [0, 0, 1, 1], [], []>} : vector<8x128xf32>, vector<128x128xf32>, vector<8x128xf32> -> vector<8x128xf32>
    %74 = arith.addf %72, %73 : vector<8x128xf32>
    %cst_35 = arith.constant dense<0.000000e+00> : vector<8x128xf32>
    %75 = tpu.matmul %67, %10, %cst_35 {dimension_numbers = #tpu.dot_dimension_numbers<[1], [0], [0], [1], [0, 0, 1, 1], [], []>} : vector<8x128xf32>, vector<128x128xf32>, vector<8x128xf32> -> vector<8x128xf32>
    %cst_36 = arith.constant dense<0.000000e+00> : vector<8x128xf32>
    %76 = tpu.matmul %47, %11, %cst_36 {dimension_numbers = #tpu.dot_dimension_numbers<[1], [0], [0], [1], [0, 0, 1, 1], [], []>} : vector<8x128xf32>, vector<128x128xf32>, vector<8x128xf32> -> vector<8x128xf32>
    %77 = arith.addf %75, %76 : vector<8x128xf32>
    %78 = arith.addf %77, %14 : vector<8x128xf32>
    %79 = math.tanh %78 : vector<8x128xf32>
    %80 = arith.negf %78 : vector<8x128xf32>
    %81 = math.exp %80 : vector<8x128xf32>
    %cst_37 = arith.constant 1.000000e+00 : f32
    %82 = vector.broadcast %cst_37 : f32 to vector<8x128xf32>
    %83 = arith.addf %82, %81 : vector<8x128xf32>
    %84 = arith.divf %82, %83 : vector<8x128xf32>
    %85 = arith.select %24, %79, %84 : vector<8x128xi1>, vector<8x128xf32>
    %c32_i32_38 = arith.constant 32 : i32
    %86 = tpu.dynamic_rotate %85 by %c32_i32_38 dim 1 : vector<8x128xf32>, i32 -> vector<8x128xf32>
    %c96_i32_39 = arith.constant 96 : i32
    %87 = tpu.dynamic_rotate %85 by %c96_i32_39 dim 1 : vector<8x128xf32>, i32 -> vector<8x128xf32>
    %88 = arith.select %46, %86, %87 : vector<8x128xi1>, vector<8x128xf32>
    %89 = arith.select %46, %87, %86 : vector<8x128xi1>, vector<8x128xf32>
    %c64_i32_40 = arith.constant 64 : i32
    %90 = tpu.dynamic_rotate %85 by %c64_i32_40 dim 1 : vector<8x128xf32>, i32 -> vector<8x128xf32>
    %91 = arith.mulf %88, %47 : vector<8x128xf32>
    %92 = arith.mulf %85, %90 : vector<8x128xf32>
    %93 = arith.addf %91, %92 : vector<8x128xf32>
    %94 = arith.mulf %93, %19 : vector<8x128xf32>
    %95 = math.tanh %94 : vector<8x128xf32>
    %96 = arith.mulf %89, %95 : vector<8x128xf32>
    %c1_i32_41 = arith.constant 1 : i32
    %97 = math.tanh %74 : vector<8x128xf32>
    %98 = arith.negf %74 : vector<8x128xf32>
    %99 = math.exp %98 : vector<8x128xf32>
    %cst_42 = arith.constant 1.000000e+00 : f32
    %100 = vector.broadcast %cst_42 : f32 to vector<8x128xf32>
    %101 = arith.addf %100, %99 : vector<8x128xf32>
    %102 = arith.divf %100, %101 : vector<8x128xf32>
    %103 = arith.select %24, %97, %102 : vector<8x128xi1>, vector<8x128xf32>
    %c32_i32_43 = arith.constant 32 : i32
    %104 = tpu.dynamic_rotate %103 by %c32_i32_43 dim 1 : vector<8x128xf32>, i32 -> vector<8x128xf32>
    %c96_i32_44 = arith.constant 96 : i32
    %105 = tpu.dynamic_rotate %103 by %c96_i32_44 dim 1 : vector<8x128xf32>, i32 -> vector<8x128xf32>
    %106 = arith.select %46, %104, %105 : vector<8x128xi1>, vector<8x128xf32>
    %107 = arith.select %46, %105, %104 : vector<8x128xi1>, vector<8x128xf32>
    %c64_i32_45 = arith.constant 64 : i32
    %108 = tpu.dynamic_rotate %103 by %c64_i32_45 dim 1 : vector<8x128xf32>, i32 -> vector<8x128xf32>
    %109 = arith.mulf %106, %65 : vector<8x128xf32>
    %110 = arith.mulf %103, %108 : vector<8x128xf32>
    %111 = arith.addf %109, %110 : vector<8x128xf32>
    %112 = arith.mulf %111, %19 : vector<8x128xf32>
    %113 = math.tanh %112 : vector<8x128xf32>
    %114 = arith.mulf %107, %113 : vector<8x128xf32>
    %c1_i32_46 = arith.constant 1 : i32
    %115 = arith.addi %c1_i32_41, %c1_i32_46 : i32
    %c7_i32_47 = arith.constant 7 : i32
    %116 = arith.minsi %115, %c7_i32_47 : i32
    %117 = arith.index_cast %116 : i32 to index
    %c0_48 = arith.constant 0 : index
    %c0_49 = arith.constant 0 : index
    %118 = vector.load %arg15[%117, %c0_48, %c0_49] : memref<8x8x128xf32, #tpu.memory_space<vmem>>, vector<1x8x128xf32>
    %119 = vector.shape_cast %118 : vector<1x8x128xf32> to vector<8x128xf32>
    %cst_50 = arith.constant dense<0.000000e+00> : vector<8x128xf32>
    %120 = tpu.matmul %114, %9, %cst_50 {dimension_numbers = #tpu.dot_dimension_numbers<[1], [0], [0], [1], [0, 0, 1, 1], [], []>} : vector<8x128xf32>, vector<128x128xf32>, vector<8x128xf32> -> vector<8x128xf32>
    %121 = arith.addf %119, %120 : vector<8x128xf32>
    %cst_51 = arith.constant dense<0.000000e+00> : vector<8x128xf32>
    %122 = tpu.matmul %114, %10, %cst_51 {dimension_numbers = #tpu.dot_dimension_numbers<[1], [0], [0], [1], [0, 0, 1, 1], [], []>} : vector<8x128xf32>, vector<128x128xf32>, vector<8x128xf32> -> vector<8x128xf32>
    %cst_52 = arith.constant dense<0.000000e+00> : vector<8x128xf32>
    %123 = tpu.matmul %96, %11, %cst_52 {dimension_numbers = #tpu.dot_dimension_numbers<[1], [0], [0], [1], [0, 0, 1, 1], [], []>} : vector<8x128xf32>, vector<128x128xf32>, vector<8x128xf32> -> vector<8x128xf32>
    %124 = arith.addf %122, %123 : vector<8x128xf32>
    %125 = arith.addf %124, %14 : vector<8x128xf32>
    %126 = math.tanh %125 : vector<8x128xf32>
    %127 = arith.negf %125 : vector<8x128xf32>
    %128 = math.exp %127 : vector<8x128xf32>
    %cst_53 = arith.constant 1.000000e+00 : f32
    %129 = vector.broadcast %cst_53 : f32 to vector<8x128xf32>
    %130 = arith.addf %129, %128 : vector<8x128xf32>
    %131 = arith.divf %129, %130 : vector<8x128xf32>
    %132 = arith.select %24, %126, %131 : vector<8x128xi1>, vector<8x128xf32>
    %c32_i32_54 = arith.constant 32 : i32
    %133 = tpu.dynamic_rotate %132 by %c32_i32_54 dim 1 : vector<8x128xf32>, i32 -> vector<8x128xf32>
    %c96_i32_55 = arith.constant 96 : i32
    %134 = tpu.dynamic_rotate %132 by %c96_i32_55 dim 1 : vector<8x128xf32>, i32 -> vector<8x128xf32>
    %135 = arith.select %46, %133, %134 : vector<8x128xi1>, vector<8x128xf32>
    %136 = arith.select %46, %134, %133 : vector<8x128xi1>, vector<8x128xf32>
    %c64_i32_56 = arith.constant 64 : i32
    %137 = tpu.dynamic_rotate %132 by %c64_i32_56 dim 1 : vector<8x128xf32>, i32 -> vector<8x128xf32>
    %138 = arith.mulf %135, %94 : vector<8x128xf32>
    %139 = arith.mulf %132, %137 : vector<8x128xf32>
    %140 = arith.addf %138, %139 : vector<8x128xf32>
    %141 = arith.mulf %140, %19 : vector<8x128xf32>
    %142 = math.tanh %141 : vector<8x128xf32>
    %143 = arith.mulf %136, %142 : vector<8x128xf32>
    %c2_i32 = arith.constant 2 : i32
    %144 = math.tanh %121 : vector<8x128xf32>
    %145 = arith.negf %121 : vector<8x128xf32>
    %146 = math.exp %145 : vector<8x128xf32>
    %cst_57 = arith.constant 1.000000e+00 : f32
    %147 = vector.broadcast %cst_57 : f32 to vector<8x128xf32>
    %148 = arith.addf %147, %146 : vector<8x128xf32>
    %149 = arith.divf %147, %148 : vector<8x128xf32>
    %150 = arith.select %24, %144, %149 : vector<8x128xi1>, vector<8x128xf32>
    %c32_i32_58 = arith.constant 32 : i32
    %151 = tpu.dynamic_rotate %150 by %c32_i32_58 dim 1 : vector<8x128xf32>, i32 -> vector<8x128xf32>
    %c96_i32_59 = arith.constant 96 : i32
    %152 = tpu.dynamic_rotate %150 by %c96_i32_59 dim 1 : vector<8x128xf32>, i32 -> vector<8x128xf32>
    %153 = arith.select %46, %151, %152 : vector<8x128xi1>, vector<8x128xf32>
    %154 = arith.select %46, %152, %151 : vector<8x128xi1>, vector<8x128xf32>
    %c64_i32_60 = arith.constant 64 : i32
    %155 = tpu.dynamic_rotate %150 by %c64_i32_60 dim 1 : vector<8x128xf32>, i32 -> vector<8x128xf32>
    %156 = arith.mulf %153, %112 : vector<8x128xf32>
    %157 = arith.mulf %150, %155 : vector<8x128xf32>
    %158 = arith.addf %156, %157 : vector<8x128xf32>
    %159 = arith.mulf %158, %19 : vector<8x128xf32>
    %160 = math.tanh %159 : vector<8x128xf32>
    %161 = arith.mulf %154, %160 : vector<8x128xf32>
    %c1_i32_61 = arith.constant 1 : i32
    %162 = arith.addi %c2_i32, %c1_i32_61 : i32
    %c7_i32_62 = arith.constant 7 : i32
    %163 = arith.minsi %162, %c7_i32_62 : i32
    %164 = arith.index_cast %163 : i32 to index
    %c0_63 = arith.constant 0 : index
    %c0_64 = arith.constant 0 : index
    %165 = vector.load %arg15[%164, %c0_63, %c0_64] : memref<8x8x128xf32, #tpu.memory_space<vmem>>, vector<1x8x128xf32>
    %166 = vector.shape_cast %165 : vector<1x8x128xf32> to vector<8x128xf32>
    %cst_65 = arith.constant dense<0.000000e+00> : vector<8x128xf32>
    %167 = tpu.matmul %161, %9, %cst_65 {dimension_numbers = #tpu.dot_dimension_numbers<[1], [0], [0], [1], [0, 0, 1, 1], [], []>} : vector<8x128xf32>, vector<128x128xf32>, vector<8x128xf32> -> vector<8x128xf32>
    %168 = arith.addf %166, %167 : vector<8x128xf32>
    %cst_66 = arith.constant dense<0.000000e+00> : vector<8x128xf32>
    %169 = tpu.matmul %161, %10, %cst_66 {dimension_numbers = #tpu.dot_dimension_numbers<[1], [0], [0], [1], [0, 0, 1, 1], [], []>} : vector<8x128xf32>, vector<128x128xf32>, vector<8x128xf32> -> vector<8x128xf32>
    %cst_67 = arith.constant dense<0.000000e+00> : vector<8x128xf32>
    %170 = tpu.matmul %143, %11, %cst_67 {dimension_numbers = #tpu.dot_dimension_numbers<[1], [0], [0], [1], [0, 0, 1, 1], [], []>} : vector<8x128xf32>, vector<128x128xf32>, vector<8x128xf32> -> vector<8x128xf32>
    %171 = arith.addf %169, %170 : vector<8x128xf32>
    %172 = arith.addf %171, %14 : vector<8x128xf32>
    %173 = math.tanh %172 : vector<8x128xf32>
    %174 = arith.negf %172 : vector<8x128xf32>
    %175 = math.exp %174 : vector<8x128xf32>
    %cst_68 = arith.constant 1.000000e+00 : f32
    %176 = vector.broadcast %cst_68 : f32 to vector<8x128xf32>
    %177 = arith.addf %176, %175 : vector<8x128xf32>
    %178 = arith.divf %176, %177 : vector<8x128xf32>
    %179 = arith.select %24, %173, %178 : vector<8x128xi1>, vector<8x128xf32>
    %c32_i32_69 = arith.constant 32 : i32
    %180 = tpu.dynamic_rotate %179 by %c32_i32_69 dim 1 : vector<8x128xf32>, i32 -> vector<8x128xf32>
    %c96_i32_70 = arith.constant 96 : i32
    %181 = tpu.dynamic_rotate %179 by %c96_i32_70 dim 1 : vector<8x128xf32>, i32 -> vector<8x128xf32>
    %182 = arith.select %46, %180, %181 : vector<8x128xi1>, vector<8x128xf32>
    %183 = arith.select %46, %181, %180 : vector<8x128xi1>, vector<8x128xf32>
    %c64_i32_71 = arith.constant 64 : i32
    %184 = tpu.dynamic_rotate %179 by %c64_i32_71 dim 1 : vector<8x128xf32>, i32 -> vector<8x128xf32>
    %185 = arith.mulf %182, %141 : vector<8x128xf32>
    %186 = arith.mulf %179, %184 : vector<8x128xf32>
    %187 = arith.addf %185, %186 : vector<8x128xf32>
    %188 = arith.mulf %187, %19 : vector<8x128xf32>
    %189 = math.tanh %188 : vector<8x128xf32>
    %190 = arith.mulf %183, %189 : vector<8x128xf32>
    %c3_i32 = arith.constant 3 : i32
    %191 = math.tanh %168 : vector<8x128xf32>
    %192 = arith.negf %168 : vector<8x128xf32>
    %193 = math.exp %192 : vector<8x128xf32>
    %cst_72 = arith.constant 1.000000e+00 : f32
    %194 = vector.broadcast %cst_72 : f32 to vector<8x128xf32>
    %195 = arith.addf %194, %193 : vector<8x128xf32>
    %196 = arith.divf %194, %195 : vector<8x128xf32>
    %197 = arith.select %24, %191, %196 : vector<8x128xi1>, vector<8x128xf32>
    %c32_i32_73 = arith.constant 32 : i32
    %198 = tpu.dynamic_rotate %197 by %c32_i32_73 dim 1 : vector<8x128xf32>, i32 -> vector<8x128xf32>
    %c96_i32_74 = arith.constant 96 : i32
    %199 = tpu.dynamic_rotate %197 by %c96_i32_74 dim 1 : vector<8x128xf32>, i32 -> vector<8x128xf32>
    %200 = arith.select %46, %198, %199 : vector<8x128xi1>, vector<8x128xf32>
    %201 = arith.select %46, %199, %198 : vector<8x128xi1>, vector<8x128xf32>
    %c64_i32_75 = arith.constant 64 : i32
    %202 = tpu.dynamic_rotate %197 by %c64_i32_75 dim 1 : vector<8x128xf32>, i32 -> vector<8x128xf32>
    %203 = arith.mulf %200, %159 : vector<8x128xf32>
    %204 = arith.mulf %197, %202 : vector<8x128xf32>
    %205 = arith.addf %203, %204 : vector<8x128xf32>
    %206 = arith.mulf %205, %19 : vector<8x128xf32>
    %207 = math.tanh %206 : vector<8x128xf32>
    %208 = arith.mulf %201, %207 : vector<8x128xf32>
    %c1_i32_76 = arith.constant 1 : i32
    %209 = arith.addi %c3_i32, %c1_i32_76 : i32
    %c7_i32_77 = arith.constant 7 : i32
    %210 = arith.minsi %209, %c7_i32_77 : i32
    %211 = arith.index_cast %210 : i32 to index
    %c0_78 = arith.constant 0 : index
    %c0_79 = arith.constant 0 : index
    %212 = vector.load %arg15[%211, %c0_78, %c0_79] : memref<8x8x128xf32, #tpu.memory_space<vmem>>, vector<1x8x128xf32>
    %213 = vector.shape_cast %212 : vector<1x8x128xf32> to vector<8x128xf32>
    %cst_80 = arith.constant dense<0.000000e+00> : vector<8x128xf32>
    %214 = tpu.matmul %208, %9, %cst_80 {dimension_numbers = #tpu.dot_dimension_numbers<[1], [0], [0], [1], [0, 0, 1, 1], [], []>} : vector<8x128xf32>, vector<128x128xf32>, vector<8x128xf32> -> vector<8x128xf32>
    %215 = arith.addf %213, %214 : vector<8x128xf32>
    %cst_81 = arith.constant dense<0.000000e+00> : vector<8x128xf32>
    %216 = tpu.matmul %208, %10, %cst_81 {dimension_numbers = #tpu.dot_dimension_numbers<[1], [0], [0], [1], [0, 0, 1, 1], [], []>} : vector<8x128xf32>, vector<128x128xf32>, vector<8x128xf32> -> vector<8x128xf32>
    %cst_82 = arith.constant dense<0.000000e+00> : vector<8x128xf32>
    %217 = tpu.matmul %190, %11, %cst_82 {dimension_numbers = #tpu.dot_dimension_numbers<[1], [0], [0], [1], [0, 0, 1, 1], [], []>} : vector<8x128xf32>, vector<128x128xf32>, vector<8x128xf32> -> vector<8x128xf32>
    %218 = arith.addf %216, %217 : vector<8x128xf32>
    %219 = arith.addf %218, %14 : vector<8x128xf32>
    %220 = math.tanh %219 : vector<8x128xf32>
    %221 = arith.negf %219 : vector<8x128xf32>
    %222 = math.exp %221 : vector<8x128xf32>
    %cst_83 = arith.constant 1.000000e+00 : f32
    %223 = vector.broadcast %cst_83 : f32 to vector<8x128xf32>
    %224 = arith.addf %223, %222 : vector<8x128xf32>
    %225 = arith.divf %223, %224 : vector<8x128xf32>
    %226 = arith.select %24, %220, %225 : vector<8x128xi1>, vector<8x128xf32>
    %c32_i32_84 = arith.constant 32 : i32
    %227 = tpu.dynamic_rotate %226 by %c32_i32_84 dim 1 : vector<8x128xf32>, i32 -> vector<8x128xf32>
    %c96_i32_85 = arith.constant 96 : i32
    %228 = tpu.dynamic_rotate %226 by %c96_i32_85 dim 1 : vector<8x128xf32>, i32 -> vector<8x128xf32>
    %229 = arith.select %46, %227, %228 : vector<8x128xi1>, vector<8x128xf32>
    %230 = arith.select %46, %228, %227 : vector<8x128xi1>, vector<8x128xf32>
    %c64_i32_86 = arith.constant 64 : i32
    %231 = tpu.dynamic_rotate %226 by %c64_i32_86 dim 1 : vector<8x128xf32>, i32 -> vector<8x128xf32>
    %232 = arith.mulf %229, %188 : vector<8x128xf32>
    %233 = arith.mulf %226, %231 : vector<8x128xf32>
    %234 = arith.addf %232, %233 : vector<8x128xf32>
    %235 = arith.mulf %234, %19 : vector<8x128xf32>
    %236 = math.tanh %235 : vector<8x128xf32>
    %237 = arith.mulf %230, %236 : vector<8x128xf32>
    %c4_i32 = arith.constant 4 : i32
    %238 = math.tanh %215 : vector<8x128xf32>
    %239 = arith.negf %215 : vector<8x128xf32>
    %240 = math.exp %239 : vector<8x128xf32>
    %cst_87 = arith.constant 1.000000e+00 : f32
    %241 = vector.broadcast %cst_87 : f32 to vector<8x128xf32>
    %242 = arith.addf %241, %240 : vector<8x128xf32>
    %243 = arith.divf %241, %242 : vector<8x128xf32>
    %244 = arith.select %24, %238, %243 : vector<8x128xi1>, vector<8x128xf32>
    %c32_i32_88 = arith.constant 32 : i32
    %245 = tpu.dynamic_rotate %244 by %c32_i32_88 dim 1 : vector<8x128xf32>, i32 -> vector<8x128xf32>
    %c96_i32_89 = arith.constant 96 : i32
    %246 = tpu.dynamic_rotate %244 by %c96_i32_89 dim 1 : vector<8x128xf32>, i32 -> vector<8x128xf32>
    %247 = arith.select %46, %245, %246 : vector<8x128xi1>, vector<8x128xf32>
    %248 = arith.select %46, %246, %245 : vector<8x128xi1>, vector<8x128xf32>
    %c64_i32_90 = arith.constant 64 : i32
    %249 = tpu.dynamic_rotate %244 by %c64_i32_90 dim 1 : vector<8x128xf32>, i32 -> vector<8x128xf32>
    %250 = arith.mulf %247, %206 : vector<8x128xf32>
    %251 = arith.mulf %244, %249 : vector<8x128xf32>
    %252 = arith.addf %250, %251 : vector<8x128xf32>
    %253 = arith.mulf %252, %19 : vector<8x128xf32>
    %254 = math.tanh %253 : vector<8x128xf32>
    %255 = arith.mulf %248, %254 : vector<8x128xf32>
    %c1_i32_91 = arith.constant 1 : i32
    %256 = arith.addi %c4_i32, %c1_i32_91 : i32
    %c7_i32_92 = arith.constant 7 : i32
    %257 = arith.minsi %256, %c7_i32_92 : i32
    %258 = arith.index_cast %257 : i32 to index
    %c0_93 = arith.constant 0 : index
    %c0_94 = arith.constant 0 : index
    %259 = vector.load %arg15[%258, %c0_93, %c0_94] : memref<8x8x128xf32, #tpu.memory_space<vmem>>, vector<1x8x128xf32>
    %260 = vector.shape_cast %259 : vector<1x8x128xf32> to vector<8x128xf32>
    %cst_95 = arith.constant dense<0.000000e+00> : vector<8x128xf32>
    %261 = tpu.matmul %255, %9, %cst_95 {dimension_numbers = #tpu.dot_dimension_numbers<[1], [0], [0], [1], [0, 0, 1, 1], [], []>} : vector<8x128xf32>, vector<128x128xf32>, vector<8x128xf32> -> vector<8x128xf32>
    %262 = arith.addf %260, %261 : vector<8x128xf32>
    %cst_96 = arith.constant dense<0.000000e+00> : vector<8x128xf32>
    %263 = tpu.matmul %255, %10, %cst_96 {dimension_numbers = #tpu.dot_dimension_numbers<[1], [0], [0], [1], [0, 0, 1, 1], [], []>} : vector<8x128xf32>, vector<128x128xf32>, vector<8x128xf32> -> vector<8x128xf32>
    %cst_97 = arith.constant dense<0.000000e+00> : vector<8x128xf32>
    %264 = tpu.matmul %237, %11, %cst_97 {dimension_numbers = #tpu.dot_dimension_numbers<[1], [0], [0], [1], [0, 0, 1, 1], [], []>} : vector<8x128xf32>, vector<128x128xf32>, vector<8x128xf32> -> vector<8x128xf32>
    %265 = arith.addf %263, %264 : vector<8x128xf32>
    %266 = arith.addf %265, %14 : vector<8x128xf32>
    %267 = math.tanh %266 : vector<8x128xf32>
    %268 = arith.negf %266 : vector<8x128xf32>
    %269 = math.exp %268 : vector<8x128xf32>
    %cst_98 = arith.constant 1.000000e+00 : f32
    %270 = vector.broadcast %cst_98 : f32 to vector<8x128xf32>
    %271 = arith.addf %270, %269 : vector<8x128xf32>
    %272 = arith.divf %270, %271 : vector<8x128xf32>
    %273 = arith.select %24, %267, %272 : vector<8x128xi1>, vector<8x128xf32>
    %c32_i32_99 = arith.constant 32 : i32
    %274 = tpu.dynamic_rotate %273 by %c32_i32_99 dim 1 : vector<8x128xf32>, i32 -> vector<8x128xf32>
    %c96_i32_100 = arith.constant 96 : i32
    %275 = tpu.dynamic_rotate %273 by %c96_i32_100 dim 1 : vector<8x128xf32>, i32 -> vector<8x128xf32>
    %276 = arith.select %46, %274, %275 : vector<8x128xi1>, vector<8x128xf32>
    %277 = arith.select %46, %275, %274 : vector<8x128xi1>, vector<8x128xf32>
    %c64_i32_101 = arith.constant 64 : i32
    %278 = tpu.dynamic_rotate %273 by %c64_i32_101 dim 1 : vector<8x128xf32>, i32 -> vector<8x128xf32>
    %279 = arith.mulf %276, %235 : vector<8x128xf32>
    %280 = arith.mulf %273, %278 : vector<8x128xf32>
    %281 = arith.addf %279, %280 : vector<8x128xf32>
    %282 = arith.mulf %281, %19 : vector<8x128xf32>
    %283 = math.tanh %282 : vector<8x128xf32>
    %284 = arith.mulf %277, %283 : vector<8x128xf32>
    %c5_i32 = arith.constant 5 : i32
    %285 = math.tanh %262 : vector<8x128xf32>
    %286 = arith.negf %262 : vector<8x128xf32>
    %287 = math.exp %286 : vector<8x128xf32>
    %cst_102 = arith.constant 1.000000e+00 : f32
    %288 = vector.broadcast %cst_102 : f32 to vector<8x128xf32>
    %289 = arith.addf %288, %287 : vector<8x128xf32>
    %290 = arith.divf %288, %289 : vector<8x128xf32>
    %291 = arith.select %24, %285, %290 : vector<8x128xi1>, vector<8x128xf32>
    %c32_i32_103 = arith.constant 32 : i32
    %292 = tpu.dynamic_rotate %291 by %c32_i32_103 dim 1 : vector<8x128xf32>, i32 -> vector<8x128xf32>
    %c96_i32_104 = arith.constant 96 : i32
    %293 = tpu.dynamic_rotate %291 by %c96_i32_104 dim 1 : vector<8x128xf32>, i32 -> vector<8x128xf32>
    %294 = arith.select %46, %292, %293 : vector<8x128xi1>, vector<8x128xf32>
    %295 = arith.select %46, %293, %292 : vector<8x128xi1>, vector<8x128xf32>
    %c64_i32_105 = arith.constant 64 : i32
    %296 = tpu.dynamic_rotate %291 by %c64_i32_105 dim 1 : vector<8x128xf32>, i32 -> vector<8x128xf32>
    %297 = arith.mulf %294, %253 : vector<8x128xf32>
    %298 = arith.mulf %291, %296 : vector<8x128xf32>
    %299 = arith.addf %297, %298 : vector<8x128xf32>
    %300 = arith.mulf %299, %19 : vector<8x128xf32>
    %301 = math.tanh %300 : vector<8x128xf32>
    %302 = arith.mulf %295, %301 : vector<8x128xf32>
    %c1_i32_106 = arith.constant 1 : i32
    %303 = arith.addi %c5_i32, %c1_i32_106 : i32
    %c7_i32_107 = arith.constant 7 : i32
    %304 = arith.minsi %303, %c7_i32_107 : i32
    %305 = arith.index_cast %304 : i32 to index
    %c0_108 = arith.constant 0 : index
    %c0_109 = arith.constant 0 : index
    %306 = vector.load %arg15[%305, %c0_108, %c0_109] : memref<8x8x128xf32, #tpu.memory_space<vmem>>, vector<1x8x128xf32>
    %307 = vector.shape_cast %306 : vector<1x8x128xf32> to vector<8x128xf32>
    %cst_110 = arith.constant dense<0.000000e+00> : vector<8x128xf32>
    %308 = tpu.matmul %302, %9, %cst_110 {dimension_numbers = #tpu.dot_dimension_numbers<[1], [0], [0], [1], [0, 0, 1, 1], [], []>} : vector<8x128xf32>, vector<128x128xf32>, vector<8x128xf32> -> vector<8x128xf32>
    %309 = arith.addf %307, %308 : vector<8x128xf32>
    %cst_111 = arith.constant dense<0.000000e+00> : vector<8x128xf32>
    %310 = tpu.matmul %302, %10, %cst_111 {dimension_numbers = #tpu.dot_dimension_numbers<[1], [0], [0], [1], [0, 0, 1, 1], [], []>} : vector<8x128xf32>, vector<128x128xf32>, vector<8x128xf32> -> vector<8x128xf32>
    %cst_112 = arith.constant dense<0.000000e+00> : vector<8x128xf32>
    %311 = tpu.matmul %284, %11, %cst_112 {dimension_numbers = #tpu.dot_dimension_numbers<[1], [0], [0], [1], [0, 0, 1, 1], [], []>} : vector<8x128xf32>, vector<128x128xf32>, vector<8x128xf32> -> vector<8x128xf32>
    %312 = arith.addf %310, %311 : vector<8x128xf32>
    %313 = arith.addf %312, %14 : vector<8x128xf32>
    %314 = math.tanh %313 : vector<8x128xf32>
    %315 = arith.negf %313 : vector<8x128xf32>
    %316 = math.exp %315 : vector<8x128xf32>
    %cst_113 = arith.constant 1.000000e+00 : f32
    %317 = vector.broadcast %cst_113 : f32 to vector<8x128xf32>
    %318 = arith.addf %317, %316 : vector<8x128xf32>
    %319 = arith.divf %317, %318 : vector<8x128xf32>
    %320 = arith.select %24, %314, %319 : vector<8x128xi1>, vector<8x128xf32>
    %c32_i32_114 = arith.constant 32 : i32
    %321 = tpu.dynamic_rotate %320 by %c32_i32_114 dim 1 : vector<8x128xf32>, i32 -> vector<8x128xf32>
    %c96_i32_115 = arith.constant 96 : i32
    %322 = tpu.dynamic_rotate %320 by %c96_i32_115 dim 1 : vector<8x128xf32>, i32 -> vector<8x128xf32>
    %323 = arith.select %46, %321, %322 : vector<8x128xi1>, vector<8x128xf32>
    %324 = arith.select %46, %322, %321 : vector<8x128xi1>, vector<8x128xf32>
    %c64_i32_116 = arith.constant 64 : i32
    %325 = tpu.dynamic_rotate %320 by %c64_i32_116 dim 1 : vector<8x128xf32>, i32 -> vector<8x128xf32>
    %326 = arith.mulf %323, %282 : vector<8x128xf32>
    %327 = arith.mulf %320, %325 : vector<8x128xf32>
    %328 = arith.addf %326, %327 : vector<8x128xf32>
    %329 = arith.mulf %328, %19 : vector<8x128xf32>
    %330 = math.tanh %329 : vector<8x128xf32>
    %331 = arith.mulf %324, %330 : vector<8x128xf32>
    %c6_i32 = arith.constant 6 : i32
    %332 = math.tanh %309 : vector<8x128xf32>
    %333 = arith.negf %309 : vector<8x128xf32>
    %334 = math.exp %333 : vector<8x128xf32>
    %cst_117 = arith.constant 1.000000e+00 : f32
    %335 = vector.broadcast %cst_117 : f32 to vector<8x128xf32>
    %336 = arith.addf %335, %334 : vector<8x128xf32>
    %337 = arith.divf %335, %336 : vector<8x128xf32>
    %338 = arith.select %24, %332, %337 : vector<8x128xi1>, vector<8x128xf32>
    %c32_i32_118 = arith.constant 32 : i32
    %339 = tpu.dynamic_rotate %338 by %c32_i32_118 dim 1 : vector<8x128xf32>, i32 -> vector<8x128xf32>
    %c96_i32_119 = arith.constant 96 : i32
    %340 = tpu.dynamic_rotate %338 by %c96_i32_119 dim 1 : vector<8x128xf32>, i32 -> vector<8x128xf32>
    %341 = arith.select %46, %339, %340 : vector<8x128xi1>, vector<8x128xf32>
    %342 = arith.select %46, %340, %339 : vector<8x128xi1>, vector<8x128xf32>
    %c64_i32_120 = arith.constant 64 : i32
    %343 = tpu.dynamic_rotate %338 by %c64_i32_120 dim 1 : vector<8x128xf32>, i32 -> vector<8x128xf32>
    %344 = arith.mulf %341, %300 : vector<8x128xf32>
    %345 = arith.mulf %338, %343 : vector<8x128xf32>
    %346 = arith.addf %344, %345 : vector<8x128xf32>
    %347 = arith.mulf %346, %19 : vector<8x128xf32>
    %348 = math.tanh %347 : vector<8x128xf32>
    %349 = arith.mulf %342, %348 : vector<8x128xf32>
    %c1_i32_121 = arith.constant 1 : i32
    %350 = arith.addi %c6_i32, %c1_i32_121 : i32
    %c7_i32_122 = arith.constant 7 : i32
    %351 = arith.minsi %350, %c7_i32_122 : i32
    %352 = arith.index_cast %351 : i32 to index
    %c0_123 = arith.constant 0 : index
    %c0_124 = arith.constant 0 : index
    %353 = vector.load %arg15[%352, %c0_123, %c0_124] : memref<8x8x128xf32, #tpu.memory_space<vmem>>, vector<1x8x128xf32>
    %354 = vector.shape_cast %353 : vector<1x8x128xf32> to vector<8x128xf32>
    %cst_125 = arith.constant dense<0.000000e+00> : vector<8x128xf32>
    %355 = tpu.matmul %349, %9, %cst_125 {dimension_numbers = #tpu.dot_dimension_numbers<[1], [0], [0], [1], [0, 0, 1, 1], [], []>} : vector<8x128xf32>, vector<128x128xf32>, vector<8x128xf32> -> vector<8x128xf32>
    %356 = arith.addf %354, %355 : vector<8x128xf32>
    %cst_126 = arith.constant dense<0.000000e+00> : vector<8x128xf32>
    %357 = tpu.matmul %349, %10, %cst_126 {dimension_numbers = #tpu.dot_dimension_numbers<[1], [0], [0], [1], [0, 0, 1, 1], [], []>} : vector<8x128xf32>, vector<128x128xf32>, vector<8x128xf32> -> vector<8x128xf32>
    %cst_127 = arith.constant dense<0.000000e+00> : vector<8x128xf32>
    %358 = tpu.matmul %331, %11, %cst_127 {dimension_numbers = #tpu.dot_dimension_numbers<[1], [0], [0], [1], [0, 0, 1, 1], [], []>} : vector<8x128xf32>, vector<128x128xf32>, vector<8x128xf32> -> vector<8x128xf32>
    %359 = arith.addf %357, %358 : vector<8x128xf32>
    %360 = arith.addf %359, %14 : vector<8x128xf32>
    %361 = math.tanh %360 : vector<8x128xf32>
    %362 = arith.negf %360 : vector<8x128xf32>
    %363 = math.exp %362 : vector<8x128xf32>
    %cst_128 = arith.constant 1.000000e+00 : f32
    %364 = vector.broadcast %cst_128 : f32 to vector<8x128xf32>
    %365 = arith.addf %364, %363 : vector<8x128xf32>
    %366 = arith.divf %364, %365 : vector<8x128xf32>
    %367 = arith.select %24, %361, %366 : vector<8x128xi1>, vector<8x128xf32>
    %c32_i32_129 = arith.constant 32 : i32
    %368 = tpu.dynamic_rotate %367 by %c32_i32_129 dim 1 : vector<8x128xf32>, i32 -> vector<8x128xf32>
    %c96_i32_130 = arith.constant 96 : i32
    %369 = tpu.dynamic_rotate %367 by %c96_i32_130 dim 1 : vector<8x128xf32>, i32 -> vector<8x128xf32>
    %370 = arith.select %46, %368, %369 : vector<8x128xi1>, vector<8x128xf32>
    %371 = arith.select %46, %369, %368 : vector<8x128xi1>, vector<8x128xf32>
    %c64_i32_131 = arith.constant 64 : i32
    %372 = tpu.dynamic_rotate %367 by %c64_i32_131 dim 1 : vector<8x128xf32>, i32 -> vector<8x128xf32>
    %373 = arith.mulf %370, %329 : vector<8x128xf32>
    %374 = arith.mulf %367, %372 : vector<8x128xf32>
    %375 = arith.addf %373, %374 : vector<8x128xf32>
    %376 = arith.mulf %375, %19 : vector<8x128xf32>
    %377 = math.tanh %376 : vector<8x128xf32>
    %378 = arith.mulf %371, %377 : vector<8x128xf32>
    %c7_i32_132 = arith.constant 7 : i32
    %379 = math.tanh %356 : vector<8x128xf32>
    %380 = arith.negf %356 : vector<8x128xf32>
    %381 = math.exp %380 : vector<8x128xf32>
    %cst_133 = arith.constant 1.000000e+00 : f32
    %382 = vector.broadcast %cst_133 : f32 to vector<8x128xf32>
    %383 = arith.addf %382, %381 : vector<8x128xf32>
    %384 = arith.divf %382, %383 : vector<8x128xf32>
    %385 = arith.select %24, %379, %384 : vector<8x128xi1>, vector<8x128xf32>
    %c32_i32_134 = arith.constant 32 : i32
    %386 = tpu.dynamic_rotate %385 by %c32_i32_134 dim 1 : vector<8x128xf32>, i32 -> vector<8x128xf32>
    %c96_i32_135 = arith.constant 96 : i32
    %387 = tpu.dynamic_rotate %385 by %c96_i32_135 dim 1 : vector<8x128xf32>, i32 -> vector<8x128xf32>
    %388 = arith.select %46, %386, %387 : vector<8x128xi1>, vector<8x128xf32>
    %389 = arith.select %46, %387, %386 : vector<8x128xi1>, vector<8x128xf32>
    %c64_i32_136 = arith.constant 64 : i32
    %390 = tpu.dynamic_rotate %385 by %c64_i32_136 dim 1 : vector<8x128xf32>, i32 -> vector<8x128xf32>
    %391 = arith.mulf %388, %347 : vector<8x128xf32>
    %392 = arith.mulf %385, %390 : vector<8x128xf32>
    %393 = arith.addf %391, %392 : vector<8x128xf32>
    %394 = arith.mulf %393, %19 : vector<8x128xf32>
    %395 = math.tanh %394 : vector<8x128xf32>
    %396 = arith.mulf %389, %395 : vector<8x128xf32>
    %c1_i32_137 = arith.constant 1 : i32
    %397 = arith.addi %c7_i32_132, %c1_i32_137 : i32
    %c7_i32_138 = arith.constant 7 : i32
    %398 = arith.minsi %397, %c7_i32_138 : i32
    %399 = arith.index_cast %398 : i32 to index
    %c0_139 = arith.constant 0 : index
    %c0_140 = arith.constant 0 : index
    %400 = vector.load %arg15[%399, %c0_139, %c0_140] : memref<8x8x128xf32, #tpu.memory_space<vmem>>, vector<1x8x128xf32>
    %401 = vector.shape_cast %400 : vector<1x8x128xf32> to vector<8x128xf32>
    %cst_141 = arith.constant dense<0.000000e+00> : vector<8x128xf32>
    %402 = tpu.matmul %396, %9, %cst_141 {dimension_numbers = #tpu.dot_dimension_numbers<[1], [0], [0], [1], [0, 0, 1, 1], [], []>} : vector<8x128xf32>, vector<128x128xf32>, vector<8x128xf32> -> vector<8x128xf32>
    %403 = arith.addf %401, %402 : vector<8x128xf32>
    %cst_142 = arith.constant dense<0.000000e+00> : vector<8x128xf32>
    %404 = tpu.matmul %396, %10, %cst_142 {dimension_numbers = #tpu.dot_dimension_numbers<[1], [0], [0], [1], [0, 0, 1, 1], [], []>} : vector<8x128xf32>, vector<128x128xf32>, vector<8x128xf32> -> vector<8x128xf32>
    %cst_143 = arith.constant dense<0.000000e+00> : vector<8x128xf32>
    %405 = tpu.matmul %378, %11, %cst_143 {dimension_numbers = #tpu.dot_dimension_numbers<[1], [0], [0], [1], [0, 0, 1, 1], [], []>} : vector<8x128xf32>, vector<128x128xf32>, vector<8x128xf32> -> vector<8x128xf32>
    %406 = arith.addf %404, %405 : vector<8x128xf32>
    %407 = arith.addf %406, %14 : vector<8x128xf32>
    %408 = math.tanh %407 : vector<8x128xf32>
    %409 = arith.negf %407 : vector<8x128xf32>
    %410 = math.exp %409 : vector<8x128xf32>
    %cst_144 = arith.constant 1.000000e+00 : f32
    %411 = vector.broadcast %cst_144 : f32 to vector<8x128xf32>
    %412 = arith.addf %411, %410 : vector<8x128xf32>
    %413 = arith.divf %411, %412 : vector<8x128xf32>
    %414 = arith.select %24, %408, %413 : vector<8x128xi1>, vector<8x128xf32>
    %c32_i32_145 = arith.constant 32 : i32
    %415 = tpu.dynamic_rotate %414 by %c32_i32_145 dim 1 : vector<8x128xf32>, i32 -> vector<8x128xf32>
    %c96_i32_146 = arith.constant 96 : i32
    %416 = tpu.dynamic_rotate %414 by %c96_i32_146 dim 1 : vector<8x128xf32>, i32 -> vector<8x128xf32>
    %417 = arith.select %46, %415, %416 : vector<8x128xi1>, vector<8x128xf32>
    %418 = arith.select %46, %416, %415 : vector<8x128xi1>, vector<8x128xf32>
    %c64_i32_147 = arith.constant 64 : i32
    %419 = tpu.dynamic_rotate %414 by %c64_i32_147 dim 1 : vector<8x128xf32>, i32 -> vector<8x128xf32>
    %420 = arith.mulf %417, %376 : vector<8x128xf32>
    %421 = arith.mulf %414, %419 : vector<8x128xf32>
    %422 = arith.addf %420, %421 : vector<8x128xf32>
    %423 = arith.mulf %422, %19 : vector<8x128xf32>
    %424 = math.tanh %423 : vector<8x128xf32>
    %425 = arith.mulf %418, %424 : vector<8x128xf32>
    %c8_i32 = arith.constant 8 : i32
    %cst_148 = arith.constant dense<0.000000e+00> : vector<8xf32>
    %426 = vector.multi_reduction <add>, %425, %cst_148 [1] : vector<8x128xf32> to vector<8xf32>
    %427 = vector.shape_cast %426 : vector<8xf32> to vector<8x1xf32>
    %cst_149 = arith.constant 3.125000e-02 : f32
    %428 = vector.broadcast %cst_149 : f32 to vector<8x1xf32>
    %429 = arith.mulf %427, %428 : vector<8x1xf32>
    %430 = vector.broadcast %429 : vector<8x1xf32> to vector<8x128xf32>
    %431 = arith.subf %425, %430 : vector<8x128xf32>
    %432 = arith.mulf %431, %19 : vector<8x128xf32>
    %433 = arith.mulf %432, %432 : vector<8x128xf32>
    %cst_150 = arith.constant dense<0.000000e+00> : vector<8xf32>
    %434 = vector.multi_reduction <add>, %433, %cst_150 [1] : vector<8x128xf32> to vector<8xf32>
    %435 = vector.shape_cast %434 : vector<8xf32> to vector<8x1xf32>
    %cst_151 = arith.constant 3.125000e-02 : f32
    %436 = vector.broadcast %cst_151 : f32 to vector<8x1xf32>
    %437 = arith.mulf %435, %436 : vector<8x1xf32>
    %cst_152 = arith.constant 9.99999974E-6 : f32
    %438 = vector.broadcast %cst_152 : f32 to vector<8x1xf32>
    %439 = arith.addf %437, %438 : vector<8x1xf32>
    %440 = math.rsqrt %439 : vector<8x1xf32>
    %441 = vector.broadcast %440 : vector<8x1xf32> to vector<8x128xf32>
    %442 = arith.mulf %432, %441 : vector<8x128xf32>
    %c0_153 = arith.constant 0 : index
    %c0_154 = arith.constant 0 : index
    %443 = vector.load %arg8[%c0_153, %c0_154] : memref<1x128xf32, #tpu.memory_space<vmem>>, vector<1x128xf32>
    %444 = vector.broadcast %443 : vector<1x128xf32> to vector<8x128xf32>
    %445 = arith.mulf %442, %444 : vector<8x128xf32>
    %c0_155 = arith.constant 0 : index
    %c0_156 = arith.constant 0 : index
    %446 = vector.load %arg9[%c0_155, %c0_156] : memref<1x128xf32, #tpu.memory_space<vmem>>, vector<1x128xf32>
    %447 = vector.broadcast %446 : vector<1x128xf32> to vector<8x128xf32>
    %448 = arith.addf %445, %447 : vector<8x128xf32>
    %c0_157 = arith.constant 0 : index
    %c0_158 = arith.constant 0 : index
    %449 = vector.load %arg10[%c0_157, %c0_158] : memref<128x128xf32, #tpu.memory_space<vmem>>, vector<128x128xf32>
    %cst_159 = arith.constant dense<0.000000e+00> : vector<8x128xf32>
    %450 = tpu.matmul %448, %449, %cst_159 {dimension_numbers = #tpu.dot_dimension_numbers<[1], [0], [0], [1], [0, 0, 1, 1], [], []>} : vector<8x128xf32>, vector<128x128xf32>, vector<8x128xf32> -> vector<8x128xf32>
    %c0_160 = arith.constant 0 : index
    %c0_161 = arith.constant 0 : index
    %451 = vector.load %arg11[%c0_160, %c0_161] : memref<1x128xf32, #tpu.memory_space<vmem>>, vector<1x128xf32>
    %452 = vector.broadcast %451 : vector<1x128xf32> to vector<8x128xf32>
    %453 = arith.addf %450, %452 : vector<8x128xf32>
    %cst_162 = arith.constant 0.000000e+00 : f32
    %454 = vector.broadcast %cst_162 : f32 to vector<8x128xf32>
    %455 = arith.maximumf %453, %454 : vector<8x128xf32>
    %c0_163 = arith.constant 0 : index
    %c0_164 = arith.constant 0 : index
    %456 = vector.load %arg12[%c0_163, %c0_164] : memref<128x128xf32, #tpu.memory_space<vmem>>, vector<128x128xf32>
    %cst_165 = arith.constant dense<0.000000e+00> : vector<8x128xf32>
    %457 = tpu.matmul %455, %456, %cst_165 {dimension_numbers = #tpu.dot_dimension_numbers<[1], [0], [0], [1], [0, 0, 1, 1], [], []>} : vector<8x128xf32>, vector<128x128xf32>, vector<8x128xf32> -> vector<8x128xf32>
    %c0_166 = arith.constant 0 : index
    %c0_167 = arith.constant 0 : index
    %458 = vector.load %arg13[%c0_166, %c0_167] : memref<1x128xf32, #tpu.memory_space<vmem>>, vector<1x128xf32>
    %459 = vector.broadcast %458 : vector<1x128xf32> to vector<8x128xf32>
    %460 = arith.addf %457, %459 : vector<8x128xf32>
    %c0_168 = arith.constant 0 : index
    %c0_169 = arith.constant 0 : index
    %461 = vector.load %arg14[%c0_168, %c0_169] : memref<8x128xf32, #tpu.memory_space<vmem>>, vector<8x128xf32>
    tpu.vector_store %arg14[%c0_168, %c0_169], %460 {strides = array<i32>} : memref<8x128xf32, #tpu.memory_space<vmem>>, vector<8x128xf32>,
    return
  }
  func.func @transform_0(%arg0: i32) -> (i32, i32, i32) {
    %c0_i32 = arith.constant 0 : i32
    %c0_i32_0 = arith.constant 0 : i32
    %c0_i32_1 = arith.constant 0 : i32
    return %c0_i32, %arg0, %c0_i32_0 : i32, i32, i32
  }
  func.func @transform_1(%arg0: i32) -> (i32, i32) {
    %c0_i32 = arith.constant 0 : i32
    %c0_i32_0 = arith.constant 0 : i32
    %c0_i32_1 = arith.constant 0 : i32
    return %c0_i32, %c0_i32_0 : i32, i32
  }
  func.func @transform_2(%arg0: i32) -> (i32, i32) {
    %c0_i32 = arith.constant 0 : i32
    %c0_i32_0 = arith.constant 0 : i32
    %c0_i32_1 = arith.constant 0 : i32
    return %c0_i32, %c0_i32_0 : i32, i32
  }
  func.func @transform_3(%arg0: i32) -> (i32, i32) {
    %c0_i32 = arith.constant 0 : i32
    %c0_i32_0 = arith.constant 0 : i32
    %c0_i32_1 = arith.constant 0 : i32
    return %c0_i32, %c0_i32_0 : i32, i32
  }
  func.func @transform_4(%arg0: i32) -> (i32, i32) {
    %c0_i32 = arith.constant 0 : i32
    %c0_i32_0 = arith.constant 0 : i32
    %c0_i32_1 = arith.constant 0 : i32
    return %c0_i32, %c0_i32_0 : i32, i32
  }
  func.func @transform_5(%arg0: i32) -> (i32, i32) {
    %c0_i32 = arith.constant 0 : i32
    %c0_i32_0 = arith.constant 0 : i32
    %c0_i32_1 = arith.constant 0 : i32
    return %c0_i32, %c0_i32_0 : i32, i32
  }
  func.func @transform_6(%arg0: i32) -> (i32, i32) {
    %c0_i32 = arith.constant 0 : i32
    %c0_i32_0 = arith.constant 0 : i32
    %c0_i32_1 = arith.constant 0 : i32
    return %c0_i32, %c0_i32_0 : i32, i32
  }
  func.func @transform_7(%arg0: i32) -> (i32, i32) {
    %c0_i32 = arith.constant 0 : i32
    %c0_i32_0 = arith.constant 0 : i32
    %c0_i32_1 = arith.constant 0 : i32
    return %c0_i32, %c0_i32_0 : i32, i32
  }
  func.func @transform_8(%arg0: i32) -> (i32, i32) {
    %c0_i32 = arith.constant 0 : i32
    %c0_i32_0 = arith.constant 0 : i32
    %c0_i32_1 = arith.constant 0 : i32
    return %c0_i32, %c0_i32_0 : i32, i32
  }
  func.func @transform_9(%arg0: i32) -> (i32, i32) {
    %c0_i32 = arith.constant 0 : i32
    %c0_i32_0 = arith.constant 0 : i32
    %c0_i32_1 = arith.constant 0 : i32
    return %c0_i32, %c0_i32_0 : i32, i32
  }
  func.func @transform_10(%arg0: i32) -> (i32, i32) {
    %c0_i32 = arith.constant 0 : i32
    %c0_i32_0 = arith.constant 0 : i32
    %c0_i32_1 = arith.constant 0 : i32
    return %c0_i32, %c0_i32_0 : i32, i32
  }
  func.func @transform_11(%arg0: i32) -> (i32, i32) {
    %c0_i32 = arith.constant 0 : i32
    %c0_i32_0 = arith.constant 0 : i32
    %c0_i32_1 = arith.constant 0 : i32
    return %c0_i32, %c0_i32_0 : i32, i32
  }
  func.func @transform_12(%arg0: i32) -> (i32, i32) {
    %c0_i32 = arith.constant 0 : i32
    %c0_i32_0 = arith.constant 0 : i32
    %c0_i32_1 = arith.constant 0 : i32
    return %c0_i32, %c0_i32_0 : i32, i32
  }
  func.func @transform_13(%arg0: i32) -> (i32, i32) {
    %c0_i32 = arith.constant 0 : i32
    %c0_i32_0 = arith.constant 0 : i32
    return %arg0, %c0_i32 : i32, i32
  }
}

</mosaic_0001>

<bundles_post_ra>
// kernel: pinball_lstm_forward.1
= control target key start
LH: loop header
LB: loop body
LE: loop exit
PB: predicated region body
PF: predicated region fallthrough
CT: control target
= control target key end

     0   :  { %18 = vsyncpa [#allocation4], 0  ;;  %s5745_s0 = inlined_call_operand.vmem [shape: f32[8,8,8], index: 0, kind: input, shape index: {}]   ;;  %s5746_s1 = inlined_call_operand.vmem [shape: f32[8,128], index: 1, kind: input, shape index: {}]   ;;  %s5747_s2 = inlined_call_operand.vmem [shape: f32[128,128], index: 2, kind: input, shape index: {}]   ;;  %s5748_s3 = inlined_call_operand.vmem [shape: f32[1,128], index: 3, kind: input, shape index: {}]   ;;  %s5749_s4 = inlined_call_operand.hbm [shape: f32[128,128], index: 4, kind: input, shape index: {}]   ;;  %s5750_s5 = inlined_call_operand.hbm [shape: f32[128,128], index: 5, kind: input, shape index: {}]   ;;  %s5751_s6 = inlined_call_operand.vmem [shape: f32[1,128], index: 6, kind: input, shape index: {}]   ;;  %s5752_s7 = inlined_call_operand.vmem [shape: f32[1,128], index: 7, kind: input, shape index: {}]   ;;  %s5753_s8 = inlined_call_operand.vmem [shape: f32[1,128], index: 8, kind: input, shape index: {}]   ;;  %s5754_s9 = inlined_call_operand.hbm [shape: f32[128,128], index: 9, kind: input, shape index: {}]   ;;  %s5755_s10 = inlined_call_operand.vmem [shape: f32[1,128], index: 10, kind: input, shape index: {}]   ;;  %s5756_s11 = inlined_call_operand.hbm [shape: f32[128,128], index: 11, kind: input, shape index: {}]   ;;  %s5757_s12 = inlined_call_operand.vmem [shape: f32[1,128], index: 12, kind: input, shape index: {}]   ;;  %s5758_s13 = inlined_call_operand.vmem [shape: f32[8,128], index: 13, kind: output, shape index: {}]  }
   0x1   :  { %19 = vsyncpa [#allocation6], 0 }
   0x2   :  { %20 = vsyncpa [#allocation9], 0  ;;  %s4181_s25 = smov [#allocation5]   ;;  %s4182_s27 = smov [#allocation3]  }
   0x3   :  { %s46_s26 = sshll.u32 %s4181_s25, 4  ;;  %s34_s28 = sshll.u32 %s4182_s27, 4  ;;  %s47_s26 = int_to_ptr.vmem [resolvable:$true] %s46_s26  ;;  %s35_s28 = int_to_ptr.vmem [resolvable:$true] %s34_s28 }
   0x4   :  { %s4103_s29 = scalar_lea.vmem %s47_s26, 2048  ;;  %p4108_p1 = scmp.lt.s32.totalorder %s47_s26, %s47_s26 }
   0x5   :  { %p4104_p0 = scmp.ne.s32.totalorder %s47_s26, %s4103_s29  ;;  %p4109_p2 = scmp.lt.s32.totalorder %s4103_s29, %s4103_s29 }
   0x7   :  { %p4110_p3 = por %p4109_p2, %p4108_p1 }
   0x9   :  { %p4111_p4 = pnand %p4110_p3, %p4104_p0 }
   0xb   :  { %4114 = shalt.err (!%p4111_p4)
}
   0xc   :  { %s4183_s30 = smov 128   ;;  %s4184_s14 = smov 8  }
   0xd   :  { %52 = dma.hbm_to_vmem [thread:$0]  %s5750_s5, 2048, %s47_s26, [#allocation6], %s4183_s30, %s4183_s30, %s4184_s14  }
   0xe   :  { %s4123_s17 = scalar_lea.vmem %s35_s28, 2048  ;;  %p4128_p6 = scmp.lt.s32.totalorder %s35_s28, %s35_s28 }
   0xf   :  { %p4124_p5 = scmp.ne.s32.totalorder %s35_s28, %s4123_s17  ;;  %p4129_p7 = scmp.lt.s32.totalorder %s4123_s17, %s4123_s17 }
  0x11   :  { %p4130_p8 = por %p4129_p7, %p4128_p6 }
  0x13   :  { %p4131_p9 = pnand %p4130_p8, %p4124_p5 }
  0x15   :  { %4134 = shalt.err (!%p4131_p9)
}
  0x16   :  { %40 = dma.hbm_to_vmem [thread:$0]  %s5749_s4, 2048, %s35_s28, [#allocation4], %s4183_s30, %s4183_s30, %s4184_s14  }
  0x17   :  { %s4185_s20 = smov [#allocation7]   ;;  %s4186_s22 = smov [#allocation8]  }
  0x18   :  { %s64_s21 = sshll.u32 %s4185_s20, 4  ;;  %s78_s23 = sshll.u32 %s4186_s22, 4  ;;  %s65_s21 = int_to_ptr.vmem [resolvable:$true] %s64_s21  ;;  %s79_s23 = int_to_ptr.vmem [resolvable:$true] %s78_s23 }
  0x19   :  { %s4143_s5 = scalar_lea.vmem %s65_s21, 2048  ;;  %p4148_p11 = scmp.lt.s32.totalorder %s65_s21, %s65_s21 }
  0x1a   :  { %p4144_p10 = scmp.ne.s32.totalorder %s65_s21, %s4143_s5  ;;  %p4149_p12 = scmp.lt.s32.totalorder %s4143_s5, %s4143_s5 }
  0x1c   :  { %p4150_p13 = por %p4149_p12, %p4148_p11 }
  0x1e   :  { %p4151_p0 = pnand %p4150_p13, %p4144_p10 }
  0x20   :  { %4154 = shalt.err (!%p4151_p0)
}
  0x21   :  { %70 = dma.hbm_to_vmem [thread:$0]  %s5754_s9, 2048, %s65_s21, [#allocation6], %s4183_s30, %s4183_s30, %s4184_s14  }
  0x22   :  { %s4163_s4 = scalar_lea.vmem %s79_s23, 2048  ;;  %p4168_p2 = scmp.lt.s32.totalorder %s79_s23, %s79_s23 }
  0x23   :  { %p4164_p1 = scmp.ne.s32.totalorder %s79_s23, %s4163_s4  ;;  %p4169_p3 = scmp.lt.s32.totalorder %s4163_s4, %s4163_s4 }
  0x25   :  { %p4170_p4 = por %p4169_p3, %p4168_p2 }
  0x27   :  { %p4171_p5 = pnand %p4170_p4, %p4164_p1 }
  0x29   :  { %4174 = shalt.err (!%p4171_p5)
}
  0x2a   :  { %84 = dma.hbm_to_vmem [thread:$0]  %s5756_s11, 2048, %s79_s23, [#allocation9], %s4183_s30, %s4183_s30, %s4184_s14  }
  0x2b   :  { %4175 = dma.done.wait [#allocation4], 2048  }
  0x2c   :  { %4176 = vsyncadd [#allocation4], 4294965248 }
  0x2d   :  { %4177 = dma.done.wait [#allocation6], 4096  }
  0x2e   :  { %4178 = vsyncadd [#allocation6], 4294963200 }
  0x2f   :  { %4179 = dma.done.wait [#allocation9], 2048  }
  0x30   :  { %4180 = vsyncadd [#allocation9], 4294965248  ;;  %vm115_vm0 = vcmask 64512   ;;  %v107_v0 = vld [vmem:[%s5746_s1] sm:$0xff]  ;;  %v100_v2 = vld [vmem:[%s5745_s0 + $0x8] sm:$0xff]  ;;  %v308_v3 = vlaneseq  ;;  %v5762_v4 = vmov 0.0  }
  0x31   :  { %v99_v1 = vld [vmem:[%s5745_s0] sm:$0xff]  ;;  %3014 = vmatprep.subr.mxu0 %v107_v0  ;;  %3028 = vmatprep.subr.mxu1 %v5762_v4  ;;  %s4188_s1 = smov 32   ;;  %v4306_v7 = vld [vmem:[%s5747_s2 + $0x78] sm:$0xff]  ;;  %v4311_v8 = vld [vmem:[%s5747_s2 + $0x70] sm:$0xff]  ;;  %vm4189_vm4 = vmmov 0   ;;  %s4190_s18 = smov 96  }
  0x32   :  { %3016 = vmatprep.mubr.msk.f32.mxu0 %vm115_vm0, %v99_v1  ;;  %3015 = vmatpush3.msra.mxu0 %v107_v0  ;;  %v4299_v5 = vand.u32 127, %v308_v3  ;;  %v4318_v9 = vld [vmem:[%s5747_s2 + $0x68] sm:$0xff]  ;;  %v4329_v11 = vld [vmem:[%s5748_s3] ss:$0 sm:$0xff]  ;;  %v4342_v18 = vld [vmem:[%s5747_s2 + $0x58] sm:$0xff]  ;;  %s4191_s23 = smov 64  }
  0x33   :  { %3017 = vmatmul.mubr.msk.f32.vlgmr.msra.gmra.mxu0 %vm115_vm0, %v100_v2  ;;  %3063 = vmatprep.subr.mxu0 %v5762_v4  ;;  %v4335_v17 = vld [vmem:[%s5747_s2 + $0x60] sm:$0xff]  ;;  %v4349_v19 = vld [vmem:[%s5747_s2 + $0x50] sm:$0xff]  ;;  %v4356_v20 = vld [vmem:[%s5747_s2 + $0x48] sm:$0xff] }
  0x34   :  { %v316_v6 = vcvt.s32.f32 %v4299_v5  ;;  %3029 = vmatpush3.msra.mxu1 %v4306_v7  ;;  %vm313_vm1 = vcmp.ge.s32.totalorder %v4299_v5, 64  ;;  %vm314_vm2 = vcmp.lt.s32.totalorder %v4299_v5, 96  ;;  %v4365_v21 = vld [vmem:[%s5747_s2 + $0x40] sm:$0xff]  ;;  %v4376_v23 = vld [vmem:[%s5747_s2 + $0x38] sm:$0xff]  ;;  %v4382_v25 = vld [vmem:[%s5747_s2 + $0x30] sm:$0xff]  ;;  %3060 = vmatprep.mubr.msk.f32.mxu1 %vm4189_vm4, %v5762_v4  ;;  %v319_v56 = vadd.s32 32, %v4299_v5 }
  0x35   :  { %3030 = vmatprep.subr.mxu1 %v5762_v4  ;;  %vm4368_vm3 = vmand %vm313_vm1, %vm314_vm2  ;;  %v4395_v28 = vld [vmem:[%s5747_s2 + $0x28] sm:$0xff]  ;;  %v4397_v29 = vld [vmem:[#allocation5 + $0x78] sm:$0xff]  ;;  %vm310_vm6 = vcmp.lt.s32.totalorder %v4299_v5, 32 }
  0x36   :  { %317 = vrot.lane.b32.xlu0 %v316_v6, %s4188_s1  ;;  %3031 = vmatpush3.msra.mxu1 %v4311_v8  ;;  %v4407_v30 = vld [vmem:[%s5747_s2 + $0x20] sm:$0xff]  ;;  %v4416_v31 = vld [vmem:[%s5747_s2 + $0x18] sm:$0xff]  ;;  %v4425_v32 = vld [vmem:[%s5747_s2 + $0x10] sm:$0xff]  ;;  %v324_v57 = vand.u32 127, %v319_v56  ;;  %v4576_v3 = vsel %vm310_vm6, 1.0, %v5762_v4 }
  0x37   :  { %3032 = vmatprep.subr.mxu1 %v5762_v4  ;;  %3064 = vmatpush3.msra.mxu0 %v4397_v29  ;;  %v4432_v33 = vld [vmem:[%s5747_s2 + $0x8] sm:$0xff]  ;;  %v4439_v34 = vld [vmem:[%s5747_s2] sm:$0xff]  ;;  %v4444_v35 = vld [vmem:[#allocation5 + $0x70] sm:$0xff] }
  0x38   :  { %3033 = vmatpush3.msra.mxu1 %v4318_v9  ;;  %3065 = vmatprep.subr.mxu0 %v5762_v4  ;;  %5775 = vst [vmem:[#allocation13_spill] sm:$0xff] %v4432_v33  ;;  %5776 = vst [vmem:[#allocation14_spill] sm:$0xff] %v4439_v34  ;;  %v4449_v36 = vld [vmem:[#allocation5 + $0x68] sm:$0xff]  ;;  %v4453_v37 = vld [vmem:[#allocation5 + $0x60] sm:$0xff]  ;;  %v332_v59 = vcvt.s32.f32 %v324_v57 }
  0x39   :  { %3034 = vmatprep.subr.mxu1 %v5762_v4  ;;  %3066 = vmatpush3.msra.mxu0 %v4444_v35  ;;  %v4457_v38 = vld [vmem:[#allocation5 + $0x58] sm:$0xff]  ;;  %v4461_v39 = vld [vmem:[#allocation5 + $0x50] sm:$0xff]  ;;  %v4465_v40 = vld [vmem:[#allocation5 + $0x48] sm:$0xff] }
  0x3a   :  { %3035 = vmatpush3.msra.mxu1 %v4335_v17  ;;  %3067 = vmatprep.subr.mxu0 %v5762_v4  ;;  %v4469_v41 = vld [vmem:[#allocation5 + $0x40] sm:$0xff]  ;;  %v4473_v42 = vld [vmem:[#allocation5 + $0x38] sm:$0xff]  ;;  %v101_v43 = vld [vmem:[%s5745_s0 + $0x10] sm:$0xff] }
  0x3b   :  { %3036 = vmatprep.subr.mxu1 %v5762_v4  ;;  %3068 = vmatpush3.msra.mxu0 %v4449_v36  ;;  %v4480_v44 = vld [vmem:[#allocation5 + $0x30] sm:$0xff]  ;;  %v102_v45 = vld [vmem:[%s5745_s0 + $0x18] sm:$0xff]  ;;  %v4489_v46 = vld [vmem:[#allocation5 + $0x28] sm:$0xff] }
  0x3c   :  { %3037 = vmatpush3.msra.mxu1 %v4342_v18  ;;  %3069 = vmatprep.subr.mxu0 %v5762_v4  ;;  %v103_v47 = vld [vmem:[%s5745_s0 + $0x20] sm:$0xff]  ;;  %v104_v49 = vld [vmem:[%s5745_s0 + $0x28] sm:$0xff]  ;;  %v4505_v50 = vld [vmem:[#allocation5 + $0x18] sm:$0xff] }
  0x3d   :  { %3038 = vmatprep.subr.mxu1 %v5762_v4  ;;  %3070 = vmatpush3.msra.mxu0 %v4453_v37  ;;  %v4496_v48 = vld [vmem:[#allocation5 + $0x20] sm:$0xff]  ;;  %v105_v51 = vld [vmem:[%s5745_s0 + $0x30] sm:$0xff]  ;;  %v106_v53 = vld [vmem:[%s5745_s0 + $0x38] sm:$0xff] }
  0x3e   :  { %3039 = vmatpush3.msra.mxu1 %v4349_v19  ;;  %3071 = vmatprep.subr.mxu0 %v5762_v4  ;;  %v4512_v52 = vld [vmem:[#allocation5 + $0x10] sm:$0xff]  ;;  %v4521_v54 = vld [vmem:[#allocation5 + $0x8] sm:$0xff]  ;;  %v4527_v55 = vld [vmem:[#allocation5] sm:$0xff] }
  0x3f   :  { %3040 = vmatprep.subr.mxu1 %v5762_v4  ;;  %3072 = vmatpush3.msra.mxu0 %v4457_v38  ;;  %5777 = vst [vmem:[#allocation15_spill] sm:$0xff] %v4521_v54  ;;  %5778 = vst [vmem:[#allocation16_spill] sm:$0xff] %v4527_v55  ;;  %v4586_v5 = vld [vmem:[#allocation3 + $0x70] sm:$0xff]  ;;  %v4628_v56 = vld [vmem:[#allocation3 + $0x20] sm:$0xff] }
  0x40   :  { %3041 = vmatpush3.msra.mxu1 %v4356_v20  ;;  %3073 = vmatprep.subr.mxu0 %v5762_v4  ;;  %v4632_v57 = vld [vmem:[#allocation3 + $0x18] sm:$0xff] }
  0x41   :  { %3042 = vmatprep.subr.mxu1 %v5762_v4  ;;  %3074 = vmatpush3.msra.mxu0 %v4461_v39 }
  0x42   :  { %3043 = vmatpush3.msra.mxu1 %v4365_v21  ;;  %3075 = vmatprep.subr.mxu0 %v5762_v4 }
  0x43   :  { %3044 = vmatprep.subr.mxu1 %v5762_v4  ;;  %3076 = vmatpush3.msra.mxu0 %v4465_v40 }
  0x44   :  { %3045 = vmatpush3.msra.mxu1 %v4376_v23  ;;  %3077 = vmatprep.subr.mxu0 %v5762_v4 }
  0x45   :  { %3046 = vmatprep.subr.mxu1 %v5762_v4  ;;  %3078 = vmatpush3.msra.mxu0 %v4469_v41 }
  0x46   :  { %3047 = vmatpush3.msra.mxu1 %v4382_v25  ;;  %3079 = vmatprep.subr.mxu0 %v5762_v4 }
  0x47   :  { %3048 = vmatprep.subr.mxu1 %v5762_v4  ;;  %3080 = vmatpush3.msra.mxu0 %v4473_v42 }
  0x48   :  { %3049 = vmatpush3.msra.mxu1 %v4395_v28  ;;  %3081 = vmatprep.subr.mxu0 %v5762_v4 }
  0x49   :  { %3050 = vmatprep.subr.mxu1 %v5762_v4  ;;  %3019 = vmatprep.mubr.msk.f32.mxu0 %vm115_vm0, %v101_v43  ;;  %v4604_v43 = vld [vmem:[#allocation3 + $0x50] sm:$0xff] }
  0x4a   :  { %3051 = vmatpush3.msra.mxu1 %v4407_v30  ;;  %3082 = vmatpush3.msra.mxu0 %v4480_v44 }
  0x4b   :  { %3052 = vmatprep.subr.mxu1 %v5762_v4  ;;  %3020 = vmatmul.mubr.msk.f32.gmra.mxu0 %vm115_vm0, %v102_v45  ;;  %v4608_v45 = vld [vmem:[#allocation3 + $0x48] sm:$0xff] }
  0x4c   :  { %3053 = vmatpush3.msra.mxu1 %v4416_v31  ;;  %3083 = vmatprep.subr.mxu0 %v5762_v4 }
  0x4d   :  { %3054 = vmatprep.subr.mxu1 %v5762_v4  ;;  %3084 = vmatpush3.msra.mxu0 %v4489_v46 }
  0x4e   :  { %3055 = vmatpush3.msra.mxu1 %v4425_v32  ;;  %3085 = vmatprep.subr.mxu0 %v5762_v4 }
  0x4f   :  { %3056 = vmatprep.subr.mxu1 %v5762_v4  ;;  %3022 = vmatprep.mubr.msk.f32.mxu0 %vm115_vm0, %v103_v47  ;;  %v4612_v47 = vld [vmem:[#allocation3 + $0x40] sm:$0xff] }
  0x50   :  { %3057 = vmatpush3.msra.mxu1 %v4432_v33  ;;  %3086 = vmatpush3.msra.mxu0 %v4496_v48 }
  0x51   :  { %3058 = vmatprep.subr.mxu1 %v5762_v4  ;;  %3023 = vmatmul.mubr.msk.f32.gmra.mxu0 %vm115_vm0, %v104_v49  ;;  %v4616_v49 = vld [vmem:[#allocation3 + $0x38] sm:$0xff] }
  0x52   :  { %3059 = vmatpush3.msra.mxu1 %v4439_v34  ;;  %3087 = vmatprep.subr.mxu0 %v5762_v4 }
  0x53   :  { %3098 = vmatprep.subr.mxu1 %v5762_v4  ;;  %3088 = vmatpush3.msra.mxu0 %v4505_v50 }
  0x54   :  { %3089 = vmatprep.subr.mxu0 %v5762_v4  ;;  %3025 = vmatprep.mubr.msk.f32.mxu0 %vm115_vm0, %v105_v51  ;;  %v4620_v51 = vld [vmem:[#allocation3 + $0x30] sm:$0xff] }
  0x55   :  { %3090 = vmatpush3.msra.mxu0 %v4512_v52 }
  0x56   :  { %3026 = vmatmul.mubr.msk.f32.gmra.mxu0 %vm115_vm0, %v106_v53  ;;  %3091 = vmatprep.subr.mxu0 %v5762_v4  ;;  %v4624_v53 = vld [vmem:[#allocation3 + $0x28] sm:$0xff] }
  0x57   :  { %3092 = vmatpush3.msra.mxu0 %v4521_v54  ;;  %3095 = vmatprep.mubr.msk.f32.mxu0 %vm4189_vm4, %v5762_v4 }
  0x58   :  { %3093 = vmatprep.subr.mxu0 %v5762_v4 }
  0x59   :  { %3094 = vmatpush3.msra.mxu0 %v4527_v55 }
  0x5a   :  { %3096 = vmatmul.mubr.f32.vlgmr.msra.gmra.mxu0 %v5762_v4  ;;  %3133 = vmatprep.subr.mxu0 %v5762_v4 }
  0x5b   :  { %3134 = vmatpush3.msra.mxu0 %v4306_v7  ;;  %3165 = vmatprep.mubr.msk.f32.mxu0 %vm4189_vm4, %v5762_v4 }
  0x5c   :  { %3135 = vmatprep.subr.mxu0 %v5762_v4 }
  0x5d   :  { %3136 = vmatpush3.msra.mxu0 %v4311_v8 }
  0x5e   :  { %3137 = vmatprep.subr.mxu0 %v5762_v4 }
  0x5f   :  { %3138 = vmatpush3.msra.mxu0 %v4318_v9 }
  0x60   :  { %3139 = vmatprep.subr.mxu0 %v5762_v4 }
  0x61   :  { %3140 = vmatpush3.msra.mxu0 %v4335_v17 }
  0x62   :  { %3141 = vmatprep.subr.mxu0 %v5762_v4 }
  0x63   :  { %3142 = vmatpush3.msra.mxu0 %v4342_v18 }
  0x64   :  { %3143 = vmatprep.subr.mxu0 %v5762_v4 }
  0x65   :  { %3144 = vmatpush3.msra.mxu0 %v4349_v19 }
  0x66   :  { %3145 = vmatprep.subr.mxu0 %v5762_v4 }
  0x67   :  { %3146 = vmatpush3.msra.mxu0 %v4356_v20 }
  0x68   :  { %3147 = vmatprep.subr.mxu0 %v5762_v4 }
  0x69   :  { %3148 = vmatpush3.msra.mxu0 %v4365_v21 }
  0x6a   :  { %3149 = vmatprep.subr.mxu0 %v5762_v4 }
  0x6b   :  { %3150 = vmatpush3.msra.mxu0 %v4376_v23 }
  0x6c   :  { %3151 = vmatprep.subr.mxu0 %v5762_v4 }
  0x6d   :  { %3152 = vmatpush3.msra.mxu0 %v4382_v25 }
  0x6e   :  { %3153 = vmatprep.subr.mxu0 %v5762_v4 }
  0x6f   :  { %3154 = vmatpush3.msra.mxu0 %v4395_v28 }
  0x70   :  { %3155 = vmatprep.subr.mxu0 %v5762_v4 }
  0x71   :  { %3156 = vmatpush3.msra.mxu0 %v4407_v30 }
  0x72   :  { %3157 = vmatprep.subr.mxu0 %v5762_v4 }
  0x73   :  { %3158 = vmatpush3.msra.mxu0 %v4416_v31 }
  0x74   :  { %3159 = vmatprep.subr.mxu0 %v5762_v4 }
  0x75   :  { %3160 = vmatpush3.msra.mxu0 %v4425_v32 }
  0x76   :  { %3161 = vmatprep.subr.mxu0 %v5762_v4 }
  0x77   :  { %3162 = vmatpush3.msra.mxu0 %v4432_v33 }
  0x78   :  { %3163 = vmatprep.subr.mxu0 %v5762_v4 }
  0x79   :  { %3164 = vmatpush3.msra.mxu0 %v4439_v34 }
  0x7a   :  { %3203 = vmatprep.subr.mxu0 %v5762_v4 }
  0xa8   :  { %v318_v58 = vpop.permute.xlu0 %317 }
  0xa9   :  { %vm4567_vm5 = vcmp.eq.f32.partialorder %v318_v58, %v332_v59  ;;  %v4636_v58 = vld [vmem:[#allocation3 + $0x10] sm:$0xff]  ;;  %v4640_v59 = vld [vmem:[#allocation3 + $0x8] sm:$0xff] }
  0xf3   :  { %v4324_v10 = vpop.f32.mrf.mxu0 }
  0xf5   :  { %v206_v12 = vpop.f32.mrf.mxu0 }
  0xf6   :  { %v207_v13 = vadd.f32 %v4329_v11, %v206_v12 }
  0xf8   :  { %v2560_v14 = vmul.f32 -1.442695, %v207_v13 }
  0xfa   :  { %3914 = vpow2.f32 %v2560_v14 }
  0xfb   :  { %3916 = vtanh.f32 %v207_v13 }
 0x107   :  { %v3915_v15 = vpop.eup %3914 }
 0x108   :  { %v339_v16 = vadd.f32 1.0, %v3915_v15  ;;  %v3917_v24 = vpop.eup %3916 }
 0x10a   :  { %3918 = vrcp.f32 %v339_v16  ;;  %v4584_v16 = vld [vmem:[#allocation3 + $0x78] sm:$0xff] }
 0x117   :  { %v3919_v26 = vpop.eup %3918 }
 0x118   :  { %v4389_v27 = vsel %vm4368_vm3, %v3917_v24, %v3919_v26  ;;  %v4592_v24 = vld [vmem:[#allocation3 + $0x68] sm:$0xff]  ;;  %v4596_v26 = vld [vmem:[#allocation3 + $0x60] sm:$0xff] }
 0x119   :  { %345 = vrot.lane.b32.xlu1 %v4389_v27, %s4190_s18  ;;  %343 = vrot.lane.b32.xlu0 %v4389_v27, %s4188_s1 }
 0x11d   :  { %349 = vrot.lane.b32.xlu1 %v4389_v27, %s4191_s23 }
 0x18b   :  { %v346_v61 = vpop.permute.xlu1 %345  ;;  %v344_v62 = vpop.permute.xlu0 %343 }
 0x18c   :  { %v347_v63 = vsel %vm4567_vm5, %v344_v62, %v346_v61  ;;  %v348_v14 = vsel %vm4567_vm5, %v346_v61, %v344_v62  ;;  %v4644_v61 = vld [vmem:[#allocation3] sm:$0xff]  ;;  %v4684_v62 = vpop.f32.mrf.mxu0 }
 0x18d   :  { %v351_v1 = vmul.f32 0.0, %v347_v63  ;;  %5781 = vst [vmem:[#allocation17_spill] sm:$0xff] %v4684_v62 }
 0x18e   :  { %v4686_v63 = vpop.f32.mrf.mxu0 }
 0x18f   :  { %v350_v0 = vpop.permute.xlu1 %349  ;;  %5782 = vst [vmem:[#allocation18_spill] sm:$0xff] %v4686_v63 }
 0x190   :  { %v352_v2 = vmul.f32 %v350_v0, %v4389_v27  ;;  %v4600_v27 = vld [vmem:[#allocation3 + $0x58] sm:$0xff]  ;;  %v4688_v0 = vpop.f32.mrf.mxu0 }
 0x191   :  { %5783 = vst [vmem:[#allocation19_spill] sm:$0xff] %v4688_v0 }
 0x192   :  { %v353_v6 = vadd.f32 %v352_v2, %v351_v1  ;;  %v4690_v1 = vpop.f32.mrf.mxu0 }
 0x193   :  { %5784 = vst [vmem:[#allocation20_spill] sm:$0xff] %v4690_v1 }
 0x194   :  { %v4579_v12 = vmul.f32 %v4576_v3, %v353_v6  ;;  %v4692_v2 = vpop.f32.mrf.mxu0 }
 0x195   :  { %5785 = vst [vmem:[#allocation21_spill] sm:$0xff] %v4692_v2  ;;  %v4701_v2 = vld [vmem:[%s5751_s6] ss:$0 sm:$0xff] }
 0x196   :  { %3920 = vtanh.f32 %v4579_v12  ;;  %v4694_v6 = vpop.f32.mrf.mxu0 }
 0x197   :  { %5786 = vst [vmem:[#allocation22_spill] sm:$0xff] %v4694_v6 }
 0x1a3   :  { %v3921_v13 = vpop.eup %3920 }
 0x1a4   :  { %v356_v15 = vmul.f32 %v3921_v13, %v348_v14  ;;  %v496_v13 = vpop.f32.mrf.mxu0 }
 0x1a6   :  { %3061 = vmatmul.mubr.f32.vlgmr.msra.gmra.mxu1 %v356_v15  ;;  %v3097_v14 = vpop.f32.mrf.mxu0 }
 0x1a7   :  { %3099 = vmatpush3.msra.mxu1 %v4584_v16  ;;  %3130 = vmatprep.mubr.msk.f32.mxu1 %vm4189_vm4, %v5762_v4 }
 0x1a8   :  { %3100 = vmatprep.subr.mxu1 %v5762_v4 }
 0x1a9   :  { %3101 = vmatpush3.msra.mxu1 %v4586_v5 }
 0x1aa   :  { %3102 = vmatprep.subr.mxu1 %v5762_v4 }
 0x1ab   :  { %3103 = vmatpush3.msra.mxu1 %v4592_v24 }
 0x1ac   :  { %3104 = vmatprep.subr.mxu1 %v5762_v4 }
 0x1ad   :  { %3105 = vmatpush3.msra.mxu1 %v4596_v26 }
 0x1ae   :  { %3106 = vmatprep.subr.mxu1 %v5762_v4 }
 0x1af   :  { %3107 = vmatpush3.msra.mxu1 %v4600_v27 }
 0x1b0   :  { %3108 = vmatprep.subr.mxu1 %v5762_v4 }
 0x1b1   :  { %3109 = vmatpush3.msra.mxu1 %v4604_v43 }
 0x1b2   :  { %3110 = vmatprep.subr.mxu1 %v5762_v4 }
 0x1b3   :  { %3111 = vmatpush3.msra.mxu1 %v4608_v45 }
 0x1b4   :  { %3112 = vmatprep.subr.mxu1 %v5762_v4 }
 0x1b5   :  { %3113 = vmatpush3.msra.mxu1 %v4612_v47 }
 0x1b6   :  { %3114 = vmatprep.subr.mxu1 %v5762_v4 }
 0x1b7   :  { %3115 = vmatpush3.msra.mxu1 %v4616_v49 }
 0x1b8   :  { %3116 = vmatprep.subr.mxu1 %v5762_v4 }
 0x1b9   :  { %3117 = vmatpush3.msra.mxu1 %v4620_v51 }
 0x1ba   :  { %3118 = vmatprep.subr.mxu1 %v5762_v4 }
 0x1bb   :  { %3119 = vmatpush3.msra.mxu1 %v4624_v53 }
 0x1bc   :  { %3120 = vmatprep.subr.mxu1 %v5762_v4 }
 0x1bd   :  { %3121 = vmatpush3.msra.mxu1 %v4628_v56 }
 0x1be   :  { %3122 = vmatprep.subr.mxu1 %v5762_v4 }
 0x1bf   :  { %3123 = vmatpush3.msra.mxu1 %v4632_v57 }
 0x1c0   :  { %3124 = vmatprep.subr.mxu1 %v5762_v4 }
 0x1c1   :  { %3125 = vmatpush3.msra.mxu1 %v4636_v58 }
 0x1c2   :  { %3126 = vmatprep.subr.mxu1 %v5762_v4 }
 0x1c3   :  { %3127 = vmatpush3.msra.mxu1 %v4640_v59 }
 0x1c4   :  { %3128 = vmatprep.subr.mxu1 %v5762_v4 }
 0x1c5   :  { %3129 = vmatpush3.msra.mxu1 %v4644_v61 }
 0x1c6   :  { %3131 = vmatmul.mubr.f32.vlgmr.msra.gmra.mxu1 %v356_v15  ;;  %3168 = vmatprep.subr.mxu1 %v5762_v4  ;;  %v212_v15 = vadd.f32 %v4324_v10, %v4329_v11 }
 0x1c7   :  { %3169 = vmatpush3.msra.mxu1 %v4397_v29  ;;  %3200 = vmatprep.mubr.msk.f32.mxu1 %vm4189_vm4, %v5762_v4 }
 0x1c8   :  { %3170 = vmatprep.subr.mxu1 %v5762_v4 }
 0x1c9   :  { %3171 = vmatpush3.msra.mxu1 %v4444_v35 }
 0x1ca   :  { %3172 = vmatprep.subr.mxu1 %v5762_v4 }
 0x1cb   :  { %3173 = vmatpush3.msra.mxu1 %v4449_v36 }
 0x1cc   :  { %3174 = vmatprep.subr.mxu1 %v5762_v4 }
 0x1cd   :  { %3175 = vmatpush3.msra.mxu1 %v4453_v37 }
 0x1ce   :  { %3176 = vmatprep.subr.mxu1 %v5762_v4 }
 0x1cf   :  { %3177 = vmatpush3.msra.mxu1 %v4457_v38 }
 0x1d0   :  { %3178 = vmatprep.subr.mxu1 %v5762_v4 }
 0x1d1   :  { %3179 = vmatpush3.msra.mxu1 %v4461_v39 }
 0x1d2   :  { %3180 = vmatprep.subr.mxu1 %v5762_v4 }
 0x1d3   :  { %3181 = vmatpush3.msra.mxu1 %v4465_v40 }
 0x1d4   :  { %3182 = vmatprep.subr.mxu1 %v5762_v4 }
 0x1d5   :  { %3183 = vmatpush3.msra.mxu1 %v4469_v41 }
 0x1d6   :  { %3184 = vmatprep.subr.mxu1 %v5762_v4 }
 0x1d7   :  { %3185 = vmatpush3.msra.mxu1 %v4473_v42 }
 0x1d8   :  { %3186 = vmatprep.subr.mxu1 %v5762_v4 }
 0x1d9   :  { %3187 = vmatpush3.msra.mxu1 %v4480_v44 }
 0x1da   :  { %3188 = vmatprep.subr.mxu1 %v5762_v4 }
 0x1db   :  { %3189 = vmatpush3.msra.mxu1 %v4489_v46 }
 0x1dc   :  { %3190 = vmatprep.subr.mxu1 %v5762_v4 }
 0x1dd   :  { %3191 = vmatpush3.msra.mxu1 %v4496_v48 }
 0x1de   :  { %3192 = vmatprep.subr.mxu1 %v5762_v4 }
 0x1df   :  { %3193 = vmatpush3.msra.mxu1 %v4505_v50 }
 0x1e0   :  { %3194 = vmatprep.subr.mxu1 %v5762_v4 }
 0x1e1   :  { %3195 = vmatpush3.msra.mxu1 %v4512_v52 }
 0x1e2   :  { %3196 = vmatprep.subr.mxu1 %v5762_v4 }
 0x1e3   :  { %3197 = vmatpush3.msra.mxu1 %v4521_v54 }
 0x1e4   :  { %3198 = vmatprep.subr.mxu1 %v5762_v4 }
 0x1e5   :  { %3199 = vmatpush3.msra.mxu1 %v4527_v55 }
 0x1e6   :  { %3238 = vmatprep.subr.mxu1 %v5762_v4 }
 0x266   :  { %v425_v34 = vpop.f32.mrf.mxu1 }
 0x267   :  { %v429_v55 = vadd.f32 %v425_v34, %v212_v15 }
 0x268   :  { %v3062_v4 = vpop.f32.mrf.mxu1 }
 0x269   :  { %v2562_v33 = vmul.f32 -1.442695, %v429_v55 }
 0x26b   :  { %3922 = vpow2.f32 %v2562_v33 }
 0x26c   :  { %3924 = vtanh.f32 %v429_v55 }
 0x278   :  { %v3923_v62 = vpop.eup %3922 }
 0x279   :  { %v597_v63 = vadd.f32 1.0, %v3923_v62  ;;  %v3925_v0 = vpop.eup %3924 }
 0x27b   :  { %3926 = vrcp.f32 %v597_v63 }
 0x286   :  { %v566_v6 = vpop.f32.mrf.mxu1 }
 0x287   :  { %v567_v14 = vadd.f32 %v566_v6, %v496_v13 }
 0x288   :  { %v3927_v1 = vpop.eup %3926  ;;  %v3132_v54 = vpop.f32.mrf.mxu1 }
 0x289   :  { %v570_v10 = vadd.f32 %v4701_v2, %v567_v14  ;;  %v600_v4 = vsel %vm4368_vm3, %v3925_v0, %v3927_v1 }
 0x28a   :  { %603 = vrot.lane.b32.xlu1 %v600_v4, %s4190_s18  ;;  %601 = vrot.lane.b32.xlu0 %v600_v4, %s4188_s1 }
 0x28b   :  { %v2561_v33 = vmul.f32 -1.442695, %v570_v10 }
 0x28d   :  { %3928 = vpow2.f32 %v2561_v33 }
 0x28e   :  { %607 = vrot.lane.b32.xlu0 %v600_v4, %s4191_s23  ;;  %3930 = vtanh.f32 %v570_v10 }
 0x29a   :  { %v3929_v34 = vpop.eup %3928 }
 0x29b   :  { %v575_v55 = vadd.f32 1.0, %v3929_v34  ;;  %v3931_v62 = vpop.eup %3930 }
 0x29d   :  { %3932 = vrcp.f32 %v575_v55 }
 0x2aa   :  { %v3933_v63 = vpop.eup %3932 }
 0x2ab   :  { %v578_v54 = vsel %vm4368_vm3, %v3931_v62, %v3933_v63  ;;  %v5787_v63 = vmov 0.0  }
 0x2ac   :  { %581 = vrot.lane.b32.xlu0 %v578_v54, %s4190_s18  ;;  %579 = vrot.lane.b32.xlu1 %v578_v54, %s4188_s1 }
 0x2b0   :  { %585 = vrot.lane.b32.xlu1 %v578_v54, %s4191_s23 }
 0x2fc   :  { %v604_v0 = vpop.permute.xlu1 %603  ;;  %v602_v1 = vpop.permute.xlu0 %601 }
 0x2fd   :  { %v605_v6 = vsel %vm4567_vm5, %v602_v1, %v604_v0  ;;  %v606_v55 = vsel %vm4567_vm5, %v604_v0, %v602_v1 }
 0x2fe   :  { %v609_v15 = vmul.f32 %v605_v6, %v4579_v12 }
 0x300   :  { %v608_v13 = vpop.permute.xlu0 %607 }
 0x301   :  { %v610_v14 = vmul.f32 %v608_v13, %v600_v4 }
 0x303   :  { %v611_v10 = vadd.f32 %v610_v14, %v609_v15 }
 0x305   :  { %v4718_v33 = vmul.f32 %v4576_v3, %v611_v10 }
 0x307   :  { %3934 = vtanh.f32 %v4718_v33 }
 0x314   :  { %v3935_v34 = vpop.eup %3934 }
 0x315   :  { %v614_v62 = vmul.f32 %v3935_v34, %v606_v55 }
 0x317   :  { %3166 = vmatmul.mubr.f32.vlgmr.msra.gmra.mxu0 %v614_v62 }
 0x318   :  { %3204 = vmatpush3.msra.mxu0 %v4584_v16  ;;  %3235 = vmatprep.mubr.msk.f32.mxu0 %vm4189_vm4, %v5787_v63 }
 0x319   :  { %3205 = vmatprep.subr.mxu0 %v5787_v63 }
 0x31a   :  { %3206 = vmatpush3.msra.mxu0 %v4586_v5 }
 0x31b   :  { %3207 = vmatprep.subr.mxu0 %v5787_v63 }
 0x31c   :  { %3208 = vmatpush3.msra.mxu0 %v4592_v24 }
 0x31d   :  { %3209 = vmatprep.subr.mxu0 %v5787_v63 }
 0x31e   :  { %3210 = vmatpush3.msra.mxu0 %v4596_v26  ;;  %v582_v12 = vpop.permute.xlu0 %581  ;;  %v580_v4 = vpop.permute.xlu1 %579 }
 0x31f   :  { %3211 = vmatprep.subr.mxu0 %v5787_v63  ;;  %v583_v0 = vsel %vm4567_vm5, %v580_v4, %v582_v12  ;;  %v584_v10 = vsel %vm4567_vm5, %v582_v12, %v580_v4 }
 0x320   :  { %3212 = vmatpush3.msra.mxu0 %v4600_v27  ;;  %v587_v6 = vmul.f32 0.0, %v583_v0 }
 0x321   :  { %3213 = vmatprep.subr.mxu0 %v5787_v63 }
 0x322   :  { %3214 = vmatpush3.msra.mxu0 %v4604_v43  ;;  %v586_v1 = vpop.permute.xlu1 %585 }
 0x323   :  { %v588_v13 = vmul.f32 %v586_v1, %v578_v54  ;;  %3215 = vmatprep.subr.mxu0 %v5787_v63 }
 0x324   :  { %3216 = vmatpush3.msra.mxu0 %v4608_v45 }
 0x325   :  { %v589_v15 = vadd.f32 %v588_v13, %v587_v6  ;;  %3217 = vmatprep.subr.mxu0 %v5787_v63 }
 0x326   :  { %3218 = vmatpush3.msra.mxu0 %v4612_v47 }
 0x327   :  { %v4743_v14 = vmul.f32 %v4576_v3, %v589_v15  ;;  %3219 = vmatprep.subr.mxu0 %v5787_v63 }
 0x328   :  { %3220 = vmatpush3.msra.mxu0 %v4616_v49 }
 0x329   :  { %3936 = vtanh.f32 %v4743_v14  ;;  %3221 = vmatprep.subr.mxu0 %v5787_v63 }
 0x32a   :  { %3222 = vmatpush3.msra.mxu0 %v4620_v51 }
 0x32b   :  { %3223 = vmatprep.subr.mxu0 %v5787_v63 }
 0x32c   :  { %3224 = vmatpush3.msra.mxu0 %v4624_v53 }
 0x32d   :  { %3225 = vmatprep.subr.mxu0 %v5787_v63 }
 0x32e   :  { %3226 = vmatpush3.msra.mxu0 %v4628_v56 }
 0x32f   :  { %3227 = vmatprep.subr.mxu0 %v5787_v63 }
 0x330   :  { %3228 = vmatpush3.msra.mxu0 %v4632_v57 }
 0x331   :  { %3229 = vmatprep.subr.mxu0 %v5787_v63 }
 0x332   :  { %3230 = vmatpush3.msra.mxu0 %v4636_v58 }
 0x333   :  { %3231 = vmatprep.subr.mxu0 %v5787_v63 }
 0x334   :  { %3232 = vmatpush3.msra.mxu0 %v4640_v59 }
 0x335   :  { %3233 = vmatprep.subr.mxu0 %v5787_v63 }
 0x336   :  { %v3937_v54 = vpop.eup %3936  ;;  %3234 = vmatpush3.msra.mxu0 %v4644_v61 }
 0x337   :  { %3236 = vmatmul.mubr.f32.vlgmr.msra.gmra.mxu0 %v614_v62  ;;  %v592_v34 = vmul.f32 %v3937_v54, %v584_v10  ;;  %3273 = vmatprep.subr.mxu0 %v5787_v63 }
 0x338   :  { %3274 = vmatpush3.msra.mxu0 %v4397_v29  ;;  %3305 = vmatprep.mubr.msk.f32.mxu0 %vm4189_vm4, %v5787_v63 }
 0x339   :  { %3201 = vmatmul.mubr.f32.vlgmr.msra.gmra.mxu1 %v592_v34  ;;  %3275 = vmatprep.subr.mxu0 %v5787_v63 }
 0x33a   :  { %3239 = vmatpush3.msra.mxu1 %v4306_v7  ;;  %3270 = vmatprep.mubr.msk.f32.mxu1 %vm4189_vm4, %v5787_v63  ;;  %v5788_v7 = vld [vmem:[#allocation15_spill] sm:$0xff] }
 0x33b   :  { %3240 = vmatprep.subr.mxu1 %v5787_v63  ;;  %3276 = vmatpush3.msra.mxu0 %v4444_v35 }
 0x33c   :  { %3241 = vmatpush3.msra.mxu1 %v4311_v8  ;;  %3277 = vmatprep.subr.mxu0 %v5787_v63  ;;  %v5789_v8 = vld [vmem:[#allocation13_spill] sm:$0xff] }
 0x33d   :  { %3242 = vmatprep.subr.mxu1 %v5787_v63  ;;  %3278 = vmatpush3.msra.mxu0 %v4449_v36 }
 0x33e   :  { %3243 = vmatpush3.msra.mxu1 %v4318_v9  ;;  %3279 = vmatprep.subr.mxu0 %v5787_v63  ;;  %v5790_v9 = vld [vmem:[#allocation16_spill] sm:$0xff] }
 0x33f   :  { %3244 = vmatprep.subr.mxu1 %v5787_v63  ;;  %3280 = vmatpush3.msra.mxu0 %v4453_v37 }
 0x340   :  { %3245 = vmatpush3.msra.mxu1 %v4335_v17  ;;  %3281 = vmatprep.subr.mxu0 %v5787_v63  ;;  %v5791_v17 = vld [vmem:[#allocation14_spill] sm:$0xff] }
 0x341   :  { %3246 = vmatprep.subr.mxu1 %v5787_v63  ;;  %3282 = vmatpush3.msra.mxu0 %v4457_v38 }
 0x342   :  { %3247 = vmatpush3.msra.mxu1 %v4342_v18  ;;  %3283 = vmatprep.subr.mxu0 %v5787_v63  ;;  %v5792_v18 = vld [vmem:[#allocation18_spill] sm:$0xff] }
 0x343   :  { %3248 = vmatprep.subr.mxu1 %v5787_v63  ;;  %3284 = vmatpush3.msra.mxu0 %v4461_v39 }
 0x344   :  { %3249 = vmatpush3.msra.mxu1 %v4349_v19  ;;  %3285 = vmatprep.subr.mxu0 %v5787_v63  ;;  %v217_v19 = vadd.f32 %v4329_v11, %v5792_v18 }
 0x345   :  { %3250 = vmatprep.subr.mxu1 %v5787_v63  ;;  %3286 = vmatpush3.msra.mxu0 %v4465_v40 }
 0x346   :  { %3251 = vmatpush3.msra.mxu1 %v4356_v20  ;;  %3287 = vmatprep.subr.mxu0 %v5787_v63 }
 0x347   :  { %3252 = vmatprep.subr.mxu1 %v5787_v63  ;;  %3288 = vmatpush3.msra.mxu0 %v4469_v41 }
 0x348   :  { %3253 = vmatpush3.msra.mxu1 %v4365_v21  ;;  %3289 = vmatprep.subr.mxu0 %v5787_v63 }
 0x349   :  { %3254 = vmatprep.subr.mxu1 %v5787_v63  ;;  %3290 = vmatpush3.msra.mxu0 %v4473_v42 }
 0x34a   :  { %3255 = vmatpush3.msra.mxu1 %v4376_v23  ;;  %3291 = vmatprep.subr.mxu0 %v5787_v63 }
 0x34b   :  { %3256 = vmatprep.subr.mxu1 %v5787_v63  ;;  %3292 = vmatpush3.msra.mxu0 %v4480_v44 }
 0x34c   :  { %3257 = vmatpush3.msra.mxu1 %v4382_v25  ;;  %3293 = vmatprep.subr.mxu0 %v5787_v63 }
 0x34d   :  { %3258 = vmatprep.subr.mxu1 %v5787_v63  ;;  %3294 = vmatpush3.msra.mxu0 %v4489_v46 }
 0x34e   :  { %3259 = vmatpush3.msra.mxu1 %v4395_v28  ;;  %3295 = vmatprep.subr.mxu0 %v5787_v63 }
 0x34f   :  { %3260 = vmatprep.subr.mxu1 %v5787_v63  ;;  %3296 = vmatpush3.msra.mxu0 %v4496_v48 }
 0x350   :  { %3261 = vmatpush3.msra.mxu1 %v4407_v30  ;;  %3297 = vmatprep.subr.mxu0 %v5787_v63 }
 0x351   :  { %3262 = vmatprep.subr.mxu1 %v5787_v63  ;;  %3298 = vmatpush3.msra.mxu0 %v4505_v50 }
 0x352   :  { %3263 = vmatpush3.msra.mxu1 %v4416_v31  ;;  %3299 = vmatprep.subr.mxu0 %v5787_v63 }
 0x353   :  { %3264 = vmatprep.subr.mxu1 %v5787_v63  ;;  %3300 = vmatpush3.msra.mxu0 %v4512_v52 }
 0x354   :  { %3265 = vmatpush3.msra.mxu1 %v4425_v32  ;;  %3301 = vmatprep.subr.mxu0 %v5787_v63 }
 0x355   :  { %3266 = vmatprep.subr.mxu1 %v5787_v63  ;;  %3302 = vmatpush3.msra.mxu0 %v5788_v7 }
 0x356   :  { %3267 = vmatpush3.msra.mxu1 %v5789_v8  ;;  %3303 = vmatprep.subr.mxu0 %v5787_v63 }
 0x357   :  { %3268 = vmatprep.subr.mxu1 %v5787_v63  ;;  %3304 = vmatpush3.msra.mxu0 %v5790_v9 }
 0x358   :  { %3269 = vmatpush3.msra.mxu1 %v5791_v17  ;;  %3343 = vmatprep.subr.mxu0 %v5787_v63 }
 0x359   :  { %3308 = vmatprep.subr.mxu1 %v5787_v63 }
 0x3d7   :  { %v683_v20 = vpop.f32.mrf.mxu0 }
 0x3d8   :  { %v687_v21 = vadd.f32 %v683_v20, %v217_v19 }
 0x3d9   :  { %v3167_v23 = vpop.f32.mrf.mxu0 }
 0x3da   :  { %v2564_v25 = vmul.f32 -1.442695, %v687_v21 }
 0x3dc   :  { %3938 = vpow2.f32 %v2564_v25 }
 0x3dd   :  { %3940 = vtanh.f32 %v687_v21 }
 0x3e9   :  { %v3939_v28 = vpop.eup %3938 }
 0x3ea   :  { %v855_v30 = vadd.f32 1.0, %v3939_v28  ;;  %v3941_v32 = vpop.eup %3940 }
 0x3ec   :  { %3942 = vrcp.f32 %v855_v30 }
 0x3f7   :  { %v824_v31 = vpop.f32.mrf.mxu0 }
 0x3f9   :  { %v3943_v55 = vpop.eup %3942  ;;  %v754_v62 = vpop.f32.mrf.mxu1 }
 0x3fa   :  { %v3237_v12 = vpop.f32.mrf.mxu0  ;;  %v825_v4 = vadd.f32 %v824_v31, %v754_v62  ;;  %v858_v0 = vsel %vm4368_vm3, %v3941_v32, %v3943_v55 }
 0x3fb   :  { %v3202_v1 = vpop.f32.mrf.mxu1  ;;  %859 = vrot.lane.b32.xlu0 %v858_v0, %s4188_s1  ;;  %861 = vrot.lane.b32.xlu1 %v858_v0, %s4190_s18 }
 0x3fc   :  { %v828_v11 = vadd.f32 %v4701_v2, %v825_v4 }
 0x3fe   :  { %v2563_v6 = vmul.f32 -1.442695, %v828_v11 }
 0x3ff   :  { %865 = vrot.lane.b32.xlu0 %v858_v0, %s4191_s23 }
 0x400   :  { %3944 = vpow2.f32 %v2563_v6 }
 0x401   :  { %3946 = vtanh.f32 %v828_v11 }
 0x40d   :  { %v3945_v13 = vpop.eup %3944 }
 0x40e   :  { %v833_v15 = vadd.f32 1.0, %v3945_v13  ;;  %v3947_v54 = vpop.eup %3946  ;;  %v4907_v13 = vld [vmem:[%s5747_s2 + $0x78] sm:$0xff] }
 0x410   :  { %3948 = vrcp.f32 %v833_v15  ;;  %v5797_v15 = vld [vmem:[#allocation17_spill] sm:$0xff] }
 0x41d   :  { %v3949_v10 = vpop.eup %3948 }
 0x41e   :  { %v836_v34 = vsel %vm4368_vm3, %v3947_v54, %v3949_v10 }
 0x41f   :  { %839 = vrot.lane.b32.xlu0 %v836_v34, %s4190_s18  ;;  %837 = vrot.lane.b32.xlu1 %v836_v34, %s4188_s1 }
 0x423   :  { %843 = vrot.lane.b32.xlu1 %v836_v34, %s4191_s23 }
 0x46d   :  { %v860_v8 = vpop.permute.xlu0 %859  ;;  %v862_v17 = vpop.permute.xlu1 %861 }
 0x46e   :  { %v863_v18 = vsel %vm4567_vm5, %v860_v8, %v862_v17  ;;  %v864_v30 = vsel %vm4567_vm5, %v862_v17, %v860_v8 }
 0x46f   :  { %v867_v20 = vmul.f32 %v863_v18, %v4718_v33 }
 0x471   :  { %v866_v19 = vpop.permute.xlu0 %865 }
 0x472   :  { %v868_v21 = vmul.f32 %v866_v19, %v858_v0 }
 0x474   :  { %v869_v23 = vadd.f32 %v868_v21, %v867_v20 }
 0x476   :  { %v4850_v25 = vmul.f32 %v4576_v3, %v869_v23 }
 0x478   :  { %3950 = vtanh.f32 %v4850_v25 }
 0x485   :  { %v3951_v28 = vpop.eup %3950 }
 0x486   :  { %v872_v31 = vmul.f32 %v3951_v28, %v864_v30 }
 0x488   :  { %3271 = vmatmul.mubr.f32.vlgmr.msra.gmra.mxu1 %v872_v31 }
 0x489   :  { %3309 = vmatpush3.msra.mxu1 %v4584_v16  ;;  %3340 = vmatprep.mubr.msk.f32.mxu1 %vm4189_vm4, %v5787_v63 }
 0x48a   :  { %3310 = vmatprep.subr.mxu1 %v5787_v63 }
 0x48b   :  { %3311 = vmatpush3.msra.mxu1 %v4586_v5 }
 0x48c   :  { %3312 = vmatprep.subr.mxu1 %v5787_v63 }
 0x48d   :  { %3313 = vmatpush3.msra.mxu1 %v4592_v24 }
 0x48e   :  { %3314 = vmatprep.subr.mxu1 %v5787_v63 }
 0x48f   :  { %3315 = vmatpush3.msra.mxu1 %v4596_v26 }
 0x490   :  { %3316 = vmatprep.subr.mxu1 %v5787_v63 }
 0x491   :  { %3317 = vmatpush3.msra.mxu1 %v4600_v27  ;;  %v840_v33 = vpop.permute.xlu0 %839  ;;  %v838_v32 = vpop.permute.xlu1 %837 }
 0x492   :  { %3318 = vmatprep.subr.mxu1 %v5787_v63  ;;  %v841_v55 = vsel %vm4567_vm5, %v838_v32, %v840_v33  ;;  %v842_v11 = vsel %vm4567_vm5, %v840_v33, %v838_v32 }
 0x493   :  { %3319 = vmatpush3.msra.mxu1 %v4604_v43  ;;  %v845_v12 = vmul.f32 %v841_v55, %v4743_v14 }
 0x494   :  { %3320 = vmatprep.subr.mxu1 %v5787_v63 }
 0x495   :  { %3321 = vmatpush3.msra.mxu1 %v4608_v45  ;;  %v844_v62 = vpop.permute.xlu1 %843 }
 0x496   :  { %v846_v4 = vmul.f32 %v844_v62, %v836_v34  ;;  %3322 = vmatprep.subr.mxu1 %v5787_v63 }
 0x497   :  { %3323 = vmatpush3.msra.mxu1 %v4612_v47 }
 0x498   :  { %v847_v0 = vadd.f32 %v846_v4, %v845_v12  ;;  %3324 = vmatprep.subr.mxu1 %v5787_v63 }
 0x499   :  { %3325 = vmatpush3.msra.mxu1 %v4616_v49 }
 0x49a   :  { %v4878_v1 = vmul.f32 %v4576_v3, %v847_v0  ;;  %3326 = vmatprep.subr.mxu1 %v5787_v63 }
 0x49b   :  { %3327 = vmatpush3.msra.mxu1 %v4620_v51 }
 0x49c   :  { %3952 = vtanh.f32 %v4878_v1  ;;  %3328 = vmatprep.subr.mxu1 %v5787_v63 }
 0x49d   :  { %3329 = vmatpush3.msra.mxu1 %v4624_v53 }
 0x49e   :  { %3330 = vmatprep.subr.mxu1 %v5787_v63 }
 0x49f   :  { %3331 = vmatpush3.msra.mxu1 %v4628_v56 }
 0x4a0   :  { %3332 = vmatprep.subr.mxu1 %v5787_v63 }
 0x4a1   :  { %3333 = vmatpush3.msra.mxu1 %v4632_v57 }
 0x4a2   :  { %3334 = vmatprep.subr.mxu1 %v5787_v63 }
 0x4a3   :  { %3335 = vmatpush3.msra.mxu1 %v4636_v58 }
 0x4a4   :  { %3336 = vmatprep.subr.mxu1 %v5787_v63 }
 0x4a5   :  { %3337 = vmatpush3.msra.mxu1 %v4640_v59 }
 0x4a6   :  { %3338 = vmatprep.subr.mxu1 %v5787_v63 }
 0x4a7   :  { %3339 = vmatpush3.msra.mxu1 %v4644_v61 }
 0x4a8   :  { %3341 = vmatmul.mubr.f32.vlgmr.msra.gmra.mxu1 %v872_v31  ;;  %3378 = vmatprep.subr.mxu1 %v5787_v63 }
 0x4a9   :  { %v3953_v14 = vpop.eup %3952  ;;  %3379 = vmatpush3.msra.mxu1 %v4397_v29  ;;  %3410 = vmatprep.mubr.msk.f32.mxu1 %vm4189_vm4, %v5787_v63  ;;  %v4917_v29 = vld [vmem:[%s5747_s2 + $0x70] sm:$0xff] }
 0x4aa   :  { %v850_v6 = vmul.f32 %v3953_v14, %v842_v11  ;;  %3380 = vmatprep.subr.mxu1 %v5787_v63 }
 0x4ab   :  { %3381 = vmatpush3.msra.mxu1 %v4444_v35  ;;  %v4926_v35 = vld [vmem:[%s5747_s2 + $0x68] sm:$0xff] }
 0x4ac   :  { %3306 = vmatmul.mubr.f32.vlgmr.msra.gmra.mxu0 %v850_v6  ;;  %3382 = vmatprep.subr.mxu1 %v5787_v63 }
 0x4ad   :  { %3344 = vmatpush3.msra.mxu0 %v4907_v13  ;;  %3375 = vmatprep.mubr.msk.f32.mxu0 %vm4189_vm4, %v5787_v63 }
 0x4ae   :  { %3345 = vmatprep.subr.mxu0 %v5787_v63  ;;  %3383 = vmatpush3.msra.mxu1 %v4449_v36  ;;  %v4935_v36 = vld [vmem:[%s5747_s2 + $0x60] sm:$0xff] }
 0x4af   :  { %3346 = vmatpush3.msra.mxu0 %v4917_v29  ;;  %3384 = vmatprep.subr.mxu1 %v5787_v63 }
 0x4b0   :  { %3347 = vmatprep.subr.mxu0 %v5787_v63  ;;  %3385 = vmatpush3.msra.mxu1 %v4453_v37  ;;  %v4944_v37 = vld [vmem:[%s5747_s2 + $0x58] sm:$0xff] }
 0x4b1   :  { %3348 = vmatpush3.msra.mxu0 %v4926_v35  ;;  %3386 = vmatprep.subr.mxu1 %v5787_v63 }
 0x4b2   :  { %3349 = vmatprep.subr.mxu0 %v5787_v63  ;;  %3387 = vmatpush3.msra.mxu1 %v4457_v38  ;;  %v4953_v38 = vld [vmem:[%s5747_s2 + $0x50] sm:$0xff] }
 0x4b3   :  { %3350 = vmatpush3.msra.mxu0 %v4935_v36  ;;  %3388 = vmatprep.subr.mxu1 %v5787_v63 }
 0x4b4   :  { %3351 = vmatprep.subr.mxu0 %v5787_v63  ;;  %3389 = vmatpush3.msra.mxu1 %v4461_v39  ;;  %v4962_v39 = vld [vmem:[%s5747_s2 + $0x48] sm:$0xff] }
 0x4b5   :  { %3352 = vmatpush3.msra.mxu0 %v4944_v37  ;;  %3390 = vmatprep.subr.mxu1 %v5787_v63 }
 0x4b6   :  { %3353 = vmatprep.subr.mxu0 %v5787_v63  ;;  %3391 = vmatpush3.msra.mxu1 %v4465_v40  ;;  %v4971_v40 = vld [vmem:[%s5747_s2 + $0x40] sm:$0xff] }
 0x4b7   :  { %3354 = vmatpush3.msra.mxu0 %v4953_v38  ;;  %3392 = vmatprep.subr.mxu1 %v5787_v63 }
 0x4b8   :  { %3355 = vmatprep.subr.mxu0 %v5787_v63  ;;  %3393 = vmatpush3.msra.mxu1 %v4469_v41  ;;  %v4980_v41 = vld [vmem:[%s5747_s2 + $0x38] sm:$0xff] }
 0x4b9   :  { %3356 = vmatpush3.msra.mxu0 %v4962_v39  ;;  %3394 = vmatprep.subr.mxu1 %v5787_v63 }
 0x4ba   :  { %3357 = vmatprep.subr.mxu0 %v5787_v63  ;;  %3395 = vmatpush3.msra.mxu1 %v4473_v42  ;;  %v4989_v42 = vld [vmem:[%s5747_s2 + $0x30] sm:$0xff] }
 0x4bb   :  { %3358 = vmatpush3.msra.mxu0 %v4971_v40  ;;  %3396 = vmatprep.subr.mxu1 %v5787_v63 }
 0x4bc   :  { %3359 = vmatprep.subr.mxu0 %v5787_v63  ;;  %3397 = vmatpush3.msra.mxu1 %v4480_v44  ;;  %v4998_v44 = vld [vmem:[%s5747_s2 + $0x28] sm:$0xff] }
 0x4bd   :  { %3360 = vmatpush3.msra.mxu0 %v4980_v41  ;;  %3398 = vmatprep.subr.mxu1 %v5787_v63 }
 0x4be   :  { %3361 = vmatprep.subr.mxu0 %v5787_v63  ;;  %3399 = vmatpush3.msra.mxu1 %v4489_v46  ;;  %v5007_v46 = vld [vmem:[%s5747_s2 + $0x20] sm:$0xff] }
 0x4bf   :  { %3362 = vmatpush3.msra.mxu0 %v4989_v42  ;;  %3400 = vmatprep.subr.mxu1 %v5787_v63 }
 0x4c0   :  { %3363 = vmatprep.subr.mxu0 %v5787_v63  ;;  %3401 = vmatpush3.msra.mxu1 %v4496_v48  ;;  %v5016_v48 = vld [vmem:[%s5747_s2 + $0x18] sm:$0xff] }
 0x4c1   :  { %3364 = vmatpush3.msra.mxu0 %v4998_v44  ;;  %3402 = vmatprep.subr.mxu1 %v5787_v63  ;;  %5793 = vst [vmem:[#allocation15_spill] sm:$0xff] %v5016_v48 }
 0x4c2   :  { %3365 = vmatprep.subr.mxu0 %v5787_v63  ;;  %3403 = vmatpush3.msra.mxu1 %v4505_v50  ;;  %v5025_v50 = vld [vmem:[%s5747_s2 + $0x10] sm:$0xff] }
 0x4c3   :  { %3366 = vmatpush3.msra.mxu0 %v5007_v46  ;;  %3404 = vmatprep.subr.mxu1 %v5787_v63  ;;  %5794 = vst [vmem:[#allocation13_spill] sm:$0xff] %v5025_v50 }
 0x4c4   :  { %3367 = vmatprep.subr.mxu0 %v5787_v63  ;;  %3405 = vmatpush3.msra.mxu1 %v4512_v52  ;;  %v5034_v52 = vld [vmem:[%s5747_s2 + $0x8] sm:$0xff] }
 0x4c5   :  { %3368 = vmatpush3.msra.mxu0 %v5016_v48  ;;  %3406 = vmatprep.subr.mxu1 %v5787_v63  ;;  %5795 = vst [vmem:[#allocation16_spill] sm:$0xff] %v5034_v52 }
 0x4c6   :  { %3369 = vmatprep.subr.mxu0 %v5787_v63  ;;  %3407 = vmatpush3.msra.mxu1 %v5788_v7  ;;  %v5042_v7 = vld [vmem:[%s5747_s2] sm:$0xff] }
 0x4c7   :  { %3370 = vmatpush3.msra.mxu0 %v5025_v50  ;;  %3408 = vmatprep.subr.mxu1 %v5787_v63  ;;  %5796 = vst [vmem:[#allocation14_spill] sm:$0xff] %v5042_v7 }
 0x4c8   :  { %3371 = vmatprep.subr.mxu0 %v5787_v63  ;;  %3409 = vmatpush3.msra.mxu1 %v5790_v9  ;;  %v5049_v9 = vld [vmem:[%s5748_s3] ss:$0 sm:$0xff] }
 0x4c9   :  { %3372 = vmatpush3.msra.mxu0 %v5034_v52  ;;  %3448 = vmatprep.subr.mxu1 %v5787_v63  ;;  %v222_v54 = vadd.f32 %v5049_v9, %v5797_v15 }
 0x4ca   :  { %3373 = vmatprep.subr.mxu0 %v5787_v63 }
 0x4cb   :  { %3374 = vmatpush3.msra.mxu0 %v5042_v7 }
 0x4cc   :  { %3413 = vmatprep.subr.mxu0 %v5787_v63 }
 0x548   :  { %v941_v10 = vpop.f32.mrf.mxu1 }
 0x549   :  { %v945_v34 = vadd.f32 %v941_v10, %v222_v54 }
 0x54a   :  { %v3272_v8 = vpop.f32.mrf.mxu1 }
 0x54b   :  { %v2566_v17 = vmul.f32 -1.442695, %v945_v34 }
 0x54d   :  { %3954 = vpow2.f32 %v2566_v17 }
 0x54e   :  { %3956 = vtanh.f32 %v945_v34 }
 0x55a   :  { %v3955_v18 = vpop.eup %3954 }
 0x55b   :  { %v1113_v19 = vadd.f32 1.0, %v3955_v18  ;;  %v3957_v21 = vpop.eup %3956 }
 0x55d   :  { %3958 = vrcp.f32 %v1113_v19 }
 0x568   :  { %v1082_v20 = vpop.f32.mrf.mxu1 }
 0x56a   :  { %v3959_v23 = vpop.eup %3958  ;;  %v3342_v28 = vpop.f32.mrf.mxu1 }
 0x56b   :  { %v1116_v30 = vsel %vm4368_vm3, %v3957_v21, %v3959_v23  ;;  %v5164_v28 = vld [vmem:[#allocation5 + $0x38] sm:$0xff] }
 0x56c   :  { %v1012_v31 = vpop.f32.mrf.mxu0  ;;  %1119 = vrot.lane.b32.xlu1 %v1116_v30, %s4190_s18  ;;  %1117 = vrot.lane.b32.xlu0 %v1116_v30, %s4188_s1 }
 0x56d   :  { %v1083_v33 = vadd.f32 %v1082_v20, %v1012_v31  ;;  %v5176_v31 = vld [vmem:[#allocation5 + $0x28] sm:$0xff] }
 0x56e   :  { %v3307_v32 = vpop.f32.mrf.mxu0 }
 0x56f   :  { %v1086_v55 = vadd.f32 %v4701_v2, %v1083_v33  ;;  %v5182_v33 = vld [vmem:[#allocation5 + $0x20] sm:$0xff]  ;;  %v5188_v32 = vld [vmem:[#allocation5 + $0x18] sm:$0xff] }
 0x570   :  { %1123 = vrot.lane.b32.xlu0 %v1116_v30, %s4191_s23 }
 0x571   :  { %v2565_v62 = vmul.f32 -1.442695, %v1086_v55 }
 0x573   :  { %3960 = vpow2.f32 %v2565_v62  ;;  %v5200_v62 = vld [vmem:[#allocation5 + $0x8] sm:$0xff] }
 0x574   :  { %3962 = vtanh.f32 %v1086_v55  ;;  %v5194_v55 = vld [vmem:[#allocation5 + $0x10] sm:$0xff] }
 0x580   :  { %v3961_v12 = vpop.eup %3960 }
 0x581   :  { %v1091_v4 = vadd.f32 1.0, %v3961_v12  ;;  %v3963_v0 = vpop.eup %3962  ;;  %v5206_v12 = vld [vmem:[#allocation5] sm:$0xff] }
 0x583   :  { %3964 = vrcp.f32 %v1091_v4  ;;  %v5798_v4 = vld [vmem:[#allocation20_spill] sm:$0xff] }
 0x590   :  { %v3965_v14 = vpop.eup %3964 }
 0x591   :  { %v1094_v11 = vsel %vm4368_vm3, %v3963_v0, %v3965_v14  ;;  %v227_v0 = vadd.f32 %v5049_v9, %v5798_v4 }
 0x592   :  { %1097 = vrot.lane.b32.xlu0 %v1094_v11, %s4190_s18  ;;  %1095 = vrot.lane.b32.xlu1 %v1094_v11, %s4188_s1 }
 0x596   :  { %1101 = vrot.lane.b32.xlu1 %v1094_v11, %s4191_s23 }
 0x5de   :  { %v1120_v6 = vpop.permute.xlu1 %1119  ;;  %v1118_v15 = vpop.permute.xlu0 %1117 }
 0x5df   :  { %v1121_v54 = vsel %vm4567_vm5, %v1118_v15, %v1120_v6  ;;  %v1122_v20 = vsel %vm4567_vm5, %v1120_v6, %v1118_v15 }
 0x5e0   :  { %v1125_v34 = vmul.f32 %v1121_v54, %v4850_v25 }
 0x5e2   :  { %v1124_v10 = vpop.permute.xlu0 %1123 }
 0x5e3   :  { %v1126_v8 = vmul.f32 %v1124_v10, %v1116_v30  ;;  %v5170_v30 = vld [vmem:[#allocation5 + $0x30] sm:$0xff] }
 0x5e5   :  { %v1127_v17 = vadd.f32 %v1126_v8, %v1125_v34 }
 0x5e7   :  { %v5068_v18 = vmul.f32 %v4576_v3, %v1127_v17 }
 0x5e9   :  { %3966 = vtanh.f32 %v5068_v18 }
 0x5f6   :  { %v3967_v19 = vpop.eup %3966 }
 0x5f7   :  { %v1130_v21 = vmul.f32 %v3967_v19, %v1122_v20 }
 0x5f9   :  { %3376 = vmatmul.mubr.f32.vlgmr.msra.gmra.mxu0 %v1130_v21 }
 0x5fa   :  { %3414 = vmatpush3.msra.mxu0 %v4584_v16  ;;  %3445 = vmatprep.mubr.msk.f32.mxu0 %vm4189_vm4, %v5787_v63 }
 0x5fb   :  { %3415 = vmatprep.subr.mxu0 %v5787_v63 }
 0x5fc   :  { %3416 = vmatpush3.msra.mxu0 %v4586_v5 }
 0x5fd   :  { %3417 = vmatprep.subr.mxu0 %v5787_v63 }
 0x5fe   :  { %3418 = vmatpush3.msra.mxu0 %v4592_v24 }
 0x5ff   :  { %3419 = vmatprep.subr.mxu0 %v5787_v63 }
 0x600   :  { %3420 = vmatpush3.msra.mxu0 %v4596_v26 }
 0x601   :  { %3421 = vmatprep.subr.mxu0 %v5787_v63 }
 0x602   :  { %3422 = vmatpush3.msra.mxu0 %v4600_v27 }
 0x603   :  { %3423 = vmatprep.subr.mxu0 %v5787_v63 }
 0x604   :  { %3424 = vmatpush3.msra.mxu0 %v4604_v43  ;;  %v1098_v16 = vpop.permute.xlu0 %1097  ;;  %v1096_v25 = vpop.permute.xlu1 %1095 }
 0x605   :  { %3425 = vmatprep.subr.mxu0 %v5787_v63  ;;  %v1099_v5 = vsel %vm4567_vm5, %v1096_v25, %v1098_v16 }
 0x606   :  { %3426 = vmatpush3.msra.mxu0 %v4608_v45  ;;  %v1103_v26 = vmul.f32 %v1099_v5, %v4878_v1  ;;  %v5114_v45 = vld [vmem:[#allocation5 + $0x78] sm:$0xff]  ;;  %v5158_v1 = vld [vmem:[#allocation5 + $0x40] sm:$0xff] }
 0x607   :  { %3427 = vmatprep.subr.mxu0 %v5787_v63 }
 0x608   :  { %3428 = vmatpush3.msra.mxu0 %v4612_v47  ;;  %v1102_v24 = vpop.permute.xlu1 %1101 }
 0x609   :  { %v1104_v27 = vmul.f32 %v1102_v24, %v1094_v11  ;;  %3429 = vmatprep.subr.mxu0 %v5787_v63 }
 0x60a   :  { %3430 = vmatpush3.msra.mxu0 %v4616_v49  ;;  %v1100_v49 = vsel %vm4567_vm5, %v1098_v16, %v1096_v25 }
 0x60b   :  { %v1105_v43 = vadd.f32 %v1104_v27, %v1103_v26  ;;  %3431 = vmatprep.subr.mxu0 %v5787_v63 }
 0x60c   :  { %3432 = vmatpush3.msra.mxu0 %v4620_v51  ;;  %v5122_v51 = vld [vmem:[#allocation5 + $0x70] sm:$0xff] }
 0x60d   :  { %v5098_v23 = vmul.f32 %v4576_v3, %v1105_v43  ;;  %3433 = vmatprep.subr.mxu0 %v5787_v63 }
 0x60e   :  { %3434 = vmatpush3.msra.mxu0 %v4624_v53 }
 0x60f   :  { %3968 = vtanh.f32 %v5098_v23  ;;  %3435 = vmatprep.subr.mxu0 %v5787_v63 }
 0x610   :  { %3436 = vmatpush3.msra.mxu0 %v4628_v56  ;;  %v5126_v56 = vld [vmem:[#allocation5 + $0x68] sm:$0xff] }
 0x611   :  { %3437 = vmatprep.subr.mxu0 %v5787_v63 }
 0x612   :  { %3438 = vmatpush3.msra.mxu0 %v4632_v57  ;;  %v5134_v57 = vld [vmem:[#allocation5 + $0x60] sm:$0xff] }
 0x613   :  { %3439 = vmatprep.subr.mxu0 %v5787_v63 }
 0x614   :  { %3440 = vmatpush3.msra.mxu0 %v4636_v58  ;;  %v5140_v58 = vld [vmem:[#allocation5 + $0x58] sm:$0xff] }
 0x615   :  { %3441 = vmatprep.subr.mxu0 %v5787_v63 }
 0x616   :  { %3442 = vmatpush3.msra.mxu0 %v4640_v59  ;;  %v5146_v59 = vld [vmem:[#allocation5 + $0x50] sm:$0xff] }
 0x617   :  { %3443 = vmatprep.subr.mxu0 %v5787_v63 }
 0x618   :  { %3444 = vmatpush3.msra.mxu0 %v4644_v61  ;;  %v5152_v61 = vld [vmem:[#allocation5 + $0x48] sm:$0xff] }
 0x619   :  { %3446 = vmatmul.mubr.f32.vlgmr.msra.gmra.mxu0 %v1130_v21  ;;  %3483 = vmatprep.subr.mxu0 %v5787_v63 }
 0x61a   :  { %3484 = vmatpush3.msra.mxu0 %v5114_v45  ;;  %3515 = vmatprep.mubr.msk.f32.mxu0 %vm4189_vm4, %v5787_v63 }
 0x61b   :  { %3485 = vmatprep.subr.mxu0 %v5787_v63 }
 0x61c   :  { %v3969_v47 = vpop.eup %3968  ;;  %3486 = vmatpush3.msra.mxu0 %v5122_v51 }
 0x61d   :  { %v1108_v53 = vmul.f32 %v3969_v47, %v1100_v49  ;;  %3487 = vmatprep.subr.mxu0 %v5787_v63 }
 0x61e   :  { %3488 = vmatpush3.msra.mxu0 %v5126_v56 }
 0x61f   :  { %3411 = vmatmul.mubr.f32.vlgmr.msra.gmra.mxu1 %v1108_v53  ;;  %3489 = vmatprep.subr.mxu0 %v5787_v63 }
 0x620   :  { %3449 = vmatpush3.msra.mxu1 %v4907_v13  ;;  %3480 = vmatprep.mubr.msk.f32.mxu1 %vm4189_vm4, %v5787_v63 }
 0x621   :  { %3450 = vmatprep.subr.mxu1 %v5787_v63  ;;  %3490 = vmatpush3.msra.mxu0 %v5134_v57 }
 0x622   :  { %3451 = vmatpush3.msra.mxu1 %v4917_v29  ;;  %3491 = vmatprep.subr.mxu0 %v5787_v63 }
 0x623   :  { %3452 = vmatprep.subr.mxu1 %v5787_v63  ;;  %3492 = vmatpush3.msra.mxu0 %v5140_v58 }
 0x624   :  { %3453 = vmatpush3.msra.mxu1 %v4926_v35  ;;  %3493 = vmatprep.subr.mxu0 %v5787_v63 }
 0x625   :  { %3454 = vmatprep.subr.mxu1 %v5787_v63  ;;  %3494 = vmatpush3.msra.mxu0 %v5146_v59 }
 0x626   :  { %3455 = vmatpush3.msra.mxu1 %v4935_v36  ;;  %3495 = vmatprep.subr.mxu0 %v5787_v63 }
 0x627   :  { %3456 = vmatprep.subr.mxu1 %v5787_v63  ;;  %3496 = vmatpush3.msra.mxu0 %v5152_v61 }
 0x628   :  { %3457 = vmatpush3.msra.mxu1 %v4944_v37  ;;  %3497 = vmatprep.subr.mxu0 %v5787_v63 }
 0x629   :  { %3458 = vmatprep.subr.mxu1 %v5787_v63  ;;  %3498 = vmatpush3.msra.mxu0 %v5158_v1 }
 0x62a   :  { %3459 = vmatpush3.msra.mxu1 %v4953_v38  ;;  %3499 = vmatprep.subr.mxu0 %v5787_v63 }
 0x62b   :  { %3460 = vmatprep.subr.mxu1 %v5787_v63  ;;  %3500 = vmatpush3.msra.mxu0 %v5164_v28 }
 0x62c   :  { %3461 = vmatpush3.msra.mxu1 %v4962_v39  ;;  %3501 = vmatprep.subr.mxu0 %v5787_v63 }
 0x62d   :  { %3462 = vmatprep.subr.mxu1 %v5787_v63  ;;  %3502 = vmatpush3.msra.mxu0 %v5170_v30 }
 0x62e   :  { %3463 = vmatpush3.msra.mxu1 %v4971_v40  ;;  %3503 = vmatprep.subr.mxu0 %v5787_v63 }
 0x62f   :  { %3464 = vmatprep.subr.mxu1 %v5787_v63  ;;  %3504 = vmatpush3.msra.mxu0 %v5176_v31 }
 0x630   :  { %3465 = vmatpush3.msra.mxu1 %v4980_v41  ;;  %3505 = vmatprep.subr.mxu0 %v5787_v63 }
 0x631   :  { %3466 = vmatprep.subr.mxu1 %v5787_v63  ;;  %3506 = vmatpush3.msra.mxu0 %v5182_v33 }
 0x632   :  { %3467 = vmatpush3.msra.mxu1 %v4989_v42  ;;  %3507 = vmatprep.subr.mxu0 %v5787_v63 }
 0x633   :  { %3468 = vmatprep.subr.mxu1 %v5787_v63  ;;  %3508 = vmatpush3.msra.mxu0 %v5188_v32 }
 0x634   :  { %3469 = vmatpush3.msra.mxu1 %v4998_v44  ;;  %3509 = vmatprep.subr.mxu0 %v5787_v63 }
 0x635   :  { %3470 = vmatprep.subr.mxu1 %v5787_v63  ;;  %3510 = vmatpush3.msra.mxu0 %v5194_v55 }
 0x636   :  { %3471 = vmatpush3.msra.mxu1 %v5007_v46  ;;  %3511 = vmatprep.subr.mxu0 %v5787_v63 }
 0x637   :  { %3472 = vmatprep.subr.mxu1 %v5787_v63  ;;  %3512 = vmatpush3.msra.mxu0 %v5200_v62 }
 0x638   :  { %3473 = vmatpush3.msra.mxu1 %v5016_v48  ;;  %3513 = vmatprep.subr.mxu0 %v5787_v63 }
 0x639   :  { %3474 = vmatprep.subr.mxu1 %v5787_v63  ;;  %3514 = vmatpush3.msra.mxu0 %v5206_v12 }
 0x63a   :  { %3475 = vmatpush3.msra.mxu1 %v5025_v50  ;;  %3553 = vmatprep.subr.mxu0 %v5787_v63 }
 0x63b   :  { %3476 = vmatprep.subr.mxu1 %v5787_v63 }
 0x63c   :  { %3477 = vmatpush3.msra.mxu1 %v5034_v52 }
 0x63d   :  { %3478 = vmatprep.subr.mxu1 %v5787_v63 }
 0x63e   :  { %3479 = vmatpush3.msra.mxu1 %v5042_v7 }
 0x63f   :  { %3518 = vmatprep.subr.mxu1 %v5787_v63 }
 0x6b9   :  { %v1199_v14 = vpop.f32.mrf.mxu0 }
 0x6ba   :  { %v1203_v11 = vadd.f32 %v1199_v14, %v227_v0 }
 0x6bb   :  { %v3377_v6 = vpop.f32.mrf.mxu0 }
 0x6bc   :  { %v2568_v15 = vmul.f32 -1.442695, %v1203_v11 }
 0x6be   :  { %3970 = vpow2.f32 %v2568_v15 }
 0x6bf   :  { %3972 = vtanh.f32 %v1203_v11 }
 0x6cb   :  { %v3971_v54 = vpop.eup %3970 }
 0x6cc   :  { %v1371_v10 = vadd.f32 1.0, %v3971_v54  ;;  %v3973_v8 = vpop.eup %3972 }
 0x6ce   :  { %3974 = vrcp.f32 %v1371_v10 }
 0x6d9   :  { %v1340_v34 = vpop.f32.mrf.mxu0 }
 0x6db   :  { %v3975_v17 = vpop.eup %3974  ;;  %v3447_v19 = vpop.f32.mrf.mxu0 }
 0x6dc   :  { %v1374_v20 = vsel %vm4368_vm3, %v3973_v8, %v3975_v17  ;;  %v5238_v8 = vld [vmem:[#allocation3 + $0x78] sm:$0xff]  ;;  %v5248_v17 = vld [vmem:[#allocation3 + $0x68] sm:$0xff]  ;;  %v5252_v19 = vld [vmem:[#allocation3 + $0x60] sm:$0xff] }
 0x6dd   :  { %1375 = vrot.lane.b32.xlu0 %v1374_v20, %s4188_s1  ;;  %1377 = vrot.lane.b32.xlu1 %v1374_v20, %s4190_s18 }
 0x6df   :  { %v1270_v21 = vpop.f32.mrf.mxu1 }
 0x6e0   :  { %v1341_v16 = vadd.f32 %v1340_v34, %v1270_v21  ;;  %v5260_v21 = vld [vmem:[#allocation3 + $0x50] sm:$0xff] }
 0x6e1   :  { %v3412_v25 = vpop.f32.mrf.mxu1  ;;  %1381 = vrot.lane.b32.xlu0 %v1374_v20, %s4191_s23 }
 0x6e2   :  { %v1344_v5 = vadd.f32 %v4701_v2, %v1341_v16  ;;  %v5264_v16 = vld [vmem:[#allocation3 + $0x48] sm:$0xff] }
 0x6e4   :  { %v2567_v24 = vmul.f32 -1.442695, %v1344_v5 }
 0x6e6   :  { %3976 = vpow2.f32 %v2567_v24 }
 0x6e7   :  { %3978 = vtanh.f32 %v1344_v5 }
 0x6f3   :  { %v3977_v26 = vpop.eup %3976 }
 0x6f4   :  { %v1349_v27 = vadd.f32 1.0, %v3977_v26  ;;  %v3979_v43 = vpop.eup %3978  ;;  %v5270_v26 = vld [vmem:[#allocation3 + $0x40] sm:$0xff] }
 0x6f6   :  { %3980 = vrcp.f32 %v1349_v27  ;;  %v5274_v27 = vld [vmem:[#allocation3 + $0x38] sm:$0xff] }
 0x703   :  { %v3981_v47 = vpop.eup %3980 }
 0x704   :  { %v1352_v49 = vsel %vm4368_vm3, %v3979_v43, %v3981_v47 }
 0x705   :  { %1355 = vrot.lane.b32.xlu0 %v1352_v49, %s4190_s18  ;;  %1353 = vrot.lane.b32.xlu1 %v1352_v49, %s4188_s1 }
 0x709   :  { %1359 = vrot.lane.b32.xlu1 %v1352_v49, %s4191_s23 }
 0x74f   :  { %v1376_v53 = vpop.permute.xlu0 %1375  ;;  %v1378_v4 = vpop.permute.xlu1 %1377 }
 0x750   :  { %v1379_v2 = vsel %vm4567_vm5, %v1376_v53, %v1378_v4  ;;  %v1380_v10 = vsel %vm4567_vm5, %v1378_v4, %v1376_v53  ;;  %v5279_v4 = vld [vmem:[#allocation3 + $0x30] sm:$0xff] }
 0x751   :  { %v1383_v14 = vmul.f32 %v1379_v2, %v5068_v18  ;;  %v5244_v18 = vld [vmem:[#allocation3 + $0x70] sm:$0xff] }
 0x753   :  { %v1382_v0 = vpop.permute.xlu0 %1381 }
 0x754   :  { %v1384_v11 = vmul.f32 %v1382_v0, %v1374_v20  ;;  %v5256_v20 = vld [vmem:[#allocation3 + $0x58] sm:$0xff]  ;;  %v5283_v0 = vld [vmem:[#allocation3 + $0x28] sm:$0xff] }
 0x756   :  { %v1385_v6 = vadd.f32 %v1384_v11, %v1383_v14  ;;  %v5299_v11 = vld [vmem:[#allocation3 + $0x10] sm:$0xff] }
 0x758   :  { %v5233_v15 = vmul.f32 %v4576_v3, %v1385_v6  ;;  %v5303_v6 = vld [vmem:[#allocation3 + $0x8] sm:$0xff] }
 0x75a   :  { %3982 = vtanh.f32 %v5233_v15 }
 0x767   :  { %v3983_v54 = vpop.eup %3982 }
 0x768   :  { %v1388_v34 = vmul.f32 %v3983_v54, %v1380_v10  ;;  %v5307_v54 = vld [vmem:[#allocation3] sm:$0xff] }
 0x76a   :  { %3481 = vmatmul.mubr.f32.vlgmr.msra.gmra.mxu1 %v1388_v34 }
 0x76b   :  { %3519 = vmatpush3.msra.mxu1 %v5238_v8  ;;  %3550 = vmatprep.mubr.msk.f32.mxu1 %vm4189_vm4, %v5787_v63 }
 0x76c   :  { %3520 = vmatprep.subr.mxu1 %v5787_v63 }
 0x76d   :  { %3521 = vmatpush3.msra.mxu1 %v5244_v18 }
 0x76e   :  { %3522 = vmatprep.subr.mxu1 %v5787_v63 }
 0x76f   :  { %3523 = vmatpush3.msra.mxu1 %v5248_v17 }
 0x770   :  { %3524 = vmatprep.subr.mxu1 %v5787_v63 }
 0x771   :  { %3525 = vmatpush3.msra.mxu1 %v5252_v19 }
 0x772   :  { %3526 = vmatprep.subr.mxu1 %v5787_v63 }
 0x773   :  { %3527 = vmatpush3.msra.mxu1 %v5256_v20 }
 0x774   :  { %3528 = vmatprep.subr.mxu1 %v5787_v63 }
 0x775   :  { %3529 = vmatpush3.msra.mxu1 %v5260_v21 }
 0x776   :  { %3530 = vmatprep.subr.mxu1 %v5787_v63 }
 0x777   :  { %3531 = vmatpush3.msra.mxu1 %v5264_v16  ;;  %v1356_v25 = vpop.permute.xlu0 %1355  ;;  %v1354_v5 = vpop.permute.xlu1 %1353 }
 0x778   :  { %3532 = vmatprep.subr.mxu1 %v5787_v63  ;;  %v1357_v24 = vsel %vm4567_vm5, %v1354_v5, %v1356_v25 }
 0x779   :  { %3533 = vmatpush3.msra.mxu1 %v5270_v26  ;;  %v1361_v47 = vmul.f32 %v1357_v24, %v5098_v23  ;;  %v5290_v23 = vld [vmem:[#allocation3 + $0x20] sm:$0xff]  ;;  %v1358_v24 = vsel %vm4567_vm5, %v1356_v25, %v1354_v5  ;;  %v5799_v25 = vld [vmem:[#allocation19_spill] sm:$0xff] }
 0x77a   :  { %3534 = vmatprep.subr.mxu1 %v5787_v63  ;;  %v232_v5 = vadd.f32 %v5049_v9, %v5799_v25 }
 0x77b   :  { %3535 = vmatpush3.msra.mxu1 %v5274_v27  ;;  %v1360_v43 = vpop.permute.xlu1 %1359 }
 0x77c   :  { %v1362_v53 = vmul.f32 %v1360_v43, %v1352_v49  ;;  %3536 = vmatprep.subr.mxu1 %v5787_v63  ;;  %v5295_v49 = vld [vmem:[#allocation3 + $0x18] sm:$0xff] }
 0x77d   :  { %3537 = vmatpush3.msra.mxu1 %v5279_v4 }
 0x77e   :  { %v1363_v2 = vadd.f32 %v1362_v53, %v1361_v47  ;;  %3538 = vmatprep.subr.mxu1 %v5787_v63 }
 0x77f   :  { %3539 = vmatpush3.msra.mxu1 %v5283_v0 }
 0x780   :  { %v5287_v14 = vmul.f32 %v4576_v3, %v1363_v2  ;;  %3540 = vmatprep.subr.mxu1 %v5787_v63 }
 0x781   :  { %3541 = vmatpush3.msra.mxu1 %v5290_v23 }
 0x782   :  { %3984 = vtanh.f32 %v5287_v14  ;;  %3542 = vmatprep.subr.mxu1 %v5787_v63 }
 0x783   :  { %3543 = vmatpush3.msra.mxu1 %v5295_v49 }
 0x784   :  { %3544 = vmatprep.subr.mxu1 %v5787_v63 }
 0x785   :  { %3545 = vmatpush3.msra.mxu1 %v5299_v11 }
 0x786   :  { %3546 = vmatprep.subr.mxu1 %v5787_v63 }
 0x787   :  { %3547 = vmatpush3.msra.mxu1 %v5303_v6 }
 0x788   :  { %3548 = vmatprep.subr.mxu1 %v5787_v63 }
 0x789   :  { %3549 = vmatpush3.msra.mxu1 %v5307_v54 }
 0x78a   :  { %3551 = vmatmul.mubr.f32.vlgmr.msra.gmra.mxu1 %v1388_v34  ;;  %3588 = vmatprep.subr.mxu1 %v5787_v63 }
 0x78b   :  { %3589 = vmatpush3.msra.mxu1 %v5114_v45  ;;  %3620 = vmatprep.mubr.msk.f32.mxu1 %vm4189_vm4, %v5787_v63 }
 0x78c   :  { %3590 = vmatprep.subr.mxu1 %v5787_v63 }
 0x78d   :  { %3591 = vmatpush3.msra.mxu1 %v5122_v51 }
 0x78e   :  { %3592 = vmatprep.subr.mxu1 %v5787_v63 }
 0x78f   :  { %v3985_v10 = vpop.eup %3984  ;;  %3593 = vmatpush3.msra.mxu1 %v5126_v56 }
 0x790   :  { %v1366_v34 = vmul.f32 %v3985_v10, %v1358_v24  ;;  %3594 = vmatprep.subr.mxu1 %v5787_v63 }
 0x791   :  { %3595 = vmatpush3.msra.mxu1 %v5134_v57 }
 0x792   :  { %3516 = vmatmul.mubr.f32.vlgmr.msra.gmra.mxu0 %v1366_v34  ;;  %3596 = vmatprep.subr.mxu1 %v5787_v63 }
 0x793   :  { %3554 = vmatpush3.msra.mxu0 %v4907_v13  ;;  %3585 = vmatprep.mubr.msk.f32.mxu0 %vm4189_vm4, %v5787_v63 }
 0x794   :  { %3555 = vmatprep.subr.mxu0 %v5787_v63  ;;  %3597 = vmatpush3.msra.mxu1 %v5140_v58 }
 0x795   :  { %3556 = vmatpush3.msra.mxu0 %v4917_v29  ;;  %3598 = vmatprep.subr.mxu1 %v5787_v63 }
 0x796   :  { %3557 = vmatprep.subr.mxu0 %v5787_v63  ;;  %3599 = vmatpush3.msra.mxu1 %v5146_v59 }
 0x797   :  { %3558 = vmatpush3.msra.mxu0 %v4926_v35  ;;  %3600 = vmatprep.subr.mxu1 %v5787_v63 }
 0x798   :  { %3559 = vmatprep.subr.mxu0 %v5787_v63  ;;  %3601 = vmatpush3.msra.mxu1 %v5152_v61 }
 0x799   :  { %3560 = vmatpush3.msra.mxu0 %v4935_v36  ;;  %3602 = vmatprep.subr.mxu1 %v5787_v63 }
 0x79a   :  { %3561 = vmatprep.subr.mxu0 %v5787_v63  ;;  %3603 = vmatpush3.msra.mxu1 %v5158_v1 }
 0x79b   :  { %3562 = vmatpush3.msra.mxu0 %v4944_v37  ;;  %3604 = vmatprep.subr.mxu1 %v5787_v63 }
 0x79c   :  { %3563 = vmatprep.subr.mxu0 %v5787_v63  ;;  %3605 = vmatpush3.msra.mxu1 %v5164_v28 }
 0x79d   :  { %3564 = vmatpush3.msra.mxu0 %v4953_v38  ;;  %3606 = vmatprep.subr.mxu1 %v5787_v63 }
 0x79e   :  { %3565 = vmatprep.subr.mxu0 %v5787_v63  ;;  %3607 = vmatpush3.msra.mxu1 %v5170_v30 }
 0x79f   :  { %3566 = vmatpush3.msra.mxu0 %v4962_v39  ;;  %3608 = vmatprep.subr.mxu1 %v5787_v63 }
 0x7a0   :  { %3567 = vmatprep.subr.mxu0 %v5787_v63  ;;  %3609 = vmatpush3.msra.mxu1 %v5176_v31 }
 0x7a1   :  { %3568 = vmatpush3.msra.mxu0 %v4971_v40  ;;  %3610 = vmatprep.subr.mxu1 %v5787_v63 }
 0x7a2   :  { %3569 = vmatprep.subr.mxu0 %v5787_v63  ;;  %3611 = vmatpush3.msra.mxu1 %v5182_v33 }
 0x7a3   :  { %3570 = vmatpush3.msra.mxu0 %v4980_v41  ;;  %3612 = vmatprep.subr.mxu1 %v5787_v63 }
 0x7a4   :  { %3571 = vmatprep.subr.mxu0 %v5787_v63  ;;  %3613 = vmatpush3.msra.mxu1 %v5188_v32 }
 0x7a5   :  { %3572 = vmatpush3.msra.mxu0 %v4989_v42  ;;  %3614 = vmatprep.subr.mxu1 %v5787_v63 }
 0x7a6   :  { %3573 = vmatprep.subr.mxu0 %v5787_v63  ;;  %3615 = vmatpush3.msra.mxu1 %v5194_v55 }
 0x7a7   :  { %3574 = vmatpush3.msra.mxu0 %v4998_v44  ;;  %3616 = vmatprep.subr.mxu1 %v5787_v63 }
 0x7a8   :  { %3575 = vmatprep.subr.mxu0 %v5787_v63  ;;  %3617 = vmatpush3.msra.mxu1 %v5200_v62 }
 0x7a9   :  { %3576 = vmatpush3.msra.mxu0 %v5007_v46  ;;  %3618 = vmatprep.subr.mxu1 %v5787_v63 }
 0x7aa   :  { %3577 = vmatprep.subr.mxu0 %v5787_v63  ;;  %3619 = vmatpush3.msra.mxu1 %v5206_v12 }
 0x7ab   :  { %3578 = vmatpush3.msra.mxu0 %v5016_v48  ;;  %3658 = vmatprep.subr.mxu1 %v5787_v63 }
 0x7ac   :  { %3579 = vmatprep.subr.mxu0 %v5787_v63 }
 0x7ad   :  { %3580 = vmatpush3.msra.mxu0 %v5025_v50 }
 0x7ae   :  { %3581 = vmatprep.subr.mxu0 %v5787_v63 }
 0x7af   :  { %3582 = vmatpush3.msra.mxu0 %v5034_v52 }
 0x7b0   :  { %3583 = vmatprep.subr.mxu0 %v5787_v63 }
 0x7b1   :  { %3584 = vmatpush3.msra.mxu0 %v5042_v7 }
 0x7b2   :  { %3623 = vmatprep.subr.mxu0 %v5787_v63 }
 0x82a   :  { %v1457_v43 = vpop.f32.mrf.mxu1 }
 0x82b   :  { %v1461_v47 = vadd.f32 %v1457_v43, %v232_v5 }
 0x82c   :  { %v3482_v53 = vpop.f32.mrf.mxu1 }
 0x82d   :  { %v2570_v2 = vmul.f32 -1.442695, %v1461_v47 }
 0x82f   :  { %3986 = vpow2.f32 %v2570_v2 }
 0x830   :  { %3988 = vtanh.f32 %v1461_v47  ;;  %v5391_v47 = vld [vmem:[%s5751_s6] ss:$0 sm:$0xff] }
 0x831   :  { %5800 = vst [vmem:[#allocation18_spill] sm:$0xff] %v5391_v47 }
 0x83c   :  { %v3987_v10 = vpop.eup %3986 }
 0x83d   :  { %v1629_v24 = vadd.f32 1.0, %v3987_v10  ;;  %v3989_v52 = vpop.eup %3988 }
 0x83f   :  { %3990 = vrcp.f32 %v1629_v24 }
 0x84a   :  { %v1598_v34 = vpop.f32.mrf.mxu1 }
 0x84c   :  { %v3991_v50 = vpop.eup %3990  ;;  %v3552_v48 = vpop.f32.mrf.mxu1 }
 0x84d   :  { %v1632_v7 = vsel %vm4368_vm3, %v3989_v52, %v3991_v50 }
 0x84e   :  { %1635 = vrot.lane.b32.xlu1 %v1632_v7, %s4190_s18  ;;  %1633 = vrot.lane.b32.xlu0 %v1632_v7, %s4188_s1 }
 0x852   :  { %v1528_v25 = vpop.f32.mrf.mxu0  ;;  %1639 = vrot.lane.b32.xlu0 %v1632_v7, %s4191_s23 }
 0x853   :  { %v1599_v5 = vadd.f32 %v1598_v34, %v1528_v25 }
 0x854   :  { %v3517_v43 = vpop.f32.mrf.mxu0 }
 0x855   :  { %v1602_v53 = vadd.f32 %v5391_v47, %v1599_v5 }
 0x857   :  { %v2569_v48 = vmul.f32 -1.442695, %v1602_v53 }
 0x859   :  { %3992 = vpow2.f32 %v2569_v48 }
 0x85a   :  { %3994 = vtanh.f32 %v1602_v53 }
 0x866   :  { %v3993_v2 = vpop.eup %3992 }
 0x867   :  { %v1607_v50 = vadd.f32 1.0, %v3993_v2  ;;  %v3995_v52 = vpop.eup %3994 }
 0x869   :  { %3996 = vrcp.f32 %v1607_v50 }
 0x876   :  { %v3997_v10 = vpop.eup %3996 }
 0x877   :  { %v1610_v24 = vsel %vm4368_vm3, %v3995_v52, %v3997_v10 }
 0x878   :  { %1613 = vrot.lane.b32.xlu0 %v1610_v24, %s4190_s18  ;;  %1611 = vrot.lane.b32.xlu1 %v1610_v24, %s4188_s1 }
 0x87c   :  { %1617 = vrot.lane.b32.xlu1 %v1610_v24, %s4191_s23 }
 0x8c0   :  { %v1636_v34 = vpop.permute.xlu1 %1635  ;;  %v1634_v25 = vpop.permute.xlu0 %1633 }
 0x8c1   :  { %v1637_v5 = vsel %vm4567_vm5, %v1634_v25, %v1636_v34  ;;  %v1638_v10 = vsel %vm4567_vm5, %v1636_v34, %v1634_v25 }
 0x8c2   :  { %v1641_v53 = vmul.f32 %v1637_v5, %v5233_v15 }
 0x8c4   :  { %v1640_v43 = vpop.permute.xlu0 %1639 }
 0x8c5   :  { %v1642_v48 = vmul.f32 %v1640_v43, %v1632_v7 }
 0x8c7   :  { %v1643_v2 = vadd.f32 %v1642_v48, %v1641_v53 }
 0x8c9   :  { %v5403_v50 = vmul.f32 %v4576_v3, %v1643_v2 }
 0x8cb   :  { %3998 = vtanh.f32 %v5403_v50 }
 0x8d8   :  { %v3999_v52 = vpop.eup %3998 }
 0x8d9   :  { %v1646_v47 = vmul.f32 %v3999_v52, %v1638_v10 }
 0x8db   :  { %3586 = vmatmul.mubr.f32.vlgmr.msra.gmra.mxu0 %v1646_v47 }
 0x8dc   :  { %3624 = vmatpush3.msra.mxu0 %v5238_v8  ;;  %3655 = vmatprep.mubr.msk.f32.mxu0 %vm4189_vm4, %v5787_v63 }
 0x8dd   :  { %3625 = vmatprep.subr.mxu0 %v5787_v63 }
 0x8de   :  { %3626 = vmatpush3.msra.mxu0 %v5244_v18 }
 0x8df   :  { %3627 = vmatprep.subr.mxu0 %v5787_v63 }
 0x8e0   :  { %3628 = vmatpush3.msra.mxu0 %v5248_v17 }
 0x8e1   :  { %3629 = vmatprep.subr.mxu0 %v5787_v63 }
 0x8e2   :  { %3630 = vmatpush3.msra.mxu0 %v5252_v19 }
 0x8e3   :  { %3631 = vmatprep.subr.mxu0 %v5787_v63 }
 0x8e4   :  { %3632 = vmatpush3.msra.mxu0 %v5256_v20 }
 0x8e5   :  { %3633 = vmatprep.subr.mxu0 %v5787_v63 }
 0x8e6   :  { %3634 = vmatpush3.msra.mxu0 %v5260_v21 }
 0x8e7   :  { %3635 = vmatprep.subr.mxu0 %v5787_v63 }
 0x8e8   :  { %3636 = vmatpush3.msra.mxu0 %v5264_v16 }
 0x8e9   :  { %3637 = vmatprep.subr.mxu0 %v5787_v63 }
 0x8ea   :  { %3638 = vmatpush3.msra.mxu0 %v5270_v26  ;;  %v1614_v7 = vpop.permute.xlu0 %1613  ;;  %v1612_v15 = vpop.permute.xlu1 %1611 }
 0x8eb   :  { %3639 = vmatprep.subr.mxu0 %v5787_v63  ;;  %v1615_v34 = vsel %vm4567_vm5, %v1612_v15, %v1614_v7 }
 0x8ec   :  { %3640 = vmatpush3.msra.mxu0 %v5274_v27  ;;  %v1619_v5 = vmul.f32 %v1615_v34, %v5287_v14 }
 0x8ed   :  { %3641 = vmatprep.subr.mxu0 %v5787_v63 }
 0x8ee   :  { %3642 = vmatpush3.msra.mxu0 %v5279_v4  ;;  %v1618_v25 = vpop.permute.xlu1 %1617 }
 0x8ef   :  { %v1620_v43 = vmul.f32 %v1618_v25, %v1610_v24  ;;  %3643 = vmatprep.subr.mxu0 %v5787_v63 }
 0x8f0   :  { %3644 = vmatpush3.msra.mxu0 %v5283_v0 }
 0x8f1   :  { %v1621_v53 = vadd.f32 %v1620_v43, %v1619_v5  ;;  %3645 = vmatprep.subr.mxu0 %v5787_v63  ;;  %v5806_v5 = vld [vmem:[#allocation18_spill] sm:$0xff] }
 0x8f2   :  { %3646 = vmatpush3.msra.mxu0 %v5290_v23 }
 0x8f3   :  { %v5437_v48 = vmul.f32 %v4576_v3, %v1621_v53  ;;  %3647 = vmatprep.subr.mxu0 %v5787_v63 }
 0x8f4   :  { %3648 = vmatpush3.msra.mxu0 %v5295_v49 }
 0x8f5   :  { %4000 = vtanh.f32 %v5437_v48  ;;  %3649 = vmatprep.subr.mxu0 %v5787_v63 }
 0x8f6   :  { %3650 = vmatpush3.msra.mxu0 %v5299_v11 }
 0x8f7   :  { %3651 = vmatprep.subr.mxu0 %v5787_v63 }
 0x8f8   :  { %3652 = vmatpush3.msra.mxu0 %v5303_v6 }
 0x8f9   :  { %3653 = vmatprep.subr.mxu0 %v5787_v63 }
 0x8fa   :  { %3654 = vmatpush3.msra.mxu0 %v5307_v54 }
 0x8fb   :  { %3656 = vmatmul.mubr.f32.vlgmr.msra.gmra.mxu0 %v1646_v47  ;;  %3693 = vmatprep.subr.mxu0 %v5787_v63  ;;  %v1616_v47 = vsel %vm4567_vm5, %v1614_v7, %v1612_v15 }
 0x8fc   :  { %3694 = vmatpush3.msra.mxu0 %v5114_v45  ;;  %3725 = vmatprep.mubr.msk.f32.mxu0 %vm4189_vm4, %v5787_v63 }
 0x8fd   :  { %3695 = vmatprep.subr.mxu0 %v5787_v63 }
 0x8fe   :  { %3696 = vmatpush3.msra.mxu0 %v5122_v51 }
 0x8ff   :  { %3697 = vmatprep.subr.mxu0 %v5787_v63 }
 0x900   :  { %3698 = vmatpush3.msra.mxu0 %v5126_v56 }
 0x901   :  { %3699 = vmatprep.subr.mxu0 %v5787_v63 }
 0x902   :  { %v4001_v14 = vpop.eup %4000  ;;  %3700 = vmatpush3.msra.mxu0 %v5134_v57 }
 0x903   :  { %v1624_v24 = vmul.f32 %v4001_v14, %v1616_v47  ;;  %3701 = vmatprep.subr.mxu0 %v5787_v63 }
 0x904   :  { %3702 = vmatpush3.msra.mxu0 %v5140_v58 }
 0x905   :  { %3621 = vmatmul.mubr.f32.vlgmr.msra.gmra.mxu1 %v1624_v24  ;;  %3703 = vmatprep.subr.mxu0 %v5787_v63 }
 0x906   :  { %3659 = vmatpush3.msra.mxu1 %v4907_v13  ;;  %3690 = vmatprep.mubr.msk.f32.mxu1 %vm4189_vm4, %v5787_v63  ;;  %v5801_v13 = vld [vmem:[#allocation15_spill] sm:$0xff] }
 0x907   :  { %3660 = vmatprep.subr.mxu1 %v5787_v63  ;;  %3704 = vmatpush3.msra.mxu0 %v5146_v59 }
 0x908   :  { %3661 = vmatpush3.msra.mxu1 %v4917_v29  ;;  %3705 = vmatprep.subr.mxu0 %v5787_v63  ;;  %v5802_v29 = vld [vmem:[#allocation13_spill] sm:$0xff] }
 0x909   :  { %3662 = vmatprep.subr.mxu1 %v5787_v63  ;;  %3706 = vmatpush3.msra.mxu0 %v5152_v61 }
 0x90a   :  { %3663 = vmatpush3.msra.mxu1 %v4926_v35  ;;  %3707 = vmatprep.subr.mxu0 %v5787_v63  ;;  %v5803_v35 = vld [vmem:[#allocation16_spill] sm:$0xff] }
 0x90b   :  { %3664 = vmatprep.subr.mxu1 %v5787_v63  ;;  %3708 = vmatpush3.msra.mxu0 %v5158_v1 }
 0x90c   :  { %3665 = vmatpush3.msra.mxu1 %v4935_v36  ;;  %3709 = vmatprep.subr.mxu0 %v5787_v63  ;;  %v5804_v36 = vld [vmem:[#allocation14_spill] sm:$0xff] }
 0x90d   :  { %3666 = vmatprep.subr.mxu1 %v5787_v63  ;;  %3710 = vmatpush3.msra.mxu0 %v5164_v28 }
 0x90e   :  { %3667 = vmatpush3.msra.mxu1 %v4944_v37  ;;  %3711 = vmatprep.subr.mxu0 %v5787_v63  ;;  %v5805_v37 = vld [vmem:[#allocation22_spill] sm:$0xff] }
 0x90f   :  { %3668 = vmatprep.subr.mxu1 %v5787_v63  ;;  %3712 = vmatpush3.msra.mxu0 %v5170_v30 }
 0x910   :  { %3669 = vmatpush3.msra.mxu1 %v4953_v38  ;;  %3713 = vmatprep.subr.mxu0 %v5787_v63  ;;  %v237_v38 = vadd.f32 %v5049_v9, %v5805_v37 }
 0x911   :  { %3670 = vmatprep.subr.mxu1 %v5787_v63  ;;  %3714 = vmatpush3.msra.mxu0 %v5176_v31 }
 0x912   :  { %3671 = vmatpush3.msra.mxu1 %v4962_v39  ;;  %3715 = vmatprep.subr.mxu0 %v5787_v63 }
 0x913   :  { %3672 = vmatprep.subr.mxu1 %v5787_v63  ;;  %3716 = vmatpush3.msra.mxu0 %v5182_v33 }
 0x914   :  { %3673 = vmatpush3.msra.mxu1 %v4971_v40  ;;  %3717 = vmatprep.subr.mxu0 %v5787_v63 }
 0x915   :  { %3674 = vmatprep.subr.mxu1 %v5787_v63  ;;  %3718 = vmatpush3.msra.mxu0 %v5188_v32 }
 0x916   :  { %3675 = vmatpush3.msra.mxu1 %v4980_v41  ;;  %3719 = vmatprep.subr.mxu0 %v5787_v63 }
 0x917   :  { %3676 = vmatprep.subr.mxu1 %v5787_v63  ;;  %3720 = vmatpush3.msra.mxu0 %v5194_v55 }
 0x918   :  { %3677 = vmatpush3.msra.mxu1 %v4989_v42  ;;  %3721 = vmatprep.subr.mxu0 %v5787_v63 }
 0x919   :  { %3678 = vmatprep.subr.mxu1 %v5787_v63  ;;  %3722 = vmatpush3.msra.mxu0 %v5200_v62 }
 0x91a   :  { %3679 = vmatpush3.msra.mxu1 %v4998_v44  ;;  %3723 = vmatprep.subr.mxu0 %v5787_v63 }
 0x91b   :  { %3680 = vmatprep.subr.mxu1 %v5787_v63  ;;  %3724 = vmatpush3.msra.mxu0 %v5206_v12 }
 0x91c   :  { %3681 = vmatpush3.msra.mxu1 %v5007_v46  ;;  %3763 = vmatprep.subr.mxu0 %v5787_v63 }
 0x91d   :  { %3682 = vmatprep.subr.mxu1 %v5787_v63 }
 0x91e   :  { %3683 = vmatpush3.msra.mxu1 %v5801_v13 }
 0x91f   :  { %3684 = vmatprep.subr.mxu1 %v5787_v63 }
 0x920   :  { %3685 = vmatpush3.msra.mxu1 %v5802_v29 }
 0x921   :  { %3686 = vmatprep.subr.mxu1 %v5787_v63 }
 0x922   :  { %3687 = vmatpush3.msra.mxu1 %v5803_v35 }
 0x923   :  { %3688 = vmatprep.subr.mxu1 %v5787_v63 }
 0x924   :  { %3689 = vmatpush3.msra.mxu1 %v5804_v36 }
 0x925   :  { %3728 = vmatprep.subr.mxu1 %v5787_v63 }
 0x99b   :  { %v1715_v39 = vpop.f32.mrf.mxu0 }
 0x99c   :  { %v1719_v40 = vadd.f32 %v1715_v39, %v237_v38 }
 0x99d   :  { %v3587_v41 = vpop.f32.mrf.mxu0 }
 0x99e   :  { %v2572_v42 = vmul.f32 -1.442695, %v1719_v40 }
 0x9a0   :  { %4002 = vpow2.f32 %v2572_v42 }
 0x9a1   :  { %4004 = vtanh.f32 %v1719_v40 }
 0x9ad   :  { %v4003_v44 = vpop.eup %4002 }
 0x9ae   :  { %v1887_v46 = vadd.f32 1.0, %v4003_v44  ;;  %v4005_v52 = vpop.eup %4004 }
 0x9b0   :  { %4006 = vrcp.f32 %v1887_v46 }
 0x9bb   :  { %v1856_v2 = vpop.f32.mrf.mxu0 }
 0x9bd   :  { %v4007_v10 = vpop.eup %4006  ;;  %v3657_v7 = vpop.f32.mrf.mxu0 }
 0x9be   :  { %v1890_v15 = vsel %vm4368_vm3, %v4005_v52, %v4007_v10 }
 0x9bf   :  { %1891 = vrot.lane.b32.xlu0 %v1890_v15, %s4188_s1  ;;  %1893 = vrot.lane.b32.xlu1 %v1890_v15, %s4190_s18 }
 0x9c3   :  { %1897 = vrot.lane.b32.xlu0 %v1890_v15, %s4191_s23 }
 0x9c5   :  { %v1786_v9 = vpop.f32.mrf.mxu1 }
 0x9c6   :  { %v1857_v34 = vadd.f32 %v1856_v2, %v1786_v9 }
 0x9c7   :  { %v3622_v25 = vpop.f32.mrf.mxu1 }
 0x9c8   :  { %v1860_v43 = vadd.f32 %v5806_v5, %v1857_v34 }
 0x9ca   :  { %v2571_v53 = vmul.f32 -1.442695, %v1860_v43 }
 0x9cc   :  { %4008 = vpow2.f32 %v2571_v53 }
 0x9cd   :  { %4010 = vtanh.f32 %v1860_v43 }
 0x9d9   :  { %v4009_v14 = vpop.eup %4008 }
 0x9da   :  { %v1865_v47 = vadd.f32 1.0, %v4009_v14  ;;  %v4011_v24 = vpop.eup %4010 }
 0x9dc   :  { %4012 = vrcp.f32 %v1865_v47 }
 0x9e9   :  { %v4013_v13 = vpop.eup %4012 }
 0x9ea   :  { %v1868_v29 = vsel %vm4368_vm3, %v4011_v24, %v4013_v13 }
 0x9eb   :  { %1871 = vrot.lane.b32.xlu0 %v1868_v29, %s4190_s18  ;;  %1869 = vrot.lane.b32.xlu1 %v1868_v29, %s4188_s1 }
 0x9ef   :  { %1875 = vrot.lane.b32.xlu1 %v1868_v29, %s4191_s23 }
 0xa31   :  { %v1892_v35 = vpop.permute.xlu0 %1891  ;;  %v1894_v36 = vpop.permute.xlu1 %1893 }
 0xa32   :  { %v1895_v37 = vsel %vm4567_vm5, %v1892_v35, %v1894_v36  ;;  %v1896_v46 = vsel %vm4567_vm5, %v1894_v36, %v1892_v35 }
 0xa33   :  { %v1899_v39 = vmul.f32 %v1895_v37, %v5403_v50 }
 0xa35   :  { %v1898_v38 = vpop.permute.xlu0 %1897 }
 0xa36   :  { %v1900_v40 = vmul.f32 %v1898_v38, %v1890_v15 }
 0xa38   :  { %v1901_v41 = vadd.f32 %v1900_v40, %v1899_v39 }
 0xa3a   :  { %v5536_v42 = vmul.f32 %v4576_v3, %v1901_v41 }
 0xa3c   :  { %4014 = vtanh.f32 %v5536_v42 }
 0xa49   :  { %v4015_v44 = vpop.eup %4014 }
 0xa4a   :  { %v1904_v2 = vmul.f32 %v4015_v44, %v1896_v46 }
 0xa4c   :  { %3691 = vmatmul.mubr.f32.vlgmr.msra.gmra.mxu1 %v1904_v2 }
 0xa4d   :  { %3729 = vmatpush3.msra.mxu1 %v5238_v8  ;;  %3760 = vmatprep.mubr.msk.f32.mxu1 %vm4189_vm4, %v5787_v63 }
 0xa4e   :  { %3730 = vmatprep.subr.mxu1 %v5787_v63 }
 0xa4f   :  { %3731 = vmatpush3.msra.mxu1 %v5244_v18 }
 0xa50   :  { %3732 = vmatprep.subr.mxu1 %v5787_v63 }
 0xa51   :  { %3733 = vmatpush3.msra.mxu1 %v5248_v17 }
 0xa52   :  { %3734 = vmatprep.subr.mxu1 %v5787_v63 }
 0xa53   :  { %3735 = vmatpush3.msra.mxu1 %v5252_v19 }
 0xa54   :  { %3736 = vmatprep.subr.mxu1 %v5787_v63 }
 0xa55   :  { %3737 = vmatpush3.msra.mxu1 %v5256_v20 }
 0xa56   :  { %3738 = vmatprep.subr.mxu1 %v5787_v63 }
 0xa57   :  { %3739 = vmatpush3.msra.mxu1 %v5260_v21 }
 0xa58   :  { %3740 = vmatprep.subr.mxu1 %v5787_v63 }
 0xa59   :  { %3741 = vmatpush3.msra.mxu1 %v5264_v16 }
 0xa5a   :  { %3742 = vmatprep.subr.mxu1 %v5787_v63 }
 0xa5b   :  { %3743 = vmatpush3.msra.mxu1 %v5270_v26 }
 0xa5c   :  { %3744 = vmatprep.subr.mxu1 %v5787_v63 }
 0xa5d   :  { %3745 = vmatpush3.msra.mxu1 %v5274_v27  ;;  %v1872_v50 = vpop.permute.xlu0 %1871  ;;  %v1870_v52 = vpop.permute.xlu1 %1869 }
 0xa5e   :  { %3746 = vmatprep.subr.mxu1 %v5787_v63  ;;  %v1873_v10 = vsel %vm4567_vm5, %v1870_v52, %v1872_v50 }
 0xa5f   :  { %3747 = vmatpush3.msra.mxu1 %v5279_v4  ;;  %v1877_v15 = vmul.f32 %v1873_v10, %v5437_v48 }
 0xa60   :  { %3748 = vmatprep.subr.mxu1 %v5787_v63 }
 0xa61   :  { %3749 = vmatpush3.msra.mxu1 %v5283_v0  ;;  %v1876_v7 = vpop.permute.xlu1 %1875 }
 0xa62   :  { %v1878_v9 = vmul.f32 %v1876_v7, %v1868_v29  ;;  %3750 = vmatprep.subr.mxu1 %v5787_v63 }
 0xa63   :  { %3751 = vmatpush3.msra.mxu1 %v5290_v23 }
 0xa64   :  { %v1879_v34 = vadd.f32 %v1878_v9, %v1877_v15  ;;  %3752 = vmatprep.subr.mxu1 %v5787_v63 }
 0xa65   :  { %3753 = vmatpush3.msra.mxu1 %v5295_v49 }
 0xa66   :  { %v5572_v25 = vmul.f32 %v4576_v3, %v1879_v34  ;;  %3754 = vmatprep.subr.mxu1 %v5787_v63 }
 0xa67   :  { %3755 = vmatpush3.msra.mxu1 %v5299_v11 }
 0xa68   :  { %4016 = vtanh.f32 %v5572_v25  ;;  %3756 = vmatprep.subr.mxu1 %v5787_v63 }
 0xa69   :  { %3757 = vmatpush3.msra.mxu1 %v5303_v6 }
 0xa6a   :  { %3758 = vmatprep.subr.mxu1 %v5787_v63 }
 0xa6b   :  { %3759 = vmatpush3.msra.mxu1 %v5307_v54 }
 0xa6c   :  { %3761 = vmatmul.mubr.f32.vlgmr.msra.gmra.mxu1 %v1904_v2  ;;  %3798 = vmatprep.subr.mxu1 %v5787_v63 }
 0xa6d   :  { %3799 = vmatpush3.msra.mxu1 %v5238_v8  ;;  %3830 = vmatprep.mubr.msk.f32.mxu1 %vm4189_vm4, %v5787_v63  ;;  %v1874_v8 = vsel %vm4567_vm5, %v1872_v50, %v1870_v52 }
 0xa6e   :  { %3800 = vmatprep.subr.mxu1 %v5787_v63 }
 0xa6f   :  { %3801 = vmatpush3.msra.mxu1 %v5244_v18 }
 0xa70   :  { %3802 = vmatprep.subr.mxu1 %v5787_v63 }
 0xa71   :  { %3803 = vmatpush3.msra.mxu1 %v5248_v17 }
 0xa72   :  { %3804 = vmatprep.subr.mxu1 %v5787_v63 }
 0xa73   :  { %3805 = vmatpush3.msra.mxu1 %v5252_v19 }
 0xa74   :  { %3806 = vmatprep.subr.mxu1 %v5787_v63 }
 0xa75   :  { %v4017_v48 = vpop.eup %4016  ;;  %3807 = vmatpush3.msra.mxu1 %v5256_v20 }
 0xa76   :  { %v1882_v43 = vmul.f32 %v4017_v48, %v1874_v8  ;;  %3808 = vmatprep.subr.mxu1 %v5787_v63 }
 0xa77   :  { %3809 = vmatpush3.msra.mxu1 %v5260_v21 }
 0xa78   :  { %3726 = vmatmul.mubr.f32.vlgmr.msra.gmra.mxu0 %v1882_v43  ;;  %3810 = vmatprep.subr.mxu1 %v5787_v63 }
 0xa79   :  { %3764 = vmatpush3.msra.mxu0 %v5114_v45  ;;  %3811 = vmatpush3.msra.mxu1 %v5264_v16  ;;  %v4094_v45 = vld [vmem:[%s5748_s3] ss:$0 sm:$0xff] }
 0xa7a   :  { %3765 = vmatprep.subr.mxu0 %v5787_v63  ;;  %3812 = vmatprep.subr.mxu1 %v5787_v63 }
 0xa7b   :  { %3766 = vmatpush3.msra.mxu0 %v5122_v51  ;;  %3813 = vmatpush3.msra.mxu1 %v5270_v26  ;;  %v5807_v51 = vld [vmem:[#allocation21_spill] sm:$0xff] }
 0xa7c   :  { %3767 = vmatprep.subr.mxu0 %v5787_v63  ;;  %3814 = vmatprep.subr.mxu1 %v5787_v63 }
 0xa7d   :  { %3768 = vmatpush3.msra.mxu0 %v5126_v56  ;;  %3815 = vmatpush3.msra.mxu1 %v5274_v27  ;;  %v242_v56 = vadd.f32 %v4094_v45, %v5807_v51 }
 0xa7e   :  { %3769 = vmatprep.subr.mxu0 %v5787_v63  ;;  %3816 = vmatprep.subr.mxu1 %v5787_v63 }
 0xa7f   :  { %3770 = vmatpush3.msra.mxu0 %v5134_v57  ;;  %3817 = vmatpush3.msra.mxu1 %v5279_v4 }
 0xa80   :  { %3771 = vmatprep.subr.mxu0 %v5787_v63  ;;  %3818 = vmatprep.subr.mxu1 %v5787_v63 }
 0xa81   :  { %3772 = vmatpush3.msra.mxu0 %v5140_v58  ;;  %3819 = vmatpush3.msra.mxu1 %v5283_v0 }
 0xa82   :  { %3773 = vmatprep.subr.mxu0 %v5787_v63  ;;  %3820 = vmatprep.subr.mxu1 %v5787_v63 }
 0xa83   :  { %3774 = vmatpush3.msra.mxu0 %v5146_v59  ;;  %3821 = vmatpush3.msra.mxu1 %v5290_v23 }
 0xa84   :  { %3775 = vmatprep.subr.mxu0 %v5787_v63  ;;  %3822 = vmatprep.subr.mxu1 %v5787_v63 }
 0xa85   :  { %3776 = vmatpush3.msra.mxu0 %v5152_v61  ;;  %3823 = vmatpush3.msra.mxu1 %v5295_v49 }
 0xa86   :  { %3777 = vmatprep.subr.mxu0 %v5787_v63  ;;  %3824 = vmatprep.subr.mxu1 %v5787_v63 }
 0xa87   :  { %3778 = vmatpush3.msra.mxu0 %v5158_v1  ;;  %3825 = vmatpush3.msra.mxu1 %v5299_v11 }
 0xa88   :  { %3779 = vmatprep.subr.mxu0 %v5787_v63  ;;  %3826 = vmatprep.subr.mxu1 %v5787_v63 }
 0xa89   :  { %3780 = vmatpush3.msra.mxu0 %v5164_v28  ;;  %3827 = vmatpush3.msra.mxu1 %v5303_v6 }
 0xa8a   :  { %3781 = vmatprep.subr.mxu0 %v5787_v63  ;;  %3828 = vmatprep.subr.mxu1 %v5787_v63 }
 0xa8b   :  { %3782 = vmatpush3.msra.mxu0 %v5170_v30  ;;  %3795 = vmatprep.mubr.msk.f32.mxu0 %vm4189_vm4, %v5787_v63 }
 0xa8c   :  { %3783 = vmatprep.subr.mxu0 %v5787_v63  ;;  %3829 = vmatpush3.msra.mxu1 %v5307_v54 }
 0xa8d   :  { %3784 = vmatpush3.msra.mxu0 %v5176_v31  ;;  %3868 = vmatprep.subr.mxu1 %v5787_v63 }
 0xa8e   :  { %3785 = vmatprep.subr.mxu0 %v5787_v63 }
 0xa8f   :  { %3786 = vmatpush3.msra.mxu0 %v5182_v33 }
 0xa90   :  { %3787 = vmatprep.subr.mxu0 %v5787_v63 }
 0xa91   :  { %3788 = vmatpush3.msra.mxu0 %v5188_v32 }
 0xa92   :  { %3789 = vmatprep.subr.mxu0 %v5787_v63 }
 0xa93   :  { %3790 = vmatpush3.msra.mxu0 %v5194_v55 }
 0xa94   :  { %3791 = vmatprep.subr.mxu0 %v5787_v63 }
 0xa95   :  { %3792 = vmatpush3.msra.mxu0 %v5200_v62 }
 0xa96   :  { %3793 = vmatprep.subr.mxu0 %v5787_v63 }
 0xa97   :  { %3794 = vmatpush3.msra.mxu0 %v5206_v12 }
 0xa98   :  { %3833 = vmatprep.subr.mxu0 %v5787_v63 }
 0xb0c   :  { %v1973_v57 = vpop.f32.mrf.mxu1 }
 0xb0d   :  { %v1977_v58 = vadd.f32 %v1973_v57, %v242_v56 }
 0xb0e   :  { %v3692_v59 = vpop.f32.mrf.mxu1 }
 0xb0f   :  { %v2574_v61 = vmul.f32 -1.442695, %v1977_v58 }
 0xb11   :  { %4018 = vpow2.f32 %v2574_v61 }
 0xb12   :  { %4020 = vtanh.f32 %v1977_v58 }
 0xb1e   :  { %v4019_v1 = vpop.eup %4018 }
 0xb1f   :  { %v2145_v28 = vadd.f32 1.0, %v4019_v1  ;;  %v4021_v31 = vpop.eup %4020 }
 0xb21   :  { %4022 = vrcp.f32 %v2145_v28  ;;  %v2369_v28 = vld [vmem:[#allocation7 + $0x78] sm:$0xff] }
 0xb2c   :  { %v2114_v30 = vpop.f32.mrf.mxu1 }
 0xb2e   :  { %v4023_v33 = vpop.eup %4022  ;;  %v3762_v32 = vpop.f32.mrf.mxu1 }
 0xb2f   :  { %v2148_v55 = vsel %vm4368_vm3, %v4021_v31, %v4023_v33  ;;  %v2367_v31 = vld [vmem:[#allocation7 + $0x68] sm:$0xff]  ;;  %v2366_v33 = vld [vmem:[#allocation7 + $0x60] sm:$0xff] }
 0xb30   :  { %2151 = vrot.lane.b32.xlu1 %v2148_v55, %s4190_s18  ;;  %2149 = vrot.lane.b32.xlu0 %v2148_v55, %s4188_s1 }
 0xb38   :  { %v2044_v62 = vpop.f32.mrf.mxu0 }
 0xb39   :  { %v2115_v12 = vadd.f32 %v2114_v30, %v2044_v62  ;;  %v2368_v30 = vld [vmem:[#allocation7 + $0x70] sm:$0xff] }
 0xb3a   :  { %v3727_v18 = vpop.f32.mrf.mxu0 }
 0xb3b   :  { %v2118_v17 = vadd.f32 %v5806_v5, %v2115_v12  ;;  %v2365_v18 = vld [vmem:[#allocation7 + $0x58] sm:$0xff] }
 0xb3d   :  { %v2573_v19 = vmul.f32 -1.442695, %v2118_v17 }
 0xb3f   :  { %4024 = vpow2.f32 %v2573_v19  ;;  %v2363_v19 = vld [vmem:[#allocation7 + $0x48] sm:$0xff] }
 0xb40   :  { %4026 = vtanh.f32 %v2118_v17  ;;  %v2364_v17 = vld [vmem:[#allocation7 + $0x50] sm:$0xff] }
 0xb4c   :  { %v4025_v20 = vpop.eup %4024 }
 0xb4d   :  { %v2123_v21 = vadd.f32 1.0, %v4025_v20  ;;  %v4027_v16 = vpop.eup %4026  ;;  %v2362_v20 = vld [vmem:[#allocation7 + $0x40] sm:$0xff] }
 0xb4f   :  { %4028 = vrcp.f32 %v2123_v21  ;;  %v2361_v21 = vld [vmem:[#allocation7 + $0x38] sm:$0xff] }
 0xb5c   :  { %v4029_v26 = vpop.eup %4028 }
 0xb5d   :  { %v2126_v27 = vsel %vm4368_vm3, %v4027_v16, %v4029_v26  ;;  %v2359_v16 = vld [vmem:[#allocation7 + $0x28] sm:$0xff]  ;;  %v2358_v26 = vld [vmem:[#allocation7 + $0x20] sm:$0xff] }
 0xb5e   :  { %2129 = vrot.lane.b32.xlu1 %v2126_v27, %s4190_s18  ;;  %2127 = vrot.lane.b32.xlu0 %v2126_v27, %s4188_s1 }
 0xb62   :  { %2155 = vrot.lane.b32.xlu1 %v2148_v55, %s4191_s23  ;;  %2133 = vrot.lane.b32.xlu0 %v2126_v27, %s4191_s23 }
 0xba2   :  { %v2152_v4 = vpop.permute.xlu1 %2151  ;;  %v2150_v0 = vpop.permute.xlu0 %2149 }
 0xba3   :  { %v2153_v11 = vsel %vm4567_vm5, %v2150_v0, %v2152_v4  ;;  %v2154_v39 = vsel %vm4567_vm5, %v2152_v4, %v2150_v0  ;;  %v2356_v4 = vld [vmem:[#allocation7 + $0x10] sm:$0xff]  ;;  %v2355_v0 = vld [vmem:[#allocation7 + $0x8] sm:$0xff] }
 0xba4   :  { %v2157_v14 = vmul.f32 %v2153_v11, %v5536_v42  ;;  %v2462_v11 = vld [vmem:[#allocation8 + $0x70] sm:$0xff] }
 0xbd0   :  { %v2130_v23 = vpop.permute.xlu1 %2129  ;;  %v2128_v49 = vpop.permute.xlu0 %2127 }
 0xbd1   :  { %v2131_v6 = vsel %vm4567_vm5, %v2128_v49, %v2130_v23  ;;  %v2132_v41 = vsel %vm4567_vm5, %v2130_v23, %v2128_v49  ;;  %v2354_v23 = vld [vmem:[#allocation7] sm:$0xff]  ;;  %v2463_v49 = vld [vmem:[#allocation8 + $0x78] sm:$0xff] }
 0xbd2   :  { %v2135_v47 = vmul.f32 %v2131_v6, %v5572_v25  ;;  %v2461_v6 = vld [vmem:[#allocation8 + $0x68] sm:$0xff] }
 0xbd4   :  { %v2156_v54 = vpop.permute.xlu1 %2155  ;;  %v2134_v53 = vpop.permute.xlu0 %2133 }
 0xbd5   :  { %v2158_v24 = vmul.f32 %v2156_v54, %v2148_v55  ;;  %v2136_v13 = vmul.f32 %v2134_v53, %v2126_v27  ;;  %v2357_v27 = vld [vmem:[#allocation7 + $0x18] sm:$0xff]  ;;  %v2460_v54 = vld [vmem:[#allocation8 + $0x60] sm:$0xff] }
 0xbd6   :  { %v2459_v53 = vld [vmem:[#allocation8 + $0x58] sm:$0xff] }
 0xbd7   :  { %v2159_v29 = vadd.f32 %v2158_v24, %v2157_v14  ;;  %v2137_v35 = vadd.f32 %v2136_v13, %v2135_v47  ;;  %v2458_v14 = vld [vmem:[#allocation8 + $0x50] sm:$0xff]  ;;  %v2457_v47 = vld [vmem:[#allocation8 + $0x48] sm:$0xff]  ;;  %v2456_v24 = vld [vmem:[#allocation8 + $0x40] sm:$0xff] }
 0xbd8   :  { %v2455_v13 = vld [vmem:[#allocation8 + $0x38] sm:$0xff] }
 0xbd9   :  { %v2160_v36 = vmul.f32 %v4576_v3, %v2159_v29  ;;  %v2138_v37 = vmul.f32 %v4576_v3, %v2137_v35  ;;  %v2454_v29 = vld [vmem:[#allocation8 + $0x30] sm:$0xff]  ;;  %v2453_v35 = vld [vmem:[#allocation8 + $0x28] sm:$0xff] }
 0xbdb   :  { %4030 = vtanh.f32 %v2160_v36  ;;  %v2452_v36 = vld [vmem:[#allocation8 + $0x20] sm:$0xff] }
 0xbdc   :  { %4032 = vtanh.f32 %v2138_v37 }
 0xbe8   :  { %v4031_v38 = vpop.eup %4030 }
 0xbe9   :  { %v4033_v40 = vpop.eup %4032  ;;  %v2162_v42 = vmul.f32 %v4031_v38, %v2154_v39 }
 0xbea   :  { %v2140_v44 = vmul.f32 %v4033_v40, %v2132_v41 }
 0xbeb   :  { %3831 = vmatmul.mubr.f32.vlgmr.msra.gmra.mxu1 %v2162_v42  ;;  %v2576_v42 = vld [vmem:[%s5752_s7] ss:$0 sm:$0xff] }
 0xbec   :  { %3796 = vmatmul.mubr.f32.vlgmr.msra.gmra.mxu0 %v2140_v44  ;;  %3900 = vmatprep.mubr.msk.f32.mxu1 %vm4189_vm4, %v5787_v63 }
 0xbed   :  { %3865 = vmatprep.mubr.msk.f32.mxu0 %vm4189_vm4, %v5787_v63  ;;  %3834 = vmatpush3.msra.mxu0 %v2369_v28 }
 0xbee   :  { %3835 = vmatprep.subr.mxu0 %v5787_v63  ;;  %3869 = vmatpush3.msra.mxu1 %v2463_v49 }
 0xbef   :  { %3836 = vmatpush3.msra.mxu0 %v2368_v30  ;;  %3870 = vmatprep.subr.mxu1 %v5787_v63 }
 0xbf0   :  { %3837 = vmatprep.subr.mxu0 %v5787_v63  ;;  %3871 = vmatpush3.msra.mxu1 %v2462_v11 }
 0xbf1   :  { %3838 = vmatpush3.msra.mxu0 %v2367_v31  ;;  %3872 = vmatprep.subr.mxu1 %v5787_v63 }
 0xbf2   :  { %3839 = vmatprep.subr.mxu0 %v5787_v63  ;;  %3873 = vmatpush3.msra.mxu1 %v2461_v6 }
 0xbf3   :  { %3840 = vmatpush3.msra.mxu0 %v2366_v33  ;;  %3874 = vmatprep.subr.mxu1 %v5787_v63 }
 0xbf4   :  { %3841 = vmatprep.subr.mxu0 %v5787_v63  ;;  %3875 = vmatpush3.msra.mxu1 %v2460_v54 }
 0xbf5   :  { %3842 = vmatpush3.msra.mxu0 %v2365_v18  ;;  %3876 = vmatprep.subr.mxu1 %v5787_v63 }
 0xbf6   :  { %3843 = vmatprep.subr.mxu0 %v5787_v63  ;;  %3877 = vmatpush3.msra.mxu1 %v2459_v53 }
 0xbf7   :  { %3844 = vmatpush3.msra.mxu0 %v2364_v17  ;;  %3878 = vmatprep.subr.mxu1 %v5787_v63 }
 0xbf8   :  { %3845 = vmatprep.subr.mxu0 %v5787_v63  ;;  %3879 = vmatpush3.msra.mxu1 %v2458_v14 }
 0xbf9   :  { %3846 = vmatpush3.msra.mxu0 %v2363_v19  ;;  %3880 = vmatprep.subr.mxu1 %v5787_v63 }
 0xbfa   :  { %3847 = vmatprep.subr.mxu0 %v5787_v63  ;;  %3881 = vmatpush3.msra.mxu1 %v2457_v47 }
 0xbfb   :  { %3848 = vmatpush3.msra.mxu0 %v2362_v20  ;;  %3882 = vmatprep.subr.mxu1 %v5787_v63 }
 0xbfc   :  { %3849 = vmatprep.subr.mxu0 %v5787_v63  ;;  %3883 = vmatpush3.msra.mxu1 %v2456_v24 }
 0xbfd   :  { %3850 = vmatpush3.msra.mxu0 %v2361_v21  ;;  %3884 = vmatprep.subr.mxu1 %v5787_v63 }
 0xbfe   :  { %3851 = vmatprep.subr.mxu0 %v5787_v63  ;;  %3885 = vmatpush3.msra.mxu1 %v2455_v13 }
 0xbff   :  { %3886 = vmatprep.subr.mxu1 %v5787_v63 }
 0xc00   :  { %3887 = vmatpush3.msra.mxu1 %v2454_v29 }
 0xc01   :  { %3888 = vmatprep.subr.mxu1 %v5787_v63 }
 0xc02   :  { %3889 = vmatpush3.msra.mxu1 %v2453_v35 }
 0xc03   :  { %3890 = vmatprep.subr.mxu1 %v5787_v63 }
 0xc04   :  { %3891 = vmatpush3.msra.mxu1 %v2452_v36 }
 0xc05   :  { %3892 = vmatprep.subr.mxu1 %v5787_v63 }
 0xcab   :  { %v2299_v46 = vpop.f32.mrf.mxu1 }
 0xcac   :  { %v2229_v2 = vpop.f32.mrf.mxu0 }
 0xcad   :  { %v2300_v50 = vadd.f32 %v2299_v46, %v2229_v2  ;;  %v3832_v52 = vpop.f32.mrf.mxu1  ;;  %v2577_v46 = vld [vmem:[%s5753_s8] ss:$0 sm:$0xff] }
 0xcae   :  { %v3797_v10 = vpop.f32.mrf.mxu0  ;;  %v2450_v52 = vld [vmem:[#allocation8 + $0x10] sm:$0xff] }
 0xcaf   :  { %v2303_v7 = vadd.f32 %v5806_v5, %v2300_v50  ;;  %v2449_v10 = vld [vmem:[#allocation8 + $0x8] sm:$0xff] }
 0xcb1   :  { %v2575_v15 = vmul.f32 -1.442695, %v2303_v7 }
 0xcb3   :  { %4034 = vpow2.f32 %v2575_v15  ;;  %v2578_v15 = vld [vmem:[%s5755_s10] ss:$0 sm:$0xff] }
 0xcb4   :  { %4036 = vtanh.f32 %v2303_v7  ;;  %v2448_v7 = vld [vmem:[#allocation8] sm:$0xff] }
 0xcc0   :  { %v4035_v9 = vpop.eup %4034 }
 0xcc1   :  { %v2308_v34 = vadd.f32 1.0, %v4035_v9  ;;  %v4037_v25 = vpop.eup %4036 }
 0xcc3   :  { %4038 = vrcp.f32 %v2308_v34 }
 0xcd0   :  { %v4039_v48 = vpop.eup %4038 }
 0xcd1   :  { %v2311_v8 = vsel %vm4368_vm3, %v4037_v25, %v4039_v48 }
 0xcd2   :  { %2314 = vrot.lane.b32.xlu1 %v2311_v8, %s4190_s18  ;;  %2312 = vrot.lane.b32.xlu0 %v2311_v8, %s4188_s1 }
 0xcd6   :  { %2318 = vrot.lane.b32.xlu0 %v2311_v8, %s4191_s23 }
 0xd44   :  { %v2315_v43 = vpop.permute.xlu1 %2314  ;;  %v2313_v45 = vpop.permute.xlu0 %2312 }
 0xd45   :  { %v2316_v5 = vsel %vm4567_vm5, %v2313_v45, %v2315_v43  ;;  %v2317_v61 = vsel %vm4567_vm5, %v2315_v43, %v2313_v45 }
 0xd46   :  { %v2320_v56 = vmul.f32 %v2316_v5, %v2138_v37  ;;  %v2451_v37 = vld [vmem:[#allocation8 + $0x18] sm:$0xff] }
 0xd47   :  { %3893 = vmatpush3.msra.mxu1 %v2451_v37 }
 0xd48   :  { %v2319_v51 = vpop.permute.xlu0 %2318  ;;  %3894 = vmatprep.subr.mxu1 %v5787_v63 }
 0xd49   :  { %v2321_v57 = vmul.f32 %v2319_v51, %v2311_v8  ;;  %3895 = vmatpush3.msra.mxu1 %v2450_v52  ;;  %v2579_v8 = vld [vmem:[%s5757_s12] ss:$0 sm:$0xff] }
 0xd4a   :  { %3896 = vmatprep.subr.mxu1 %v5787_v63 }
 0xd4b   :  { %v2322_v58 = vadd.f32 %v2321_v57, %v2320_v56  ;;  %3897 = vmatpush3.msra.mxu1 %v2449_v10 }
 0xd4c   :  { %3898 = vmatprep.subr.mxu1 %v5787_v63 }
 0xd4d   :  { %v2323_v59 = vmul.f32 %v4576_v3, %v2322_v58  ;;  %3899 = vmatpush3.msra.mxu1 %v2448_v7 }
 0xd4f   :  { %4040 = vtanh.f32 %v2323_v59 }
 0xd5c   :  { %v4041_v22 = vpop.eup %4040 }
 0xd5d   :  { %v2325_v1 = vmul.f32 %v4041_v22, %v2317_v61 }
 0xd5f   :  { %2326 = vadd.xlane.f32.xlu1 %v2325_v1 }
 0xde8   :  { %v2327_v60 = vpop.xlane.xlu1 %2326 }
 0xde9   :  { %v2328_v32 = vmul.f32 0.03125, %v2327_v60 }
 0xdeb   :  { %v2329_v55 = vsub.f32 %v2325_v1, %v2328_v32 }
 0xded   :  { %v5699_v62 = vmul.f32 %v4576_v3, %v2329_v55  ;;  %v2360_v3 = vld [vmem:[#allocation7 + $0x30] sm:$0xff] }
 0xdee   :  { %3852 = vmatpush3.msra.mxu0 %v2360_v3 }
 0xdef   :  { %v2331_v12 = vmul.f32 %v5699_v62, %v5699_v62  ;;  %3853 = vmatprep.subr.mxu0 %v5787_v63 }
 0xdf0   :  { %3854 = vmatpush3.msra.mxu0 %v2359_v16 }
 0xdf1   :  { %2332 = vadd.xlane.f32.xlu0 %v2331_v12  ;;  %3855 = vmatprep.subr.mxu0 %v5787_v63 }
 0xdf2   :  { %3856 = vmatpush3.msra.mxu0 %v2358_v26 }
 0xdf3   :  { %3857 = vmatprep.subr.mxu0 %v5787_v63 }
 0xdf4   :  { %3858 = vmatpush3.msra.mxu0 %v2357_v27 }
 0xdf5   :  { %3859 = vmatprep.subr.mxu0 %v5787_v63 }
 0xdf6   :  { %3860 = vmatpush3.msra.mxu0 %v2356_v4 }
 0xdf7   :  { %3861 = vmatprep.subr.mxu0 %v5787_v63 }
 0xdf8   :  { %3862 = vmatpush3.msra.mxu0 %v2355_v0 }
 0xdf9   :  { %3863 = vmatprep.subr.mxu0 %v5787_v63 }
 0xdfa   :  { %3864 = vmatpush3.msra.mxu0 %v2354_v23 }
 0xe7a   :  { %v2333_v38 = vpop.xlane.xlu0 %2332 }
 0xe7b   :  { %v2334_v39 = vmul.f32 0.03125, %v2333_v38 }
 0xe7d   :  { %v2335_v40 = vadd.f32 1e-05, %v2334_v39 }
 0xe7f   :  { %4042 = vrsqrt.f32 %v2335_v40 }
 0xe8c   :  { %v4043_v41 = vpop.eup %4042 }
 0xe8d   :  { %v2337_v44 = vmul.f32 %v4043_v41, %v5699_v62 }
 0xe8f   :  { %v2345_v2 = vmul.f32 %v2576_v42, %v2337_v44 }
 0xe91   :  { %v2353_v50 = vadd.f32 %v2577_v46, %v2345_v2 }
 0xe93   :  { %3866 = vmatmul.mubr.f32.vlgmr.msra.gmra.mxu0 %v2353_v50 }
 0xf53   :  { %v2443_v9 = vpop.f32.mrf.mxu0 }
 0xf54   :  { %v2444_v34 = vadd.f32 %v2578_v15, %v2443_v9 }
 0xf55   :  { %v3867_v25 = vpop.f32.mrf.mxu0 }
 0xf56   :  { %v2447_v48 = vmax.f32 %v2444_v34, 0.0 }
 0xf58   :  { %3901 = vmatmul.mubr.f32.vlgmr.msra.gmra.mxu1 %v2447_v48 }
0x1018   :  { %v2537_v43 = vpop.f32.mrf.mxu1 }
0x1019   :  { %v2538_v45 = vadd.f32 %v2579_v8, %v2537_v43 }
0x101a   :  { %v3902_v5 = vpop.f32.mrf.mxu1 }
0x101b   :  { %2541 = vst [vmem:[%s5758_s13] sm:$0xff] %v2538_v45 }
0x101c   :  { %2546 = vsyncpa [#allocation4], 1 }
0x101d   :  { %2547 = vsyncpa [#allocation6], 1 }
0x101e   :  { %2548 = vsyncpa [#allocation9], 1 }

</bundles_post_ra>
